<compile_context>
chip_gen: v7x
topology: tpu7x:2x2x1
jax: 0.10.0
libtpu: 0.0.40
codegen_flags: <defaults>
</compile_context>

<pallas_src>
import jax
import jax.numpy as jnp
from jax import lax
from jax.experimental import pallas as pl
from jax.experimental.pallas import tpu as pltpu

_LANE = 128
# Fill bias in the *squared*-distance domain.  Assumes real squared distances
# stay below _THRESH (|features| up to ~1e14) -- vastly above any sane input.
_BIG = 1.0e30
_THRESH = 5.0e29


def _hd_kernel(sz1_ref, sz2_ref, v1_ref, v2_ref, out_ref):
    # Block shapes:
    #   sz1_ref, sz2_ref : (1, Bb)   int32   valid-node counts, one per lane
    #   v1_ref           : (D, N1, Bb)       graph-1 node features
    #   v2_ref           : (D, N2, Bb)       graph-2 node features
    #   out_ref          : (1, Bb)   f32     Hausdorff distance per pair
    D, N1, Bb = v1_ref.shape
    _, N2, _ = v2_ref.shape

    sz1 = sz1_ref[...]                                   # (1, Bb)
    sz2 = sz2_ref[...]                                   # (1, Bb)

    # Graph-2 padding bias: BIG where node i is padding (i >= sz2).
    i_idx = jax.lax.broadcasted_iota(jnp.int32, (N2, Bb), 0)
    bias2 = jnp.where(i_idx >= sz2, jnp.float32(_BIG), jnp.float32(0.0))

    def one_node(j, carry):
        bm1, best2 = carry
        # Squared distance from every graph-2 node to graph-1 node j.
        # Accumulated over D with plain VPU ops on (N2, Bb) slabs; v2 slabs
        # are re-read from VMEM per use (cheap) instead of being held live.
        d2 = jnp.zeros((N2, Bb), dtype=jnp.float32)
        for d in range(D):
            v2d = v2_ref[d].astype(jnp.float32)                    # (N2, Bb)
            v1dj = v1_ref[d, pl.ds(j, 1), :].astype(jnp.float32)   # (1, Bb)
            diff = v2d - v1dj
            d2 = d2 + diff * diff

        # Graph-1 padding bias for this node (j >= sz1).
        bias1_j = jnp.where(j >= sz1, jnp.float32(_BIG), jnp.float32(0.0))
        filled = d2 + bias2 + bias1_j                               # (N2, Bb)

        bm1 = jnp.minimum(bm1, filled)

        # Column-j minimum over graph-2 nodes; zero it if the whole column is
        # masked (mirrors masked_fill_(node_mask.prod(dim=1), 0)).
        bm2_j = jnp.min(filled, axis=0, keepdims=True)              # (1, Bb)
        bm2_j = jnp.where(bm2_j >= _THRESH, jnp.float32(0.0), bm2_j)
        best2 = jnp.maximum(best2, bm2_j)
        return bm1, best2

    bm1 = jnp.full((N2, Bb), _BIG, dtype=jnp.float32)
    best2 = jnp.zeros((1, Bb), dtype=jnp.float32)

    if N1 <= 16:
        # Small graphs: static unroll keeps every iteration a handful of
        # full-lane VPU ops plus one sublane reduce.
        for j in range(N1):
            bm1, best2 = one_node(j, (bm1, best2))
    else:
        # Larger graphs: bounded-unroll loop keeps live ranges / code size sane.
        bm1, best2 = lax.fori_loop(0, N1, one_node, (bm1, best2), unroll=2)

    # Zero rows that are entirely masked (row padding or sz1 == 0).
    bm1 = jnp.where(bm1 >= _THRESH, jnp.float32(0.0), bm1)
    best1 = jnp.max(bm1, axis=0, keepdims=True)                     # (1, Bb)

    # Deferred sqrt: only on the final per-pair scalar.
    out_ref[...] = jnp.sqrt(jnp.maximum(best1, best2))


def hd_forward(v1, am1, sz1, v2, am2, sz2, *,
               lanes_per_step=2048, feature_dtype=None):
    """Pallas equivalent of Hd.forward. am1/am2 unused (matches PyTorch).

    lanes_per_step: graph pairs per grid step (rounded to 128).  2048 keeps the
      per-step pipeline overhead <10% while staying far below every
      generation's VMEM budget (~6 MiB double-buffered blocks at these sizes).
    feature_dtype: optionally downcast node features for the kernel DMA
      (e.g. jnp.bfloat16 on HBM-bound v5e); the kernel computes in f32 either
      way.  Default None keeps full input precision.
    """
    del am1, am2
    B, N1, D = v1.shape
    _, N2, _ = v2.shape

    lanes_per_step = max(_LANE, int(lanes_per_step))
    B_pad128 = pl.cdiv(B, _LANE) * _LANE
    n_steps = pl.cdiv(B_pad128, min(lanes_per_step, B_pad128))
    if B_pad128 >= 2 * _LANE:
        n_steps = max(n_steps, 2)   # >=2 parallel steps -> both v7x TensorCores
    Bb = pl.cdiv(pl.cdiv(B_pad128, n_steps), _LANE) * _LANE
    B_pad = pl.cdiv(B, Bb) * Bb
    pad = B_pad - B

    # Batch-minor, feature-major layout (D, N, B): the D reduction becomes a
    # VPU accumulation and the batch stays lane-dense.  Pure layout plumbing.
    # TODO(synk): if callers can persist node features batch-minor, hoist this
    # transpose (a full extra HBM read+write pass) out of the hot path.
    v1t = jnp.transpose(v1, (2, 1, 0))
    v2t = jnp.transpose(v2, (2, 1, 0))
    if feature_dtype is not None:
        v1t = v1t.astype(feature_dtype)
        v2t = v2t.astype(feature_dtype)
    sz1p = sz1.astype(jnp.int32)
    sz2p = sz2.astype(jnp.int32)
    if pad:
        v1t = jnp.pad(v1t, ((0, 0), (0, 0), (0, pad)))
        v2t = jnp.pad(v2t, ((0, 0), (0, 0), (0, pad)))
        sz1p = jnp.pad(sz1p, (0, pad))      # sz=0 => fully masked => d=0
        sz2p = jnp.pad(sz2p, (0, pad))
    sz1p = sz1p.reshape(1, B_pad)
    sz2p = sz2p.reshape(1, B_pad)

    # Explicit VMEM budget: double-buffered feature blocks + headroom, stated
    # so a large Bb stays within v7x's 64 MiB physical VMEM.
    itemsize = jnp.dtype(v1t.dtype).itemsize
    in_block_bytes = (N1 + N2) * D * Bb * itemsize
    vmem_limit = int(min(60 << 20, max(32 << 20, 3 * in_block_bytes)))

    grid = (B_pad // Bb,)
    out = pl.pallas_call(
        _hd_kernel,
        out_shape=jax.ShapeDtypeStruct((1, B_pad), jnp.float32),
        grid_spec=pltpu.PrefetchScalarGridSpec(
            num_scalar_prefetch=0,
            grid=grid,
            in_specs=[
                pl.BlockSpec((1, Bb), lambda g: (0, g)),
                pl.BlockSpec((1, Bb), lambda g: (0, g)),
                # If exposed DMA waits show up on v5e, add
                # pipeline_mode=pl.Buffered(3) to the two feature specs below.
                pl.BlockSpec((D, N1, Bb), lambda g: (0, 0, g)),
                pl.BlockSpec((D, N2, Bb), lambda g: (0, 0, g)),
            ],
            out_specs=pl.BlockSpec((1, Bb), lambda g: (0, g)),
        ),
        compiler_params=pltpu.CompilerParams(
            dimension_semantics=("parallel",),
            vmem_limit_bytes=vmem_limit),
    )(sz1p, sz2p, v1t, v2t)

    return out[0, :B]


def hd_reference(v1, sz1, v2, sz2):
    """Pure-JAX transliteration of the PyTorch forward (for verification)."""
    diff = v2[:, :, None, :] - v1[:, None, :, :]        # (B, N2, N1, D)
    bdxy = jnp.sqrt(jnp.sum(diff ** 2, axis=3))
    B, N2, N1 = bdxy.shape
    i_idx = jnp.arange(N2)[None, :, None]
    j_idx = jnp.arange(N1)[None, None, :]
    mask = (j_idx >= sz1[:, None, None]) | (i_idx >= sz2[:, None, None])
    maximum = bdxy.max()
    filled = jnp.where(mask, maximum, bdxy)
    bm1 = filled.min(axis=2)
    bm2 = filled.min(axis=1)
    bm1 = jnp.where(jnp.all(mask, axis=2), 0.0, bm1)
    bm2 = jnp.where(jnp.all(mask, axis=1), 0.0, bm2)
    return jnp.maximum(bm1.max(axis=1), bm2.max(axis=1))


if __name__ == "__main__":
    key = jax.random.PRNGKey(0)
    k1, k2 = jax.random.split(key)

    B, N1, N2, D = 5, 10, 12, 16
    v1 = jax.random.normal(k1, (B, N1, D), dtype=jnp.float32)
    v2 = jax.random.normal(k2, (B, N2, D), dtype=jnp.float32)
    sz1 = jnp.array([10, 7, 0, 3, 10], dtype=jnp.int32)   # valid node counts (graph 1)
    sz2 = jnp.array([12, 5, 4, 12, 1], dtype=jnp.int32)   # valid node counts (graph 2)
    am1 = jnp.zeros((B, N1, N1), dtype=jnp.float32)       # unused, like PyTorch
    am2 = jnp.zeros((B, N2, N2), dtype=jnp.float32)       # unused, like PyTorch

    d = jax.jit(hd_forward)(v1, am1, sz1, v2, am2, sz2)
    d = jax.block_until_ready(d)

    d_ref = hd_reference(v1, sz1, v2, sz2)
    assert d.shape == (B,)
    assert jnp.allclose(d, d_ref, rtol=1e-5, atol=1e-5), (d, d_ref)

    print("KERNEL_OK")
</pallas_src>

<mosaic_0001>
module attributes {stable_mosaic.version = 11 : i64} {
  func.func @_hd_kernel(%arg0: i32, %arg1: memref<1x128xi32, #tpu.memory_space<vmem>>, %arg2: memref<1x128xi32, #tpu.memory_space<vmem>>, %arg3: memref<16x10x128xf32, #tpu.memory_space<vmem>>, %arg4: memref<16x12x128xf32, #tpu.memory_space<vmem>>, %arg5: memref<1x128xf32, #tpu.memory_space<vmem>>) attributes {dimension_semantics = [#tpu.dimension_semantics<parallel>], iteration_bounds = array<i64: 1>, scalar_prefetch = 0 : i64, scratch_operands = 0 : i64, tpu.core_type = #tpu.core_type<tc>, window_params = [{transform_indices = @transform_0, window_bounds = array<i64: 1, 128>}, {transform_indices = @transform_1, window_bounds = array<i64: 1, 128>}, {transform_indices = @transform_2, window_bounds = array<i64: 16, 10, 128>}, {transform_indices = @transform_3, window_bounds = array<i64: 16, 12, 128>}, {transform_indices = @transform_4, window_bounds = array<i64: 1, 128>}]} {
    %c0 = arith.constant 0 : index
    %c0_0 = arith.constant 0 : index
    %0 = vector.load %arg1[%c0, %c0_0] : memref<1x128xi32, #tpu.memory_space<vmem>>, vector<1x128xi32>
    %c0_1 = arith.constant 0 : index
    %c0_2 = arith.constant 0 : index
    %1 = vector.load %arg2[%c0_1, %c0_2] : memref<1x128xi32, #tpu.memory_space<vmem>>, vector<1x128xi32>
    %2 = tpu.iota {dimensions = array<i32: 0>} : vector<12x128xi32>
    %3 = vector.broadcast %1 : vector<1x128xi32> to vector<12x128xi32>
    %4 = arith.cmpi sge, %2, %3 : vector<12x128xi32>
    %cst = arith.constant 1.000000e+30 : f32
    %cst_3 = arith.constant 0.000000e+00 : f32
    %5 = vector.broadcast %cst : f32 to vector<12x128xf32>
    %6 = vector.broadcast %cst_3 : f32 to vector<12x128xf32>
    %7 = arith.select %4, %5, %6 : vector<12x128xi1>, vector<12x128xf32>
    %cst_4 = arith.constant 1.000000e+30 : f32
    %8 = vector.broadcast %cst_4 : f32 to vector<12x128xf32>
    %cst_5 = arith.constant 0.000000e+00 : f32
    %9 = vector.broadcast %cst_5 : f32 to vector<1x128xf32>
    %cst_6 = arith.constant 0.000000e+00 : f32
    %10 = vector.broadcast %cst_6 : f32 to vector<12x128xf32>
    %c0_7 = arith.constant 0 : index
    %c0_8 = arith.constant 0 : index
    %c0_9 = arith.constant 0 : index
    %11 = vector.load %arg4[%c0_7, %c0_8, %c0_9] : memref<16x12x128xf32, #tpu.memory_space<vmem>>, vector<1x12x128xf32>
    %12 = vector.shape_cast %11 : vector<1x12x128xf32> to vector<12x128xf32>
    %c0_10 = arith.constant 0 : index
    %c0_11 = arith.constant 0 : index
    %c0_12 = arith.constant 0 : index
    %13 = vector.load %arg3[%c0_10, %c0_11, %c0_12] : memref<16x10x128xf32, #tpu.memory_space<vmem>>, vector<1x1x128xf32>
    %14 = vector.shape_cast %13 : vector<1x1x128xf32> to vector<1x128xf32>
    %15 = vector.broadcast %14 : vector<1x128xf32> to vector<12x128xf32>
    %16 = arith.subf %12, %15 : vector<12x128xf32>
    %17 = arith.mulf %16, %16 : vector<12x128xf32>
    %18 = arith.addf %10, %17 : vector<12x128xf32>
    %c1 = arith.constant 1 : index
    %c0_13 = arith.constant 0 : index
    %c0_14 = arith.constant 0 : index
    %19 = vector.load %arg4[%c1, %c0_13, %c0_14] : memref<16x12x128xf32, #tpu.memory_space<vmem>>, vector<1x12x128xf32>
    %20 = vector.shape_cast %19 : vector<1x12x128xf32> to vector<12x128xf32>
    %c1_15 = arith.constant 1 : index
    %c0_16 = arith.constant 0 : index
    %c0_17 = arith.constant 0 : index
    %21 = vector.load %arg3[%c1_15, %c0_16, %c0_17] : memref<16x10x128xf32, #tpu.memory_space<vmem>>, vector<1x1x128xf32>
    %22 = vector.shape_cast %21 : vector<1x1x128xf32> to vector<1x128xf32>
    %23 = vector.broadcast %22 : vector<1x128xf32> to vector<12x128xf32>
    %24 = arith.subf %20, %23 : vector<12x128xf32>
    %25 = arith.mulf %24, %24 : vector<12x128xf32>
    %26 = arith.addf %18, %25 : vector<12x128xf32>
    %c2 = arith.constant 2 : index
    %c0_18 = arith.constant 0 : index
    %c0_19 = arith.constant 0 : index
    %27 = vector.load %arg4[%c2, %c0_18, %c0_19] : memref<16x12x128xf32, #tpu.memory_space<vmem>>, vector<1x12x128xf32>
    %28 = vector.shape_cast %27 : vector<1x12x128xf32> to vector<12x128xf32>
    %c2_20 = arith.constant 2 : index
    %c0_21 = arith.constant 0 : index
    %c0_22 = arith.constant 0 : index
    %29 = vector.load %arg3[%c2_20, %c0_21, %c0_22] : memref<16x10x128xf32, #tpu.memory_space<vmem>>, vector<1x1x128xf32>
    %30 = vector.shape_cast %29 : vector<1x1x128xf32> to vector<1x128xf32>
    %31 = vector.broadcast %30 : vector<1x128xf32> to vector<12x128xf32>
    %32 = arith.subf %28, %31 : vector<12x128xf32>
    %33 = arith.mulf %32, %32 : vector<12x128xf32>
    %34 = arith.addf %26, %33 : vector<12x128xf32>
    %c3 = arith.constant 3 : index
    %c0_23 = arith.constant 0 : index
    %c0_24 = arith.constant 0 : index
    %35 = vector.load %arg4[%c3, %c0_23, %c0_24] : memref<16x12x128xf32, #tpu.memory_space<vmem>>, vector<1x12x128xf32>
    %36 = vector.shape_cast %35 : vector<1x12x128xf32> to vector<12x128xf32>
    %c3_25 = arith.constant 3 : index
    %c0_26 = arith.constant 0 : index
    %c0_27 = arith.constant 0 : index
    %37 = vector.load %arg3[%c3_25, %c0_26, %c0_27] : memref<16x10x128xf32, #tpu.memory_space<vmem>>, vector<1x1x128xf32>
    %38 = vector.shape_cast %37 : vector<1x1x128xf32> to vector<1x128xf32>
    %39 = vector.broadcast %38 : vector<1x128xf32> to vector<12x128xf32>
    %40 = arith.subf %36, %39 : vector<12x128xf32>
    %41 = arith.mulf %40, %40 : vector<12x128xf32>
    %42 = arith.addf %34, %41 : vector<12x128xf32>
    %c4 = arith.constant 4 : index
    %c0_28 = arith.constant 0 : index
    %c0_29 = arith.constant 0 : index
    %43 = vector.load %arg4[%c4, %c0_28, %c0_29] : memref<16x12x128xf32, #tpu.memory_space<vmem>>, vector<1x12x128xf32>
    %44 = vector.shape_cast %43 : vector<1x12x128xf32> to vector<12x128xf32>
    %c4_30 = arith.constant 4 : index
    %c0_31 = arith.constant 0 : index
    %c0_32 = arith.constant 0 : index
    %45 = vector.load %arg3[%c4_30, %c0_31, %c0_32] : memref<16x10x128xf32, #tpu.memory_space<vmem>>, vector<1x1x128xf32>
    %46 = vector.shape_cast %45 : vector<1x1x128xf32> to vector<1x128xf32>
    %47 = vector.broadcast %46 : vector<1x128xf32> to vector<12x128xf32>
    %48 = arith.subf %44, %47 : vector<12x128xf32>
    %49 = arith.mulf %48, %48 : vector<12x128xf32>
    %50 = arith.addf %42, %49 : vector<12x128xf32>
    %c5 = arith.constant 5 : index
    %c0_33 = arith.constant 0 : index
    %c0_34 = arith.constant 0 : index
    %51 = vector.load %arg4[%c5, %c0_33, %c0_34] : memref<16x12x128xf32, #tpu.memory_space<vmem>>, vector<1x12x128xf32>
    %52 = vector.shape_cast %51 : vector<1x12x128xf32> to vector<12x128xf32>
    %c5_35 = arith.constant 5 : index
    %c0_36 = arith.constant 0 : index
    %c0_37 = arith.constant 0 : index
    %53 = vector.load %arg3[%c5_35, %c0_36, %c0_37] : memref<16x10x128xf32, #tpu.memory_space<vmem>>, vector<1x1x128xf32>
    %54 = vector.shape_cast %53 : vector<1x1x128xf32> to vector<1x128xf32>
    %55 = vector.broadcast %54 : vector<1x128xf32> to vector<12x128xf32>
    %56 = arith.subf %52, %55 : vector<12x128xf32>
    %57 = arith.mulf %56, %56 : vector<12x128xf32>
    %58 = arith.addf %50, %57 : vector<12x128xf32>
    %c6 = arith.constant 6 : index
    %c0_38 = arith.constant 0 : index
    %c0_39 = arith.constant 0 : index
    %59 = vector.load %arg4[%c6, %c0_38, %c0_39] : memref<16x12x128xf32, #tpu.memory_space<vmem>>, vector<1x12x128xf32>
    %60 = vector.shape_cast %59 : vector<1x12x128xf32> to vector<12x128xf32>
    %c6_40 = arith.constant 6 : index
    %c0_41 = arith.constant 0 : index
    %c0_42 = arith.constant 0 : index
    %61 = vector.load %arg3[%c6_40, %c0_41, %c0_42] : memref<16x10x128xf32, #tpu.memory_space<vmem>>, vector<1x1x128xf32>
    %62 = vector.shape_cast %61 : vector<1x1x128xf32> to vector<1x128xf32>
    %63 = vector.broadcast %62 : vector<1x128xf32> to vector<12x128xf32>
    %64 = arith.subf %60, %63 : vector<12x128xf32>
    %65 = arith.mulf %64, %64 : vector<12x128xf32>
    %66 = arith.addf %58, %65 : vector<12x128xf32>
    %c7 = arith.constant 7 : index
    %c0_43 = arith.constant 0 : index
    %c0_44 = arith.constant 0 : index
    %67 = vector.load %arg4[%c7, %c0_43, %c0_44] : memref<16x12x128xf32, #tpu.memory_space<vmem>>, vector<1x12x128xf32>
    %68 = vector.shape_cast %67 : vector<1x12x128xf32> to vector<12x128xf32>
    %c7_45 = arith.constant 7 : index
    %c0_46 = arith.constant 0 : index
    %c0_47 = arith.constant 0 : index
    %69 = vector.load %arg3[%c7_45, %c0_46, %c0_47] : memref<16x10x128xf32, #tpu.memory_space<vmem>>, vector<1x1x128xf32>
    %70 = vector.shape_cast %69 : vector<1x1x128xf32> to vector<1x128xf32>
    %71 = vector.broadcast %70 : vector<1x128xf32> to vector<12x128xf32>
    %72 = arith.subf %68, %71 : vector<12x128xf32>
    %73 = arith.mulf %72, %72 : vector<12x128xf32>
    %74 = arith.addf %66, %73 : vector<12x128xf32>
    %c8 = arith.constant 8 : index
    %c0_48 = arith.constant 0 : index
    %c0_49 = arith.constant 0 : index
    %75 = vector.load %arg4[%c8, %c0_48, %c0_49] : memref<16x12x128xf32, #tpu.memory_space<vmem>>, vector<1x12x128xf32>
    %76 = vector.shape_cast %75 : vector<1x12x128xf32> to vector<12x128xf32>
    %c8_50 = arith.constant 8 : index
    %c0_51 = arith.constant 0 : index
    %c0_52 = arith.constant 0 : index
    %77 = vector.load %arg3[%c8_50, %c0_51, %c0_52] : memref<16x10x128xf32, #tpu.memory_space<vmem>>, vector<1x1x128xf32>
    %78 = vector.shape_cast %77 : vector<1x1x128xf32> to vector<1x128xf32>
    %79 = vector.broadcast %78 : vector<1x128xf32> to vector<12x128xf32>
    %80 = arith.subf %76, %79 : vector<12x128xf32>
    %81 = arith.mulf %80, %80 : vector<12x128xf32>
    %82 = arith.addf %74, %81 : vector<12x128xf32>
    %c9 = arith.constant 9 : index
    %c0_53 = arith.constant 0 : index
    %c0_54 = arith.constant 0 : index
    %83 = vector.load %arg4[%c9, %c0_53, %c0_54] : memref<16x12x128xf32, #tpu.memory_space<vmem>>, vector<1x12x128xf32>
    %84 = vector.shape_cast %83 : vector<1x12x128xf32> to vector<12x128xf32>
    %c9_55 = arith.constant 9 : index
    %c0_56 = arith.constant 0 : index
    %c0_57 = arith.constant 0 : index
    %85 = vector.load %arg3[%c9_55, %c0_56, %c0_57] : memref<16x10x128xf32, #tpu.memory_space<vmem>>, vector<1x1x128xf32>
    %86 = vector.shape_cast %85 : vector<1x1x128xf32> to vector<1x128xf32>
    %87 = vector.broadcast %86 : vector<1x128xf32> to vector<12x128xf32>
    %88 = arith.subf %84, %87 : vector<12x128xf32>
    %89 = arith.mulf %88, %88 : vector<12x128xf32>
    %90 = arith.addf %82, %89 : vector<12x128xf32>
    %c10 = arith.constant 10 : index
    %c0_58 = arith.constant 0 : index
    %c0_59 = arith.constant 0 : index
    %91 = vector.load %arg4[%c10, %c0_58, %c0_59] : memref<16x12x128xf32, #tpu.memory_space<vmem>>, vector<1x12x128xf32>
    %92 = vector.shape_cast %91 : vector<1x12x128xf32> to vector<12x128xf32>
    %c10_60 = arith.constant 10 : index
    %c0_61 = arith.constant 0 : index
    %c0_62 = arith.constant 0 : index
    %93 = vector.load %arg3[%c10_60, %c0_61, %c0_62] : memref<16x10x128xf32, #tpu.memory_space<vmem>>, vector<1x1x128xf32>
    %94 = vector.shape_cast %93 : vector<1x1x128xf32> to vector<1x128xf32>
    %95 = vector.broadcast %94 : vector<1x128xf32> to vector<12x128xf32>
    %96 = arith.subf %92, %95 : vector<12x128xf32>
    %97 = arith.mulf %96, %96 : vector<12x128xf32>
    %98 = arith.addf %90, %97 : vector<12x128xf32>
    %c11 = arith.constant 11 : index
    %c0_63 = arith.constant 0 : index
    %c0_64 = arith.constant 0 : index
    %99 = vector.load %arg4[%c11, %c0_63, %c0_64] : memref<16x12x128xf32, #tpu.memory_space<vmem>>, vector<1x12x128xf32>
    %100 = vector.shape_cast %99 : vector<1x12x128xf32> to vector<12x128xf32>
    %c11_65 = arith.constant 11 : index
    %c0_66 = arith.constant 0 : index
    %c0_67 = arith.constant 0 : index
    %101 = vector.load %arg3[%c11_65, %c0_66, %c0_67] : memref<16x10x128xf32, #tpu.memory_space<vmem>>, vector<1x1x128xf32>
    %102 = vector.shape_cast %101 : vector<1x1x128xf32> to vector<1x128xf32>
    %103 = vector.broadcast %102 : vector<1x128xf32> to vector<12x128xf32>
    %104 = arith.subf %100, %103 : vector<12x128xf32>
    %105 = arith.mulf %104, %104 : vector<12x128xf32>
    %106 = arith.addf %98, %105 : vector<12x128xf32>
    %c12 = arith.constant 12 : index
    %c0_68 = arith.constant 0 : index
    %c0_69 = arith.constant 0 : index
    %107 = vector.load %arg4[%c12, %c0_68, %c0_69] : memref<16x12x128xf32, #tpu.memory_space<vmem>>, vector<1x12x128xf32>
    %108 = vector.shape_cast %107 : vector<1x12x128xf32> to vector<12x128xf32>
    %c12_70 = arith.constant 12 : index
    %c0_71 = arith.constant 0 : index
    %c0_72 = arith.constant 0 : index
    %109 = vector.load %arg3[%c12_70, %c0_71, %c0_72] : memref<16x10x128xf32, #tpu.memory_space<vmem>>, vector<1x1x128xf32>
    %110 = vector.shape_cast %109 : vector<1x1x128xf32> to vector<1x128xf32>
    %111 = vector.broadcast %110 : vector<1x128xf32> to vector<12x128xf32>
    %112 = arith.subf %108, %111 : vector<12x128xf32>
    %113 = arith.mulf %112, %112 : vector<12x128xf32>
    %114 = arith.addf %106, %113 : vector<12x128xf32>
    %c13 = arith.constant 13 : index
    %c0_73 = arith.constant 0 : index
    %c0_74 = arith.constant 0 : index
    %115 = vector.load %arg4[%c13, %c0_73, %c0_74] : memref<16x12x128xf32, #tpu.memory_space<vmem>>, vector<1x12x128xf32>
    %116 = vector.shape_cast %115 : vector<1x12x128xf32> to vector<12x128xf32>
    %c13_75 = arith.constant 13 : index
    %c0_76 = arith.constant 0 : index
    %c0_77 = arith.constant 0 : index
    %117 = vector.load %arg3[%c13_75, %c0_76, %c0_77] : memref<16x10x128xf32, #tpu.memory_space<vmem>>, vector<1x1x128xf32>
    %118 = vector.shape_cast %117 : vector<1x1x128xf32> to vector<1x128xf32>
    %119 = vector.broadcast %118 : vector<1x128xf32> to vector<12x128xf32>
    %120 = arith.subf %116, %119 : vector<12x128xf32>
    %121 = arith.mulf %120, %120 : vector<12x128xf32>
    %122 = arith.addf %114, %121 : vector<12x128xf32>
    %c14 = arith.constant 14 : index
    %c0_78 = arith.constant 0 : index
    %c0_79 = arith.constant 0 : index
    %123 = vector.load %arg4[%c14, %c0_78, %c0_79] : memref<16x12x128xf32, #tpu.memory_space<vmem>>, vector<1x12x128xf32>
    %124 = vector.shape_cast %123 : vector<1x12x128xf32> to vector<12x128xf32>
    %c14_80 = arith.constant 14 : index
    %c0_81 = arith.constant 0 : index
    %c0_82 = arith.constant 0 : index
    %125 = vector.load %arg3[%c14_80, %c0_81, %c0_82] : memref<16x10x128xf32, #tpu.memory_space<vmem>>, vector<1x1x128xf32>
    %126 = vector.shape_cast %125 : vector<1x1x128xf32> to vector<1x128xf32>
    %127 = vector.broadcast %126 : vector<1x128xf32> to vector<12x128xf32>
    %128 = arith.subf %124, %127 : vector<12x128xf32>
    %129 = arith.mulf %128, %128 : vector<12x128xf32>
    %130 = arith.addf %122, %129 : vector<12x128xf32>
    %c15 = arith.constant 15 : index
    %c0_83 = arith.constant 0 : index
    %c0_84 = arith.constant 0 : index
    %131 = vector.load %arg4[%c15, %c0_83, %c0_84] : memref<16x12x128xf32, #tpu.memory_space<vmem>>, vector<1x12x128xf32>
    %132 = vector.shape_cast %131 : vector<1x12x128xf32> to vector<12x128xf32>
    %c15_85 = arith.constant 15 : index
    %c0_86 = arith.constant 0 : index
    %c0_87 = arith.constant 0 : index
    %133 = vector.load %arg3[%c15_85, %c0_86, %c0_87] : memref<16x10x128xf32, #tpu.memory_space<vmem>>, vector<1x1x128xf32>
    %134 = vector.shape_cast %133 : vector<1x1x128xf32> to vector<1x128xf32>
    %135 = vector.broadcast %134 : vector<1x128xf32> to vector<12x128xf32>
    %136 = arith.subf %132, %135 : vector<12x128xf32>
    %137 = arith.mulf %136, %136 : vector<12x128xf32>
    %138 = arith.addf %130, %137 : vector<12x128xf32>
    %c0_i32 = arith.constant 0 : i32
    %139 = vector.broadcast %c0_i32 : i32 to vector<1x128xi32>
    %140 = arith.cmpi sle, %0, %139 : vector<1x128xi32>
    %cst_88 = arith.constant 1.000000e+30 : f32
    %cst_89 = arith.constant 0.000000e+00 : f32
    %141 = vector.broadcast %cst_88 : f32 to vector<1x128xf32>
    %142 = vector.broadcast %cst_89 : f32 to vector<1x128xf32>
    %143 = arith.select %140, %141, %142 : vector<1x128xi1>, vector<1x128xf32>
    %144 = arith.addf %138, %7 : vector<12x128xf32>
    %145 = vector.broadcast %143 : vector<1x128xf32> to vector<12x128xf32>
    %146 = arith.addf %144, %145 : vector<12x128xf32>
    %147 = arith.minimumf %8, %146 : vector<12x128xf32>
    %cst_90 = arith.constant dense<0x7F800000> : vector<128xf32>
    %148 = vector.multi_reduction <minimumf>, %146, %cst_90 [0] : vector<12x128xf32> to vector<128xf32>
    %149 = vector.shape_cast %148 : vector<128xf32> to vector<1x128xf32>
    %cst_91 = arith.constant 5.000000e+29 : f32
    %150 = vector.broadcast %cst_91 : f32 to vector<1x128xf32>
    %151 = arith.cmpf oge, %149, %150 : vector<1x128xf32>
    %cst_92 = arith.constant 0.000000e+00 : f32
    %152 = vector.broadcast %cst_92 : f32 to vector<1x128xf32>
    %153 = arith.select %151, %152, %149 : vector<1x128xi1>, vector<1x128xf32>
    %154 = arith.maximumf %9, %153 : vector<1x128xf32>
    %cst_93 = arith.constant 0.000000e+00 : f32
    %155 = vector.broadcast %cst_93 : f32 to vector<12x128xf32>
    %c0_94 = arith.constant 0 : index
    %c0_95 = arith.constant 0 : index
    %c0_96 = arith.constant 0 : index
    %156 = vector.load %arg4[%c0_94, %c0_95, %c0_96] : memref<16x12x128xf32, #tpu.memory_space<vmem>>, vector<1x12x128xf32>
    %157 = vector.shape_cast %156 : vector<1x12x128xf32> to vector<12x128xf32>
    %c0_97 = arith.constant 0 : index
    %c1_98 = arith.constant 1 : index
    %c0_99 = arith.constant 0 : index
    %158 = vector.load %arg3[%c0_97, %c1_98, %c0_99] : memref<16x10x128xf32, #tpu.memory_space<vmem>>, vector<1x1x128xf32>
    %159 = vector.shape_cast %158 : vector<1x1x128xf32> to vector<1x128xf32>
    %160 = vector.broadcast %159 : vector<1x128xf32> to vector<12x128xf32>
    %161 = arith.subf %157, %160 : vector<12x128xf32>
    %162 = arith.mulf %161, %161 : vector<12x128xf32>
    %163 = arith.addf %155, %162 : vector<12x128xf32>
    %c1_100 = arith.constant 1 : index
    %c0_101 = arith.constant 0 : index
    %c0_102 = arith.constant 0 : index
    %164 = vector.load %arg4[%c1_100, %c0_101, %c0_102] : memref<16x12x128xf32, #tpu.memory_space<vmem>>, vector<1x12x128xf32>
    %165 = vector.shape_cast %164 : vector<1x12x128xf32> to vector<12x128xf32>
    %c1_103 = arith.constant 1 : index
    %c1_104 = arith.constant 1 : index
    %c0_105 = arith.constant 0 : index
    %166 = vector.load %arg3[%c1_103, %c1_104, %c0_105] : memref<16x10x128xf32, #tpu.memory_space<vmem>>, vector<1x1x128xf32>
    %167 = vector.shape_cast %166 : vector<1x1x128xf32> to vector<1x128xf32>
    %168 = vector.broadcast %167 : vector<1x128xf32> to vector<12x128xf32>
    %169 = arith.subf %165, %168 : vector<12x128xf32>
    %170 = arith.mulf %169, %169 : vector<12x128xf32>
    %171 = arith.addf %163, %170 : vector<12x128xf32>
    %c2_106 = arith.constant 2 : index
    %c0_107 = arith.constant 0 : index
    %c0_108 = arith.constant 0 : index
    %172 = vector.load %arg4[%c2_106, %c0_107, %c0_108] : memref<16x12x128xf32, #tpu.memory_space<vmem>>, vector<1x12x128xf32>
    %173 = vector.shape_cast %172 : vector<1x12x128xf32> to vector<12x128xf32>
    %c2_109 = arith.constant 2 : index
    %c1_110 = arith.constant 1 : index
    %c0_111 = arith.constant 0 : index
    %174 = vector.load %arg3[%c2_109, %c1_110, %c0_111] : memref<16x10x128xf32, #tpu.memory_space<vmem>>, vector<1x1x128xf32>
    %175 = vector.shape_cast %174 : vector<1x1x128xf32> to vector<1x128xf32>
    %176 = vector.broadcast %175 : vector<1x128xf32> to vector<12x128xf32>
    %177 = arith.subf %173, %176 : vector<12x128xf32>
    %178 = arith.mulf %177, %177 : vector<12x128xf32>
    %179 = arith.addf %171, %178 : vector<12x128xf32>
    %c3_112 = arith.constant 3 : index
    %c0_113 = arith.constant 0 : index
    %c0_114 = arith.constant 0 : index
    %180 = vector.load %arg4[%c3_112, %c0_113, %c0_114] : memref<16x12x128xf32, #tpu.memory_space<vmem>>, vector<1x12x128xf32>
    %181 = vector.shape_cast %180 : vector<1x12x128xf32> to vector<12x128xf32>
    %c3_115 = arith.constant 3 : index
    %c1_116 = arith.constant 1 : index
    %c0_117 = arith.constant 0 : index
    %182 = vector.load %arg3[%c3_115, %c1_116, %c0_117] : memref<16x10x128xf32, #tpu.memory_space<vmem>>, vector<1x1x128xf32>
    %183 = vector.shape_cast %182 : vector<1x1x128xf32> to vector<1x128xf32>
    %184 = vector.broadcast %183 : vector<1x128xf32> to vector<12x128xf32>
    %185 = arith.subf %181, %184 : vector<12x128xf32>
    %186 = arith.mulf %185, %185 : vector<12x128xf32>
    %187 = arith.addf %179, %186 : vector<12x128xf32>
    %c4_118 = arith.constant 4 : index
    %c0_119 = arith.constant 0 : index
    %c0_120 = arith.constant 0 : index
    %188 = vector.load %arg4[%c4_118, %c0_119, %c0_120] : memref<16x12x128xf32, #tpu.memory_space<vmem>>, vector<1x12x128xf32>
    %189 = vector.shape_cast %188 : vector<1x12x128xf32> to vector<12x128xf32>
    %c4_121 = arith.constant 4 : index
    %c1_122 = arith.constant 1 : index
    %c0_123 = arith.constant 0 : index
    %190 = vector.load %arg3[%c4_121, %c1_122, %c0_123] : memref<16x10x128xf32, #tpu.memory_space<vmem>>, vector<1x1x128xf32>
    %191 = vector.shape_cast %190 : vector<1x1x128xf32> to vector<1x128xf32>
    %192 = vector.broadcast %191 : vector<1x128xf32> to vector<12x128xf32>
    %193 = arith.subf %189, %192 : vector<12x128xf32>
    %194 = arith.mulf %193, %193 : vector<12x128xf32>
    %195 = arith.addf %187, %194 : vector<12x128xf32>
    %c5_124 = arith.constant 5 : index
    %c0_125 = arith.constant 0 : index
    %c0_126 = arith.constant 0 : index
    %196 = vector.load %arg4[%c5_124, %c0_125, %c0_126] : memref<16x12x128xf32, #tpu.memory_space<vmem>>, vector<1x12x128xf32>
    %197 = vector.shape_cast %196 : vector<1x12x128xf32> to vector<12x128xf32>
    %c5_127 = arith.constant 5 : index
    %c1_128 = arith.constant 1 : index
    %c0_129 = arith.constant 0 : index
    %198 = vector.load %arg3[%c5_127, %c1_128, %c0_129] : memref<16x10x128xf32, #tpu.memory_space<vmem>>, vector<1x1x128xf32>
    %199 = vector.shape_cast %198 : vector<1x1x128xf32> to vector<1x128xf32>
    %200 = vector.broadcast %199 : vector<1x128xf32> to vector<12x128xf32>
    %201 = arith.subf %197, %200 : vector<12x128xf32>
    %202 = arith.mulf %201, %201 : vector<12x128xf32>
    %203 = arith.addf %195, %202 : vector<12x128xf32>
    %c6_130 = arith.constant 6 : index
    %c0_131 = arith.constant 0 : index
    %c0_132 = arith.constant 0 : index
    %204 = vector.load %arg4[%c6_130, %c0_131, %c0_132] : memref<16x12x128xf32, #tpu.memory_space<vmem>>, vector<1x12x128xf32>
    %205 = vector.shape_cast %204 : vector<1x12x128xf32> to vector<12x128xf32>
    %c6_133 = arith.constant 6 : index
    %c1_134 = arith.constant 1 : index
    %c0_135 = arith.constant 0 : index
    %206 = vector.load %arg3[%c6_133, %c1_134, %c0_135] : memref<16x10x128xf32, #tpu.memory_space<vmem>>, vector<1x1x128xf32>
    %207 = vector.shape_cast %206 : vector<1x1x128xf32> to vector<1x128xf32>
    %208 = vector.broadcast %207 : vector<1x128xf32> to vector<12x128xf32>
    %209 = arith.subf %205, %208 : vector<12x128xf32>
    %210 = arith.mulf %209, %209 : vector<12x128xf32>
    %211 = arith.addf %203, %210 : vector<12x128xf32>
    %c7_136 = arith.constant 7 : index
    %c0_137 = arith.constant 0 : index
    %c0_138 = arith.constant 0 : index
    %212 = vector.load %arg4[%c7_136, %c0_137, %c0_138] : memref<16x12x128xf32, #tpu.memory_space<vmem>>, vector<1x12x128xf32>
    %213 = vector.shape_cast %212 : vector<1x12x128xf32> to vector<12x128xf32>
    %c7_139 = arith.constant 7 : index
    %c1_140 = arith.constant 1 : index
    %c0_141 = arith.constant 0 : index
    %214 = vector.load %arg3[%c7_139, %c1_140, %c0_141] : memref<16x10x128xf32, #tpu.memory_space<vmem>>, vector<1x1x128xf32>
    %215 = vector.shape_cast %214 : vector<1x1x128xf32> to vector<1x128xf32>
    %216 = vector.broadcast %215 : vector<1x128xf32> to vector<12x128xf32>
    %217 = arith.subf %213, %216 : vector<12x128xf32>
    %218 = arith.mulf %217, %217 : vector<12x128xf32>
    %219 = arith.addf %211, %218 : vector<12x128xf32>
    %c8_142 = arith.constant 8 : index
    %c0_143 = arith.constant 0 : index
    %c0_144 = arith.constant 0 : index
    %220 = vector.load %arg4[%c8_142, %c0_143, %c0_144] : memref<16x12x128xf32, #tpu.memory_space<vmem>>, vector<1x12x128xf32>
    %221 = vector.shape_cast %220 : vector<1x12x128xf32> to vector<12x128xf32>
    %c8_145 = arith.constant 8 : index
    %c1_146 = arith.constant 1 : index
    %c0_147 = arith.constant 0 : index
    %222 = vector.load %arg3[%c8_145, %c1_146, %c0_147] : memref<16x10x128xf32, #tpu.memory_space<vmem>>, vector<1x1x128xf32>
    %223 = vector.shape_cast %222 : vector<1x1x128xf32> to vector<1x128xf32>
    %224 = vector.broadcast %223 : vector<1x128xf32> to vector<12x128xf32>
    %225 = arith.subf %221, %224 : vector<12x128xf32>
    %226 = arith.mulf %225, %225 : vector<12x128xf32>
    %227 = arith.addf %219, %226 : vector<12x128xf32>
    %c9_148 = arith.constant 9 : index
    %c0_149 = arith.constant 0 : index
    %c0_150 = arith.constant 0 : index
    %228 = vector.load %arg4[%c9_148, %c0_149, %c0_150] : memref<16x12x128xf32, #tpu.memory_space<vmem>>, vector<1x12x128xf32>
    %229 = vector.shape_cast %228 : vector<1x12x128xf32> to vector<12x128xf32>
    %c9_151 = arith.constant 9 : index
    %c1_152 = arith.constant 1 : index
    %c0_153 = arith.constant 0 : index
    %230 = vector.load %arg3[%c9_151, %c1_152, %c0_153] : memref<16x10x128xf32, #tpu.memory_space<vmem>>, vector<1x1x128xf32>
    %231 = vector.shape_cast %230 : vector<1x1x128xf32> to vector<1x128xf32>
    %232 = vector.broadcast %231 : vector<1x128xf32> to vector<12x128xf32>
    %233 = arith.subf %229, %232 : vector<12x128xf32>
    %234 = arith.mulf %233, %233 : vector<12x128xf32>
    %235 = arith.addf %227, %234 : vector<12x128xf32>
    %c10_154 = arith.constant 10 : index
    %c0_155 = arith.constant 0 : index
    %c0_156 = arith.constant 0 : index
    %236 = vector.load %arg4[%c10_154, %c0_155, %c0_156] : memref<16x12x128xf32, #tpu.memory_space<vmem>>, vector<1x12x128xf32>
    %237 = vector.shape_cast %236 : vector<1x12x128xf32> to vector<12x128xf32>
    %c10_157 = arith.constant 10 : index
    %c1_158 = arith.constant 1 : index
    %c0_159 = arith.constant 0 : index
    %238 = vector.load %arg3[%c10_157, %c1_158, %c0_159] : memref<16x10x128xf32, #tpu.memory_space<vmem>>, vector<1x1x128xf32>
    %239 = vector.shape_cast %238 : vector<1x1x128xf32> to vector<1x128xf32>
    %240 = vector.broadcast %239 : vector<1x128xf32> to vector<12x128xf32>
    %241 = arith.subf %237, %240 : vector<12x128xf32>
    %242 = arith.mulf %241, %241 : vector<12x128xf32>
    %243 = arith.addf %235, %242 : vector<12x128xf32>
    %c11_160 = arith.constant 11 : index
    %c0_161 = arith.constant 0 : index
    %c0_162 = arith.constant 0 : index
    %244 = vector.load %arg4[%c11_160, %c0_161, %c0_162] : memref<16x12x128xf32, #tpu.memory_space<vmem>>, vector<1x12x128xf32>
    %245 = vector.shape_cast %244 : vector<1x12x128xf32> to vector<12x128xf32>
    %c11_163 = arith.constant 11 : index
    %c1_164 = arith.constant 1 : index
    %c0_165 = arith.constant 0 : index
    %246 = vector.load %arg3[%c11_163, %c1_164, %c0_165] : memref<16x10x128xf32, #tpu.memory_space<vmem>>, vector<1x1x128xf32>
    %247 = vector.shape_cast %246 : vector<1x1x128xf32> to vector<1x128xf32>
    %248 = vector.broadcast %247 : vector<1x128xf32> to vector<12x128xf32>
    %249 = arith.subf %245, %248 : vector<12x128xf32>
    %250 = arith.mulf %249, %249 : vector<12x128xf32>
    %251 = arith.addf %243, %250 : vector<12x128xf32>
    %c12_166 = arith.constant 12 : index
    %c0_167 = arith.constant 0 : index
    %c0_168 = arith.constant 0 : index
    %252 = vector.load %arg4[%c12_166, %c0_167, %c0_168] : memref<16x12x128xf32, #tpu.memory_space<vmem>>, vector<1x12x128xf32>
    %253 = vector.shape_cast %252 : vector<1x12x128xf32> to vector<12x128xf32>
    %c12_169 = arith.constant 12 : index
    %c1_170 = arith.constant 1 : index
    %c0_171 = arith.constant 0 : index
    %254 = vector.load %arg3[%c12_169, %c1_170, %c0_171] : memref<16x10x128xf32, #tpu.memory_space<vmem>>, vector<1x1x128xf32>
    %255 = vector.shape_cast %254 : vector<1x1x128xf32> to vector<1x128xf32>
    %256 = vector.broadcast %255 : vector<1x128xf32> to vector<12x128xf32>
    %257 = arith.subf %253, %256 : vector<12x128xf32>
    %258 = arith.mulf %257, %257 : vector<12x128xf32>
    %259 = arith.addf %251, %258 : vector<12x128xf32>
    %c13_172 = arith.constant 13 : index
    %c0_173 = arith.constant 0 : index
    %c0_174 = arith.constant 0 : index
    %260 = vector.load %arg4[%c13_172, %c0_173, %c0_174] : memref<16x12x128xf32, #tpu.memory_space<vmem>>, vector<1x12x128xf32>
    %261 = vector.shape_cast %260 : vector<1x12x128xf32> to vector<12x128xf32>
    %c13_175 = arith.constant 13 : index
    %c1_176 = arith.constant 1 : index
    %c0_177 = arith.constant 0 : index
    %262 = vector.load %arg3[%c13_175, %c1_176, %c0_177] : memref<16x10x128xf32, #tpu.memory_space<vmem>>, vector<1x1x128xf32>
    %263 = vector.shape_cast %262 : vector<1x1x128xf32> to vector<1x128xf32>
    %264 = vector.broadcast %263 : vector<1x128xf32> to vector<12x128xf32>
    %265 = arith.subf %261, %264 : vector<12x128xf32>
    %266 = arith.mulf %265, %265 : vector<12x128xf32>
    %267 = arith.addf %259, %266 : vector<12x128xf32>
    %c14_178 = arith.constant 14 : index
    %c0_179 = arith.constant 0 : index
    %c0_180 = arith.constant 0 : index
    %268 = vector.load %arg4[%c14_178, %c0_179, %c0_180] : memref<16x12x128xf32, #tpu.memory_space<vmem>>, vector<1x12x128xf32>
    %269 = vector.shape_cast %268 : vector<1x12x128xf32> to vector<12x128xf32>
    %c14_181 = arith.constant 14 : index
    %c1_182 = arith.constant 1 : index
    %c0_183 = arith.constant 0 : index
    %270 = vector.load %arg3[%c14_181, %c1_182, %c0_183] : memref<16x10x128xf32, #tpu.memory_space<vmem>>, vector<1x1x128xf32>
    %271 = vector.shape_cast %270 : vector<1x1x128xf32> to vector<1x128xf32>
    %272 = vector.broadcast %271 : vector<1x128xf32> to vector<12x128xf32>
    %273 = arith.subf %269, %272 : vector<12x128xf32>
    %274 = arith.mulf %273, %273 : vector<12x128xf32>
    %275 = arith.addf %267, %274 : vector<12x128xf32>
    %c15_184 = arith.constant 15 : index
    %c0_185 = arith.constant 0 : index
    %c0_186 = arith.constant 0 : index
    %276 = vector.load %arg4[%c15_184, %c0_185, %c0_186] : memref<16x12x128xf32, #tpu.memory_space<vmem>>, vector<1x12x128xf32>
    %277 = vector.shape_cast %276 : vector<1x12x128xf32> to vector<12x128xf32>
    %c15_187 = arith.constant 15 : index
    %c1_188 = arith.constant 1 : index
    %c0_189 = arith.constant 0 : index
    %278 = vector.load %arg3[%c15_187, %c1_188, %c0_189] : memref<16x10x128xf32, #tpu.memory_space<vmem>>, vector<1x1x128xf32>
    %279 = vector.shape_cast %278 : vector<1x1x128xf32> to vector<1x128xf32>
    %280 = vector.broadcast %279 : vector<1x128xf32> to vector<12x128xf32>
    %281 = arith.subf %277, %280 : vector<12x128xf32>
    %282 = arith.mulf %281, %281 : vector<12x128xf32>
    %283 = arith.addf %275, %282 : vector<12x128xf32>
    %c1_i32 = arith.constant 1 : i32
    %284 = vector.broadcast %c1_i32 : i32 to vector<1x128xi32>
    %285 = arith.cmpi sle, %0, %284 : vector<1x128xi32>
    %cst_190 = arith.constant 1.000000e+30 : f32
    %cst_191 = arith.constant 0.000000e+00 : f32
    %286 = vector.broadcast %cst_190 : f32 to vector<1x128xf32>
    %287 = vector.broadcast %cst_191 : f32 to vector<1x128xf32>
    %288 = arith.select %285, %286, %287 : vector<1x128xi1>, vector<1x128xf32>
    %289 = arith.addf %283, %7 : vector<12x128xf32>
    %290 = vector.broadcast %288 : vector<1x128xf32> to vector<12x128xf32>
    %291 = arith.addf %289, %290 : vector<12x128xf32>
    %292 = arith.minimumf %147, %291 : vector<12x128xf32>
    %cst_192 = arith.constant dense<0x7F800000> : vector<128xf32>
    %293 = vector.multi_reduction <minimumf>, %291, %cst_192 [0] : vector<12x128xf32> to vector<128xf32>
    %294 = vector.shape_cast %293 : vector<128xf32> to vector<1x128xf32>
    %cst_193 = arith.constant 5.000000e+29 : f32
    %295 = vector.broadcast %cst_193 : f32 to vector<1x128xf32>
    %296 = arith.cmpf oge, %294, %295 : vector<1x128xf32>
    %cst_194 = arith.constant 0.000000e+00 : f32
    %297 = vector.broadcast %cst_194 : f32 to vector<1x128xf32>
    %298 = arith.select %296, %297, %294 : vector<1x128xi1>, vector<1x128xf32>
    %299 = arith.maximumf %154, %298 : vector<1x128xf32>
    %cst_195 = arith.constant 0.000000e+00 : f32
    %300 = vector.broadcast %cst_195 : f32 to vector<12x128xf32>
    %c0_196 = arith.constant 0 : index
    %c0_197 = arith.constant 0 : index
    %c0_198 = arith.constant 0 : index
    %301 = vector.load %arg4[%c0_196, %c0_197, %c0_198] : memref<16x12x128xf32, #tpu.memory_space<vmem>>, vector<1x12x128xf32>
    %302 = vector.shape_cast %301 : vector<1x12x128xf32> to vector<12x128xf32>
    %c0_199 = arith.constant 0 : index
    %c2_200 = arith.constant 2 : index
    %c0_201 = arith.constant 0 : index
    %303 = vector.load %arg3[%c0_199, %c2_200, %c0_201] : memref<16x10x128xf32, #tpu.memory_space<vmem>>, vector<1x1x128xf32>
    %304 = vector.shape_cast %303 : vector<1x1x128xf32> to vector<1x128xf32>
    %305 = vector.broadcast %304 : vector<1x128xf32> to vector<12x128xf32>
    %306 = arith.subf %302, %305 : vector<12x128xf32>
    %307 = arith.mulf %306, %306 : vector<12x128xf32>
    %308 = arith.addf %300, %307 : vector<12x128xf32>
    %c1_202 = arith.constant 1 : index
    %c0_203 = arith.constant 0 : index
    %c0_204 = arith.constant 0 : index
    %309 = vector.load %arg4[%c1_202, %c0_203, %c0_204] : memref<16x12x128xf32, #tpu.memory_space<vmem>>, vector<1x12x128xf32>
    %310 = vector.shape_cast %309 : vector<1x12x128xf32> to vector<12x128xf32>
    %c1_205 = arith.constant 1 : index
    %c2_206 = arith.constant 2 : index
    %c0_207 = arith.constant 0 : index
    %311 = vector.load %arg3[%c1_205, %c2_206, %c0_207] : memref<16x10x128xf32, #tpu.memory_space<vmem>>, vector<1x1x128xf32>
    %312 = vector.shape_cast %311 : vector<1x1x128xf32> to vector<1x128xf32>
    %313 = vector.broadcast %312 : vector<1x128xf32> to vector<12x128xf32>
    %314 = arith.subf %310, %313 : vector<12x128xf32>
    %315 = arith.mulf %314, %314 : vector<12x128xf32>
    %316 = arith.addf %308, %315 : vector<12x128xf32>
    %c2_208 = arith.constant 2 : index
    %c0_209 = arith.constant 0 : index
    %c0_210 = arith.constant 0 : index
    %317 = vector.load %arg4[%c2_208, %c0_209, %c0_210] : memref<16x12x128xf32, #tpu.memory_space<vmem>>, vector<1x12x128xf32>
    %318 = vector.shape_cast %317 : vector<1x12x128xf32> to vector<12x128xf32>
    %c2_211 = arith.constant 2 : index
    %c2_212 = arith.constant 2 : index
    %c0_213 = arith.constant 0 : index
    %319 = vector.load %arg3[%c2_211, %c2_212, %c0_213] : memref<16x10x128xf32, #tpu.memory_space<vmem>>, vector<1x1x128xf32>
    %320 = vector.shape_cast %319 : vector<1x1x128xf32> to vector<1x128xf32>
    %321 = vector.broadcast %320 : vector<1x128xf32> to vector<12x128xf32>
    %322 = arith.subf %318, %321 : vector<12x128xf32>
    %323 = arith.mulf %322, %322 : vector<12x128xf32>
    %324 = arith.addf %316, %323 : vector<12x128xf32>
    %c3_214 = arith.constant 3 : index
    %c0_215 = arith.constant 0 : index
    %c0_216 = arith.constant 0 : index
    %325 = vector.load %arg4[%c3_214, %c0_215, %c0_216] : memref<16x12x128xf32, #tpu.memory_space<vmem>>, vector<1x12x128xf32>
    %326 = vector.shape_cast %325 : vector<1x12x128xf32> to vector<12x128xf32>
    %c3_217 = arith.constant 3 : index
    %c2_218 = arith.constant 2 : index
    %c0_219 = arith.constant 0 : index
    %327 = vector.load %arg3[%c3_217, %c2_218, %c0_219] : memref<16x10x128xf32, #tpu.memory_space<vmem>>, vector<1x1x128xf32>
    %328 = vector.shape_cast %327 : vector<1x1x128xf32> to vector<1x128xf32>
    %329 = vector.broadcast %328 : vector<1x128xf32> to vector<12x128xf32>
    %330 = arith.subf %326, %329 : vector<12x128xf32>
    %331 = arith.mulf %330, %330 : vector<12x128xf32>
    %332 = arith.addf %324, %331 : vector<12x128xf32>
    %c4_220 = arith.constant 4 : index
    %c0_221 = arith.constant 0 : index
    %c0_222 = arith.constant 0 : index
    %333 = vector.load %arg4[%c4_220, %c0_221, %c0_222] : memref<16x12x128xf32, #tpu.memory_space<vmem>>, vector<1x12x128xf32>
    %334 = vector.shape_cast %333 : vector<1x12x128xf32> to vector<12x128xf32>
    %c4_223 = arith.constant 4 : index
    %c2_224 = arith.constant 2 : index
    %c0_225 = arith.constant 0 : index
    %335 = vector.load %arg3[%c4_223, %c2_224, %c0_225] : memref<16x10x128xf32, #tpu.memory_space<vmem>>, vector<1x1x128xf32>
    %336 = vector.shape_cast %335 : vector<1x1x128xf32> to vector<1x128xf32>
    %337 = vector.broadcast %336 : vector<1x128xf32> to vector<12x128xf32>
    %338 = arith.subf %334, %337 : vector<12x128xf32>
    %339 = arith.mulf %338, %338 : vector<12x128xf32>
    %340 = arith.addf %332, %339 : vector<12x128xf32>
    %c5_226 = arith.constant 5 : index
    %c0_227 = arith.constant 0 : index
    %c0_228 = arith.constant 0 : index
    %341 = vector.load %arg4[%c5_226, %c0_227, %c0_228] : memref<16x12x128xf32, #tpu.memory_space<vmem>>, vector<1x12x128xf32>
    %342 = vector.shape_cast %341 : vector<1x12x128xf32> to vector<12x128xf32>
    %c5_229 = arith.constant 5 : index
    %c2_230 = arith.constant 2 : index
    %c0_231 = arith.constant 0 : index
    %343 = vector.load %arg3[%c5_229, %c2_230, %c0_231] : memref<16x10x128xf32, #tpu.memory_space<vmem>>, vector<1x1x128xf32>
    %344 = vector.shape_cast %343 : vector<1x1x128xf32> to vector<1x128xf32>
    %345 = vector.broadcast %344 : vector<1x128xf32> to vector<12x128xf32>
    %346 = arith.subf %342, %345 : vector<12x128xf32>
    %347 = arith.mulf %346, %346 : vector<12x128xf32>
    %348 = arith.addf %340, %347 : vector<12x128xf32>
    %c6_232 = arith.constant 6 : index
    %c0_233 = arith.constant 0 : index
    %c0_234 = arith.constant 0 : index
    %349 = vector.load %arg4[%c6_232, %c0_233, %c0_234] : memref<16x12x128xf32, #tpu.memory_space<vmem>>, vector<1x12x128xf32>
    %350 = vector.shape_cast %349 : vector<1x12x128xf32> to vector<12x128xf32>
    %c6_235 = arith.constant 6 : index
    %c2_236 = arith.constant 2 : index
    %c0_237 = arith.constant 0 : index
    %351 = vector.load %arg3[%c6_235, %c2_236, %c0_237] : memref<16x10x128xf32, #tpu.memory_space<vmem>>, vector<1x1x128xf32>
    %352 = vector.shape_cast %351 : vector<1x1x128xf32> to vector<1x128xf32>
    %353 = vector.broadcast %352 : vector<1x128xf32> to vector<12x128xf32>
    %354 = arith.subf %350, %353 : vector<12x128xf32>
    %355 = arith.mulf %354, %354 : vector<12x128xf32>
    %356 = arith.addf %348, %355 : vector<12x128xf32>
    %c7_238 = arith.constant 7 : index
    %c0_239 = arith.constant 0 : index
    %c0_240 = arith.constant 0 : index
    %357 = vector.load %arg4[%c7_238, %c0_239, %c0_240] : memref<16x12x128xf32, #tpu.memory_space<vmem>>, vector<1x12x128xf32>
    %358 = vector.shape_cast %357 : vector<1x12x128xf32> to vector<12x128xf32>
    %c7_241 = arith.constant 7 : index
    %c2_242 = arith.constant 2 : index
    %c0_243 = arith.constant 0 : index
    %359 = vector.load %arg3[%c7_241, %c2_242, %c0_243] : memref<16x10x128xf32, #tpu.memory_space<vmem>>, vector<1x1x128xf32>
    %360 = vector.shape_cast %359 : vector<1x1x128xf32> to vector<1x128xf32>
    %361 = vector.broadcast %360 : vector<1x128xf32> to vector<12x128xf32>
    %362 = arith.subf %358, %361 : vector<12x128xf32>
    %363 = arith.mulf %362, %362 : vector<12x128xf32>
    %364 = arith.addf %356, %363 : vector<12x128xf32>
    %c8_244 = arith.constant 8 : index
    %c0_245 = arith.constant 0 : index
    %c0_246 = arith.constant 0 : index
    %365 = vector.load %arg4[%c8_244, %c0_245, %c0_246] : memref<16x12x128xf32, #tpu.memory_space<vmem>>, vector<1x12x128xf32>
    %366 = vector.shape_cast %365 : vector<1x12x128xf32> to vector<12x128xf32>
    %c8_247 = arith.constant 8 : index
    %c2_248 = arith.constant 2 : index
    %c0_249 = arith.constant 0 : index
    %367 = vector.load %arg3[%c8_247, %c2_248, %c0_249] : memref<16x10x128xf32, #tpu.memory_space<vmem>>, vector<1x1x128xf32>
    %368 = vector.shape_cast %367 : vector<1x1x128xf32> to vector<1x128xf32>
    %369 = vector.broadcast %368 : vector<1x128xf32> to vector<12x128xf32>
    %370 = arith.subf %366, %369 : vector<12x128xf32>
    %371 = arith.mulf %370, %370 : vector<12x128xf32>
    %372 = arith.addf %364, %371 : vector<12x128xf32>
    %c9_250 = arith.constant 9 : index
    %c0_251 = arith.constant 0 : index
    %c0_252 = arith.constant 0 : index
    %373 = vector.load %arg4[%c9_250, %c0_251, %c0_252] : memref<16x12x128xf32, #tpu.memory_space<vmem>>, vector<1x12x128xf32>
    %374 = vector.shape_cast %373 : vector<1x12x128xf32> to vector<12x128xf32>
    %c9_253 = arith.constant 9 : index
    %c2_254 = arith.constant 2 : index
    %c0_255 = arith.constant 0 : index
    %375 = vector.load %arg3[%c9_253, %c2_254, %c0_255] : memref<16x10x128xf32, #tpu.memory_space<vmem>>, vector<1x1x128xf32>
    %376 = vector.shape_cast %375 : vector<1x1x128xf32> to vector<1x128xf32>
    %377 = vector.broadcast %376 : vector<1x128xf32> to vector<12x128xf32>
    %378 = arith.subf %374, %377 : vector<12x128xf32>
    %379 = arith.mulf %378, %378 : vector<12x128xf32>
    %380 = arith.addf %372, %379 : vector<12x128xf32>
    %c10_256 = arith.constant 10 : index
    %c0_257 = arith.constant 0 : index
    %c0_258 = arith.constant 0 : index
    %381 = vector.load %arg4[%c10_256, %c0_257, %c0_258] : memref<16x12x128xf32, #tpu.memory_space<vmem>>, vector<1x12x128xf32>
    %382 = vector.shape_cast %381 : vector<1x12x128xf32> to vector<12x128xf32>
    %c10_259 = arith.constant 10 : index
    %c2_260 = arith.constant 2 : index
    %c0_261 = arith.constant 0 : index
    %383 = vector.load %arg3[%c10_259, %c2_260, %c0_261] : memref<16x10x128xf32, #tpu.memory_space<vmem>>, vector<1x1x128xf32>
    %384 = vector.shape_cast %383 : vector<1x1x128xf32> to vector<1x128xf32>
    %385 = vector.broadcast %384 : vector<1x128xf32> to vector<12x128xf32>
    %386 = arith.subf %382, %385 : vector<12x128xf32>
    %387 = arith.mulf %386, %386 : vector<12x128xf32>
    %388 = arith.addf %380, %387 : vector<12x128xf32>
    %c11_262 = arith.constant 11 : index
    %c0_263 = arith.constant 0 : index
    %c0_264 = arith.constant 0 : index
    %389 = vector.load %arg4[%c11_262, %c0_263, %c0_264] : memref<16x12x128xf32, #tpu.memory_space<vmem>>, vector<1x12x128xf32>
    %390 = vector.shape_cast %389 : vector<1x12x128xf32> to vector<12x128xf32>
    %c11_265 = arith.constant 11 : index
    %c2_266 = arith.constant 2 : index
    %c0_267 = arith.constant 0 : index
    %391 = vector.load %arg3[%c11_265, %c2_266, %c0_267] : memref<16x10x128xf32, #tpu.memory_space<vmem>>, vector<1x1x128xf32>
    %392 = vector.shape_cast %391 : vector<1x1x128xf32> to vector<1x128xf32>
    %393 = vector.broadcast %392 : vector<1x128xf32> to vector<12x128xf32>
    %394 = arith.subf %390, %393 : vector<12x128xf32>
    %395 = arith.mulf %394, %394 : vector<12x128xf32>
    %396 = arith.addf %388, %395 : vector<12x128xf32>
    %c12_268 = arith.constant 12 : index
    %c0_269 = arith.constant 0 : index
    %c0_270 = arith.constant 0 : index
    %397 = vector.load %arg4[%c12_268, %c0_269, %c0_270] : memref<16x12x128xf32, #tpu.memory_space<vmem>>, vector<1x12x128xf32>
    %398 = vector.shape_cast %397 : vector<1x12x128xf32> to vector<12x128xf32>
    %c12_271 = arith.constant 12 : index
    %c2_272 = arith.constant 2 : index
    %c0_273 = arith.constant 0 : index
    %399 = vector.load %arg3[%c12_271, %c2_272, %c0_273] : memref<16x10x128xf32, #tpu.memory_space<vmem>>, vector<1x1x128xf32>
    %400 = vector.shape_cast %399 : vector<1x1x128xf32> to vector<1x128xf32>
    %401 = vector.broadcast %400 : vector<1x128xf32> to vector<12x128xf32>
    %402 = arith.subf %398, %401 : vector<12x128xf32>
    %403 = arith.mulf %402, %402 : vector<12x128xf32>
    %404 = arith.addf %396, %403 : vector<12x128xf32>
    %c13_274 = arith.constant 13 : index
    %c0_275 = arith.constant 0 : index
    %c0_276 = arith.constant 0 : index
    %405 = vector.load %arg4[%c13_274, %c0_275, %c0_276] : memref<16x12x128xf32, #tpu.memory_space<vmem>>, vector<1x12x128xf32>
    %406 = vector.shape_cast %405 : vector<1x12x128xf32> to vector<12x128xf32>
    %c13_277 = arith.constant 13 : index
    %c2_278 = arith.constant 2 : index
    %c0_279 = arith.constant 0 : index
    %407 = vector.load %arg3[%c13_277, %c2_278, %c0_279] : memref<16x10x128xf32, #tpu.memory_space<vmem>>, vector<1x1x128xf32>
    %408 = vector.shape_cast %407 : vector<1x1x128xf32> to vector<1x128xf32>
    %409 = vector.broadcast %408 : vector<1x128xf32> to vector<12x128xf32>
    %410 = arith.subf %406, %409 : vector<12x128xf32>
    %411 = arith.mulf %410, %410 : vector<12x128xf32>
    %412 = arith.addf %404, %411 : vector<12x128xf32>
    %c14_280 = arith.constant 14 : index
    %c0_281 = arith.constant 0 : index
    %c0_282 = arith.constant 0 : index
    %413 = vector.load %arg4[%c14_280, %c0_281, %c0_282] : memref<16x12x128xf32, #tpu.memory_space<vmem>>, vector<1x12x128xf32>
    %414 = vector.shape_cast %413 : vector<1x12x128xf32> to vector<12x128xf32>
    %c14_283 = arith.constant 14 : index
    %c2_284 = arith.constant 2 : index
    %c0_285 = arith.constant 0 : index
    %415 = vector.load %arg3[%c14_283, %c2_284, %c0_285] : memref<16x10x128xf32, #tpu.memory_space<vmem>>, vector<1x1x128xf32>
    %416 = vector.shape_cast %415 : vector<1x1x128xf32> to vector<1x128xf32>
    %417 = vector.broadcast %416 : vector<1x128xf32> to vector<12x128xf32>
    %418 = arith.subf %414, %417 : vector<12x128xf32>
    %419 = arith.mulf %418, %418 : vector<12x128xf32>
    %420 = arith.addf %412, %419 : vector<12x128xf32>
    %c15_286 = arith.constant 15 : index
    %c0_287 = arith.constant 0 : index
    %c0_288 = arith.constant 0 : index
    %421 = vector.load %arg4[%c15_286, %c0_287, %c0_288] : memref<16x12x128xf32, #tpu.memory_space<vmem>>, vector<1x12x128xf32>
    %422 = vector.shape_cast %421 : vector<1x12x128xf32> to vector<12x128xf32>
    %c15_289 = arith.constant 15 : index
    %c2_290 = arith.constant 2 : index
    %c0_291 = arith.constant 0 : index
    %423 = vector.load %arg3[%c15_289, %c2_290, %c0_291] : memref<16x10x128xf32, #tpu.memory_space<vmem>>, vector<1x1x128xf32>
    %424 = vector.shape_cast %423 : vector<1x1x128xf32> to vector<1x128xf32>
    %425 = vector.broadcast %424 : vector<1x128xf32> to vector<12x128xf32>
    %426 = arith.subf %422, %425 : vector<12x128xf32>
    %427 = arith.mulf %426, %426 : vector<12x128xf32>
    %428 = arith.addf %420, %427 : vector<12x128xf32>
    %c2_i32 = arith.constant 2 : i32
    %429 = vector.broadcast %c2_i32 : i32 to vector<1x128xi32>
    %430 = arith.cmpi sle, %0, %429 : vector<1x128xi32>
    %cst_292 = arith.constant 1.000000e+30 : f32
    %cst_293 = arith.constant 0.000000e+00 : f32
    %431 = vector.broadcast %cst_292 : f32 to vector<1x128xf32>
    %432 = vector.broadcast %cst_293 : f32 to vector<1x128xf32>
    %433 = arith.select %430, %431, %432 : vector<1x128xi1>, vector<1x128xf32>
    %434 = arith.addf %428, %7 : vector<12x128xf32>
    %435 = vector.broadcast %433 : vector<1x128xf32> to vector<12x128xf32>
    %436 = arith.addf %434, %435 : vector<12x128xf32>
    %437 = arith.minimumf %292, %436 : vector<12x128xf32>
    %cst_294 = arith.constant dense<0x7F800000> : vector<128xf32>
    %438 = vector.multi_reduction <minimumf>, %436, %cst_294 [0] : vector<12x128xf32> to vector<128xf32>
    %439 = vector.shape_cast %438 : vector<128xf32> to vector<1x128xf32>
    %cst_295 = arith.constant 5.000000e+29 : f32
    %440 = vector.broadcast %cst_295 : f32 to vector<1x128xf32>
    %441 = arith.cmpf oge, %439, %440 : vector<1x128xf32>
    %cst_296 = arith.constant 0.000000e+00 : f32
    %442 = vector.broadcast %cst_296 : f32 to vector<1x128xf32>
    %443 = arith.select %441, %442, %439 : vector<1x128xi1>, vector<1x128xf32>
    %444 = arith.maximumf %299, %443 : vector<1x128xf32>
    %cst_297 = arith.constant 0.000000e+00 : f32
    %445 = vector.broadcast %cst_297 : f32 to vector<12x128xf32>
    %c0_298 = arith.constant 0 : index
    %c0_299 = arith.constant 0 : index
    %c0_300 = arith.constant 0 : index
    %446 = vector.load %arg4[%c0_298, %c0_299, %c0_300] : memref<16x12x128xf32, #tpu.memory_space<vmem>>, vector<1x12x128xf32>
    %447 = vector.shape_cast %446 : vector<1x12x128xf32> to vector<12x128xf32>
    %c0_301 = arith.constant 0 : index
    %c3_302 = arith.constant 3 : index
    %c0_303 = arith.constant 0 : index
    %448 = vector.load %arg3[%c0_301, %c3_302, %c0_303] : memref<16x10x128xf32, #tpu.memory_space<vmem>>, vector<1x1x128xf32>
    %449 = vector.shape_cast %448 : vector<1x1x128xf32> to vector<1x128xf32>
    %450 = vector.broadcast %449 : vector<1x128xf32> to vector<12x128xf32>
    %451 = arith.subf %447, %450 : vector<12x128xf32>
    %452 = arith.mulf %451, %451 : vector<12x128xf32>
    %453 = arith.addf %445, %452 : vector<12x128xf32>
    %c1_304 = arith.constant 1 : index
    %c0_305 = arith.constant 0 : index
    %c0_306 = arith.constant 0 : index
    %454 = vector.load %arg4[%c1_304, %c0_305, %c0_306] : memref<16x12x128xf32, #tpu.memory_space<vmem>>, vector<1x12x128xf32>
    %455 = vector.shape_cast %454 : vector<1x12x128xf32> to vector<12x128xf32>
    %c1_307 = arith.constant 1 : index
    %c3_308 = arith.constant 3 : index
    %c0_309 = arith.constant 0 : index
    %456 = vector.load %arg3[%c1_307, %c3_308, %c0_309] : memref<16x10x128xf32, #tpu.memory_space<vmem>>, vector<1x1x128xf32>
    %457 = vector.shape_cast %456 : vector<1x1x128xf32> to vector<1x128xf32>
    %458 = vector.broadcast %457 : vector<1x128xf32> to vector<12x128xf32>
    %459 = arith.subf %455, %458 : vector<12x128xf32>
    %460 = arith.mulf %459, %459 : vector<12x128xf32>
    %461 = arith.addf %453, %460 : vector<12x128xf32>
    %c2_310 = arith.constant 2 : index
    %c0_311 = arith.constant 0 : index
    %c0_312 = arith.constant 0 : index
    %462 = vector.load %arg4[%c2_310, %c0_311, %c0_312] : memref<16x12x128xf32, #tpu.memory_space<vmem>>, vector<1x12x128xf32>
    %463 = vector.shape_cast %462 : vector<1x12x128xf32> to vector<12x128xf32>
    %c2_313 = arith.constant 2 : index
    %c3_314 = arith.constant 3 : index
    %c0_315 = arith.constant 0 : index
    %464 = vector.load %arg3[%c2_313, %c3_314, %c0_315] : memref<16x10x128xf32, #tpu.memory_space<vmem>>, vector<1x1x128xf32>
    %465 = vector.shape_cast %464 : vector<1x1x128xf32> to vector<1x128xf32>
    %466 = vector.broadcast %465 : vector<1x128xf32> to vector<12x128xf32>
    %467 = arith.subf %463, %466 : vector<12x128xf32>
    %468 = arith.mulf %467, %467 : vector<12x128xf32>
    %469 = arith.addf %461, %468 : vector<12x128xf32>
    %c3_316 = arith.constant 3 : index
    %c0_317 = arith.constant 0 : index
    %c0_318 = arith.constant 0 : index
    %470 = vector.load %arg4[%c3_316, %c0_317, %c0_318] : memref<16x12x128xf32, #tpu.memory_space<vmem>>, vector<1x12x128xf32>
    %471 = vector.shape_cast %470 : vector<1x12x128xf32> to vector<12x128xf32>
    %c3_319 = arith.constant 3 : index
    %c3_320 = arith.constant 3 : index
    %c0_321 = arith.constant 0 : index
    %472 = vector.load %arg3[%c3_319, %c3_320, %c0_321] : memref<16x10x128xf32, #tpu.memory_space<vmem>>, vector<1x1x128xf32>
    %473 = vector.shape_cast %472 : vector<1x1x128xf32> to vector<1x128xf32>
    %474 = vector.broadcast %473 : vector<1x128xf32> to vector<12x128xf32>
    %475 = arith.subf %471, %474 : vector<12x128xf32>
    %476 = arith.mulf %475, %475 : vector<12x128xf32>
    %477 = arith.addf %469, %476 : vector<12x128xf32>
    %c4_322 = arith.constant 4 : index
    %c0_323 = arith.constant 0 : index
    %c0_324 = arith.constant 0 : index
    %478 = vector.load %arg4[%c4_322, %c0_323, %c0_324] : memref<16x12x128xf32, #tpu.memory_space<vmem>>, vector<1x12x128xf32>
    %479 = vector.shape_cast %478 : vector<1x12x128xf32> to vector<12x128xf32>
    %c4_325 = arith.constant 4 : index
    %c3_326 = arith.constant 3 : index
    %c0_327 = arith.constant 0 : index
    %480 = vector.load %arg3[%c4_325, %c3_326, %c0_327] : memref<16x10x128xf32, #tpu.memory_space<vmem>>, vector<1x1x128xf32>
    %481 = vector.shape_cast %480 : vector<1x1x128xf32> to vector<1x128xf32>
    %482 = vector.broadcast %481 : vector<1x128xf32> to vector<12x128xf32>
    %483 = arith.subf %479, %482 : vector<12x128xf32>
    %484 = arith.mulf %483, %483 : vector<12x128xf32>
    %485 = arith.addf %477, %484 : vector<12x128xf32>
    %c5_328 = arith.constant 5 : index
    %c0_329 = arith.constant 0 : index
    %c0_330 = arith.constant 0 : index
    %486 = vector.load %arg4[%c5_328, %c0_329, %c0_330] : memref<16x12x128xf32, #tpu.memory_space<vmem>>, vector<1x12x128xf32>
    %487 = vector.shape_cast %486 : vector<1x12x128xf32> to vector<12x128xf32>
    %c5_331 = arith.constant 5 : index
    %c3_332 = arith.constant 3 : index
    %c0_333 = arith.constant 0 : index
    %488 = vector.load %arg3[%c5_331, %c3_332, %c0_333] : memref<16x10x128xf32, #tpu.memory_space<vmem>>, vector<1x1x128xf32>
    %489 = vector.shape_cast %488 : vector<1x1x128xf32> to vector<1x128xf32>
    %490 = vector.broadcast %489 : vector<1x128xf32> to vector<12x128xf32>
    %491 = arith.subf %487, %490 : vector<12x128xf32>
    %492 = arith.mulf %491, %491 : vector<12x128xf32>
    %493 = arith.addf %485, %492 : vector<12x128xf32>
    %c6_334 = arith.constant 6 : index
    %c0_335 = arith.constant 0 : index
    %c0_336 = arith.constant 0 : index
    %494 = vector.load %arg4[%c6_334, %c0_335, %c0_336] : memref<16x12x128xf32, #tpu.memory_space<vmem>>, vector<1x12x128xf32>
    %495 = vector.shape_cast %494 : vector<1x12x128xf32> to vector<12x128xf32>
    %c6_337 = arith.constant 6 : index
    %c3_338 = arith.constant 3 : index
    %c0_339 = arith.constant 0 : index
    %496 = vector.load %arg3[%c6_337, %c3_338, %c0_339] : memref<16x10x128xf32, #tpu.memory_space<vmem>>, vector<1x1x128xf32>
    %497 = vector.shape_cast %496 : vector<1x1x128xf32> to vector<1x128xf32>
    %498 = vector.broadcast %497 : vector<1x128xf32> to vector<12x128xf32>
    %499 = arith.subf %495, %498 : vector<12x128xf32>
    %500 = arith.mulf %499, %499 : vector<12x128xf32>
    %501 = arith.addf %493, %500 : vector<12x128xf32>
    %c7_340 = arith.constant 7 : index
    %c0_341 = arith.constant 0 : index
    %c0_342 = arith.constant 0 : index
    %502 = vector.load %arg4[%c7_340, %c0_341, %c0_342] : memref<16x12x128xf32, #tpu.memory_space<vmem>>, vector<1x12x128xf32>
    %503 = vector.shape_cast %502 : vector<1x12x128xf32> to vector<12x128xf32>
    %c7_343 = arith.constant 7 : index
    %c3_344 = arith.constant 3 : index
    %c0_345 = arith.constant 0 : index
    %504 = vector.load %arg3[%c7_343, %c3_344, %c0_345] : memref<16x10x128xf32, #tpu.memory_space<vmem>>, vector<1x1x128xf32>
    %505 = vector.shape_cast %504 : vector<1x1x128xf32> to vector<1x128xf32>
    %506 = vector.broadcast %505 : vector<1x128xf32> to vector<12x128xf32>
    %507 = arith.subf %503, %506 : vector<12x128xf32>
    %508 = arith.mulf %507, %507 : vector<12x128xf32>
    %509 = arith.addf %501, %508 : vector<12x128xf32>
    %c8_346 = arith.constant 8 : index
    %c0_347 = arith.constant 0 : index
    %c0_348 = arith.constant 0 : index
    %510 = vector.load %arg4[%c8_346, %c0_347, %c0_348] : memref<16x12x128xf32, #tpu.memory_space<vmem>>, vector<1x12x128xf32>
    %511 = vector.shape_cast %510 : vector<1x12x128xf32> to vector<12x128xf32>
    %c8_349 = arith.constant 8 : index
    %c3_350 = arith.constant 3 : index
    %c0_351 = arith.constant 0 : index
    %512 = vector.load %arg3[%c8_349, %c3_350, %c0_351] : memref<16x10x128xf32, #tpu.memory_space<vmem>>, vector<1x1x128xf32>
    %513 = vector.shape_cast %512 : vector<1x1x128xf32> to vector<1x128xf32>
    %514 = vector.broadcast %513 : vector<1x128xf32> to vector<12x128xf32>
    %515 = arith.subf %511, %514 : vector<12x128xf32>
    %516 = arith.mulf %515, %515 : vector<12x128xf32>
    %517 = arith.addf %509, %516 : vector<12x128xf32>
    %c9_352 = arith.constant 9 : index
    %c0_353 = arith.constant 0 : index
    %c0_354 = arith.constant 0 : index
    %518 = vector.load %arg4[%c9_352, %c0_353, %c0_354] : memref<16x12x128xf32, #tpu.memory_space<vmem>>, vector<1x12x128xf32>
    %519 = vector.shape_cast %518 : vector<1x12x128xf32> to vector<12x128xf32>
    %c9_355 = arith.constant 9 : index
    %c3_356 = arith.constant 3 : index
    %c0_357 = arith.constant 0 : index
    %520 = vector.load %arg3[%c9_355, %c3_356, %c0_357] : memref<16x10x128xf32, #tpu.memory_space<vmem>>, vector<1x1x128xf32>
    %521 = vector.shape_cast %520 : vector<1x1x128xf32> to vector<1x128xf32>
    %522 = vector.broadcast %521 : vector<1x128xf32> to vector<12x128xf32>
    %523 = arith.subf %519, %522 : vector<12x128xf32>
    %524 = arith.mulf %523, %523 : vector<12x128xf32>
    %525 = arith.addf %517, %524 : vector<12x128xf32>
    %c10_358 = arith.constant 10 : index
    %c0_359 = arith.constant 0 : index
    %c0_360 = arith.constant 0 : index
    %526 = vector.load %arg4[%c10_358, %c0_359, %c0_360] : memref<16x12x128xf32, #tpu.memory_space<vmem>>, vector<1x12x128xf32>
    %527 = vector.shape_cast %526 : vector<1x12x128xf32> to vector<12x128xf32>
    %c10_361 = arith.constant 10 : index
    %c3_362 = arith.constant 3 : index
    %c0_363 = arith.constant 0 : index
    %528 = vector.load %arg3[%c10_361, %c3_362, %c0_363] : memref<16x10x128xf32, #tpu.memory_space<vmem>>, vector<1x1x128xf32>
    %529 = vector.shape_cast %528 : vector<1x1x128xf32> to vector<1x128xf32>
    %530 = vector.broadcast %529 : vector<1x128xf32> to vector<12x128xf32>
    %531 = arith.subf %527, %530 : vector<12x128xf32>
    %532 = arith.mulf %531, %531 : vector<12x128xf32>
    %533 = arith.addf %525, %532 : vector<12x128xf32>
    %c11_364 = arith.constant 11 : index
    %c0_365 = arith.constant 0 : index
    %c0_366 = arith.constant 0 : index
    %534 = vector.load %arg4[%c11_364, %c0_365, %c0_366] : memref<16x12x128xf32, #tpu.memory_space<vmem>>, vector<1x12x128xf32>
    %535 = vector.shape_cast %534 : vector<1x12x128xf32> to vector<12x128xf32>
    %c11_367 = arith.constant 11 : index
    %c3_368 = arith.constant 3 : index
    %c0_369 = arith.constant 0 : index
    %536 = vector.load %arg3[%c11_367, %c3_368, %c0_369] : memref<16x10x128xf32, #tpu.memory_space<vmem>>, vector<1x1x128xf32>
    %537 = vector.shape_cast %536 : vector<1x1x128xf32> to vector<1x128xf32>
    %538 = vector.broadcast %537 : vector<1x128xf32> to vector<12x128xf32>
    %539 = arith.subf %535, %538 : vector<12x128xf32>
    %540 = arith.mulf %539, %539 : vector<12x128xf32>
    %541 = arith.addf %533, %540 : vector<12x128xf32>
    %c12_370 = arith.constant 12 : index
    %c0_371 = arith.constant 0 : index
    %c0_372 = arith.constant 0 : index
    %542 = vector.load %arg4[%c12_370, %c0_371, %c0_372] : memref<16x12x128xf32, #tpu.memory_space<vmem>>, vector<1x12x128xf32>
    %543 = vector.shape_cast %542 : vector<1x12x128xf32> to vector<12x128xf32>
    %c12_373 = arith.constant 12 : index
    %c3_374 = arith.constant 3 : index
    %c0_375 = arith.constant 0 : index
    %544 = vector.load %arg3[%c12_373, %c3_374, %c0_375] : memref<16x10x128xf32, #tpu.memory_space<vmem>>, vector<1x1x128xf32>
    %545 = vector.shape_cast %544 : vector<1x1x128xf32> to vector<1x128xf32>
    %546 = vector.broadcast %545 : vector<1x128xf32> to vector<12x128xf32>
    %547 = arith.subf %543, %546 : vector<12x128xf32>
    %548 = arith.mulf %547, %547 : vector<12x128xf32>
    %549 = arith.addf %541, %548 : vector<12x128xf32>
    %c13_376 = arith.constant 13 : index
    %c0_377 = arith.constant 0 : index
    %c0_378 = arith.constant 0 : index
    %550 = vector.load %arg4[%c13_376, %c0_377, %c0_378] : memref<16x12x128xf32, #tpu.memory_space<vmem>>, vector<1x12x128xf32>
    %551 = vector.shape_cast %550 : vector<1x12x128xf32> to vector<12x128xf32>
    %c13_379 = arith.constant 13 : index
    %c3_380 = arith.constant 3 : index
    %c0_381 = arith.constant 0 : index
    %552 = vector.load %arg3[%c13_379, %c3_380, %c0_381] : memref<16x10x128xf32, #tpu.memory_space<vmem>>, vector<1x1x128xf32>
    %553 = vector.shape_cast %552 : vector<1x1x128xf32> to vector<1x128xf32>
    %554 = vector.broadcast %553 : vector<1x128xf32> to vector<12x128xf32>
    %555 = arith.subf %551, %554 : vector<12x128xf32>
    %556 = arith.mulf %555, %555 : vector<12x128xf32>
    %557 = arith.addf %549, %556 : vector<12x128xf32>
    %c14_382 = arith.constant 14 : index
    %c0_383 = arith.constant 0 : index
    %c0_384 = arith.constant 0 : index
    %558 = vector.load %arg4[%c14_382, %c0_383, %c0_384] : memref<16x12x128xf32, #tpu.memory_space<vmem>>, vector<1x12x128xf32>
    %559 = vector.shape_cast %558 : vector<1x12x128xf32> to vector<12x128xf32>
    %c14_385 = arith.constant 14 : index
    %c3_386 = arith.constant 3 : index
    %c0_387 = arith.constant 0 : index
    %560 = vector.load %arg3[%c14_385, %c3_386, %c0_387] : memref<16x10x128xf32, #tpu.memory_space<vmem>>, vector<1x1x128xf32>
    %561 = vector.shape_cast %560 : vector<1x1x128xf32> to vector<1x128xf32>
    %562 = vector.broadcast %561 : vector<1x128xf32> to vector<12x128xf32>
    %563 = arith.subf %559, %562 : vector<12x128xf32>
    %564 = arith.mulf %563, %563 : vector<12x128xf32>
    %565 = arith.addf %557, %564 : vector<12x128xf32>
    %c15_388 = arith.constant 15 : index
    %c0_389 = arith.constant 0 : index
    %c0_390 = arith.constant 0 : index
    %566 = vector.load %arg4[%c15_388, %c0_389, %c0_390] : memref<16x12x128xf32, #tpu.memory_space<vmem>>, vector<1x12x128xf32>
    %567 = vector.shape_cast %566 : vector<1x12x128xf32> to vector<12x128xf32>
    %c15_391 = arith.constant 15 : index
    %c3_392 = arith.constant 3 : index
    %c0_393 = arith.constant 0 : index
    %568 = vector.load %arg3[%c15_391, %c3_392, %c0_393] : memref<16x10x128xf32, #tpu.memory_space<vmem>>, vector<1x1x128xf32>
    %569 = vector.shape_cast %568 : vector<1x1x128xf32> to vector<1x128xf32>
    %570 = vector.broadcast %569 : vector<1x128xf32> to vector<12x128xf32>
    %571 = arith.subf %567, %570 : vector<12x128xf32>
    %572 = arith.mulf %571, %571 : vector<12x128xf32>
    %573 = arith.addf %565, %572 : vector<12x128xf32>
    %c3_i32 = arith.constant 3 : i32
    %574 = vector.broadcast %c3_i32 : i32 to vector<1x128xi32>
    %575 = arith.cmpi sle, %0, %574 : vector<1x128xi32>
    %cst_394 = arith.constant 1.000000e+30 : f32
    %cst_395 = arith.constant 0.000000e+00 : f32
    %576 = vector.broadcast %cst_394 : f32 to vector<1x128xf32>
    %577 = vector.broadcast %cst_395 : f32 to vector<1x128xf32>
    %578 = arith.select %575, %576, %577 : vector<1x128xi1>, vector<1x128xf32>
    %579 = arith.addf %573, %7 : vector<12x128xf32>
    %580 = vector.broadcast %578 : vector<1x128xf32> to vector<12x128xf32>
    %581 = arith.addf %579, %580 : vector<12x128xf32>
    %582 = arith.minimumf %437, %581 : vector<12x128xf32>
    %cst_396 = arith.constant dense<0x7F800000> : vector<128xf32>
    %583 = vector.multi_reduction <minimumf>, %581, %cst_396 [0] : vector<12x128xf32> to vector<128xf32>
    %584 = vector.shape_cast %583 : vector<128xf32> to vector<1x128xf32>
    %cst_397 = arith.constant 5.000000e+29 : f32
    %585 = vector.broadcast %cst_397 : f32 to vector<1x128xf32>
    %586 = arith.cmpf oge, %584, %585 : vector<1x128xf32>
    %cst_398 = arith.constant 0.000000e+00 : f32
    %587 = vector.broadcast %cst_398 : f32 to vector<1x128xf32>
    %588 = arith.select %586, %587, %584 : vector<1x128xi1>, vector<1x128xf32>
    %589 = arith.maximumf %444, %588 : vector<1x128xf32>
    %cst_399 = arith.constant 0.000000e+00 : f32
    %590 = vector.broadcast %cst_399 : f32 to vector<12x128xf32>
    %c0_400 = arith.constant 0 : index
    %c0_401 = arith.constant 0 : index
    %c0_402 = arith.constant 0 : index
    %591 = vector.load %arg4[%c0_400, %c0_401, %c0_402] : memref<16x12x128xf32, #tpu.memory_space<vmem>>, vector<1x12x128xf32>
    %592 = vector.shape_cast %591 : vector<1x12x128xf32> to vector<12x128xf32>
    %c0_403 = arith.constant 0 : index
    %c4_404 = arith.constant 4 : index
    %c0_405 = arith.constant 0 : index
    %593 = vector.load %arg3[%c0_403, %c4_404, %c0_405] : memref<16x10x128xf32, #tpu.memory_space<vmem>>, vector<1x1x128xf32>
    %594 = vector.shape_cast %593 : vector<1x1x128xf32> to vector<1x128xf32>
    %595 = vector.broadcast %594 : vector<1x128xf32> to vector<12x128xf32>
    %596 = arith.subf %592, %595 : vector<12x128xf32>
    %597 = arith.mulf %596, %596 : vector<12x128xf32>
    %598 = arith.addf %590, %597 : vector<12x128xf32>
    %c1_406 = arith.constant 1 : index
    %c0_407 = arith.constant 0 : index
    %c0_408 = arith.constant 0 : index
    %599 = vector.load %arg4[%c1_406, %c0_407, %c0_408] : memref<16x12x128xf32, #tpu.memory_space<vmem>>, vector<1x12x128xf32>
    %600 = vector.shape_cast %599 : vector<1x12x128xf32> to vector<12x128xf32>
    %c1_409 = arith.constant 1 : index
    %c4_410 = arith.constant 4 : index
    %c0_411 = arith.constant 0 : index
    %601 = vector.load %arg3[%c1_409, %c4_410, %c0_411] : memref<16x10x128xf32, #tpu.memory_space<vmem>>, vector<1x1x128xf32>
    %602 = vector.shape_cast %601 : vector<1x1x128xf32> to vector<1x128xf32>
    %603 = vector.broadcast %602 : vector<1x128xf32> to vector<12x128xf32>
    %604 = arith.subf %600, %603 : vector<12x128xf32>
    %605 = arith.mulf %604, %604 : vector<12x128xf32>
    %606 = arith.addf %598, %605 : vector<12x128xf32>
    %c2_412 = arith.constant 2 : index
    %c0_413 = arith.constant 0 : index
    %c0_414 = arith.constant 0 : index
    %607 = vector.load %arg4[%c2_412, %c0_413, %c0_414] : memref<16x12x128xf32, #tpu.memory_space<vmem>>, vector<1x12x128xf32>
    %608 = vector.shape_cast %607 : vector<1x12x128xf32> to vector<12x128xf32>
    %c2_415 = arith.constant 2 : index
    %c4_416 = arith.constant 4 : index
    %c0_417 = arith.constant 0 : index
    %609 = vector.load %arg3[%c2_415, %c4_416, %c0_417] : memref<16x10x128xf32, #tpu.memory_space<vmem>>, vector<1x1x128xf32>
    %610 = vector.shape_cast %609 : vector<1x1x128xf32> to vector<1x128xf32>
    %611 = vector.broadcast %610 : vector<1x128xf32> to vector<12x128xf32>
    %612 = arith.subf %608, %611 : vector<12x128xf32>
    %613 = arith.mulf %612, %612 : vector<12x128xf32>
    %614 = arith.addf %606, %613 : vector<12x128xf32>
    %c3_418 = arith.constant 3 : index
    %c0_419 = arith.constant 0 : index
    %c0_420 = arith.constant 0 : index
    %615 = vector.load %arg4[%c3_418, %c0_419, %c0_420] : memref<16x12x128xf32, #tpu.memory_space<vmem>>, vector<1x12x128xf32>
    %616 = vector.shape_cast %615 : vector<1x12x128xf32> to vector<12x128xf32>
    %c3_421 = arith.constant 3 : index
    %c4_422 = arith.constant 4 : index
    %c0_423 = arith.constant 0 : index
    %617 = vector.load %arg3[%c3_421, %c4_422, %c0_423] : memref<16x10x128xf32, #tpu.memory_space<vmem>>, vector<1x1x128xf32>
    %618 = vector.shape_cast %617 : vector<1x1x128xf32> to vector<1x128xf32>
    %619 = vector.broadcast %618 : vector<1x128xf32> to vector<12x128xf32>
    %620 = arith.subf %616, %619 : vector<12x128xf32>
    %621 = arith.mulf %620, %620 : vector<12x128xf32>
    %622 = arith.addf %614, %621 : vector<12x128xf32>
    %c4_424 = arith.constant 4 : index
    %c0_425 = arith.constant 0 : index
    %c0_426 = arith.constant 0 : index
    %623 = vector.load %arg4[%c4_424, %c0_425, %c0_426] : memref<16x12x128xf32, #tpu.memory_space<vmem>>, vector<1x12x128xf32>
    %624 = vector.shape_cast %623 : vector<1x12x128xf32> to vector<12x128xf32>
    %c4_427 = arith.constant 4 : index
    %c4_428 = arith.constant 4 : index
    %c0_429 = arith.constant 0 : index
    %625 = vector.load %arg3[%c4_427, %c4_428, %c0_429] : memref<16x10x128xf32, #tpu.memory_space<vmem>>, vector<1x1x128xf32>
    %626 = vector.shape_cast %625 : vector<1x1x128xf32> to vector<1x128xf32>
    %627 = vector.broadcast %626 : vector<1x128xf32> to vector<12x128xf32>
    %628 = arith.subf %624, %627 : vector<12x128xf32>
    %629 = arith.mulf %628, %628 : vector<12x128xf32>
    %630 = arith.addf %622, %629 : vector<12x128xf32>
    %c5_430 = arith.constant 5 : index
    %c0_431 = arith.constant 0 : index
    %c0_432 = arith.constant 0 : index
    %631 = vector.load %arg4[%c5_430, %c0_431, %c0_432] : memref<16x12x128xf32, #tpu.memory_space<vmem>>, vector<1x12x128xf32>
    %632 = vector.shape_cast %631 : vector<1x12x128xf32> to vector<12x128xf32>
    %c5_433 = arith.constant 5 : index
    %c4_434 = arith.constant 4 : index
    %c0_435 = arith.constant 0 : index
    %633 = vector.load %arg3[%c5_433, %c4_434, %c0_435] : memref<16x10x128xf32, #tpu.memory_space<vmem>>, vector<1x1x128xf32>
    %634 = vector.shape_cast %633 : vector<1x1x128xf32> to vector<1x128xf32>
    %635 = vector.broadcast %634 : vector<1x128xf32> to vector<12x128xf32>
    %636 = arith.subf %632, %635 : vector<12x128xf32>
    %637 = arith.mulf %636, %636 : vector<12x128xf32>
    %638 = arith.addf %630, %637 : vector<12x128xf32>
    %c6_436 = arith.constant 6 : index
    %c0_437 = arith.constant 0 : index
    %c0_438 = arith.constant 0 : index
    %639 = vector.load %arg4[%c6_436, %c0_437, %c0_438] : memref<16x12x128xf32, #tpu.memory_space<vmem>>, vector<1x12x128xf32>
    %640 = vector.shape_cast %639 : vector<1x12x128xf32> to vector<12x128xf32>
    %c6_439 = arith.constant 6 : index
    %c4_440 = arith.constant 4 : index
    %c0_441 = arith.constant 0 : index
    %641 = vector.load %arg3[%c6_439, %c4_440, %c0_441] : memref<16x10x128xf32, #tpu.memory_space<vmem>>, vector<1x1x128xf32>
    %642 = vector.shape_cast %641 : vector<1x1x128xf32> to vector<1x128xf32>
    %643 = vector.broadcast %642 : vector<1x128xf32> to vector<12x128xf32>
    %644 = arith.subf %640, %643 : vector<12x128xf32>
    %645 = arith.mulf %644, %644 : vector<12x128xf32>
    %646 = arith.addf %638, %645 : vector<12x128xf32>
    %c7_442 = arith.constant 7 : index
    %c0_443 = arith.constant 0 : index
    %c0_444 = arith.constant 0 : index
    %647 = vector.load %arg4[%c7_442, %c0_443, %c0_444] : memref<16x12x128xf32, #tpu.memory_space<vmem>>, vector<1x12x128xf32>
    %648 = vector.shape_cast %647 : vector<1x12x128xf32> to vector<12x128xf32>
    %c7_445 = arith.constant 7 : index
    %c4_446 = arith.constant 4 : index
    %c0_447 = arith.constant 0 : index
    %649 = vector.load %arg3[%c7_445, %c4_446, %c0_447] : memref<16x10x128xf32, #tpu.memory_space<vmem>>, vector<1x1x128xf32>
    %650 = vector.shape_cast %649 : vector<1x1x128xf32> to vector<1x128xf32>
    %651 = vector.broadcast %650 : vector<1x128xf32> to vector<12x128xf32>
    %652 = arith.subf %648, %651 : vector<12x128xf32>
    %653 = arith.mulf %652, %652 : vector<12x128xf32>
    %654 = arith.addf %646, %653 : vector<12x128xf32>
    %c8_448 = arith.constant 8 : index
    %c0_449 = arith.constant 0 : index
    %c0_450 = arith.constant 0 : index
    %655 = vector.load %arg4[%c8_448, %c0_449, %c0_450] : memref<16x12x128xf32, #tpu.memory_space<vmem>>, vector<1x12x128xf32>
    %656 = vector.shape_cast %655 : vector<1x12x128xf32> to vector<12x128xf32>
    %c8_451 = arith.constant 8 : index
    %c4_452 = arith.constant 4 : index
    %c0_453 = arith.constant 0 : index
    %657 = vector.load %arg3[%c8_451, %c4_452, %c0_453] : memref<16x10x128xf32, #tpu.memory_space<vmem>>, vector<1x1x128xf32>
    %658 = vector.shape_cast %657 : vector<1x1x128xf32> to vector<1x128xf32>
    %659 = vector.broadcast %658 : vector<1x128xf32> to vector<12x128xf32>
    %660 = arith.subf %656, %659 : vector<12x128xf32>
    %661 = arith.mulf %660, %660 : vector<12x128xf32>
    %662 = arith.addf %654, %661 : vector<12x128xf32>
    %c9_454 = arith.constant 9 : index
    %c0_455 = arith.constant 0 : index
    %c0_456 = arith.constant 0 : index
    %663 = vector.load %arg4[%c9_454, %c0_455, %c0_456] : memref<16x12x128xf32, #tpu.memory_space<vmem>>, vector<1x12x128xf32>
    %664 = vector.shape_cast %663 : vector<1x12x128xf32> to vector<12x128xf32>
    %c9_457 = arith.constant 9 : index
    %c4_458 = arith.constant 4 : index
    %c0_459 = arith.constant 0 : index
    %665 = vector.load %arg3[%c9_457, %c4_458, %c0_459] : memref<16x10x128xf32, #tpu.memory_space<vmem>>, vector<1x1x128xf32>
    %666 = vector.shape_cast %665 : vector<1x1x128xf32> to vector<1x128xf32>
    %667 = vector.broadcast %666 : vector<1x128xf32> to vector<12x128xf32>
    %668 = arith.subf %664, %667 : vector<12x128xf32>
    %669 = arith.mulf %668, %668 : vector<12x128xf32>
    %670 = arith.addf %662, %669 : vector<12x128xf32>
    %c10_460 = arith.constant 10 : index
    %c0_461 = arith.constant 0 : index
    %c0_462 = arith.constant 0 : index
    %671 = vector.load %arg4[%c10_460, %c0_461, %c0_462] : memref<16x12x128xf32, #tpu.memory_space<vmem>>, vector<1x12x128xf32>
    %672 = vector.shape_cast %671 : vector<1x12x128xf32> to vector<12x128xf32>
    %c10_463 = arith.constant 10 : index
    %c4_464 = arith.constant 4 : index
    %c0_465 = arith.constant 0 : index
    %673 = vector.load %arg3[%c10_463, %c4_464, %c0_465] : memref<16x10x128xf32, #tpu.memory_space<vmem>>, vector<1x1x128xf32>
    %674 = vector.shape_cast %673 : vector<1x1x128xf32> to vector<1x128xf32>
    %675 = vector.broadcast %674 : vector<1x128xf32> to vector<12x128xf32>
    %676 = arith.subf %672, %675 : vector<12x128xf32>
    %677 = arith.mulf %676, %676 : vector<12x128xf32>
    %678 = arith.addf %670, %677 : vector<12x128xf32>
    %c11_466 = arith.constant 11 : index
    %c0_467 = arith.constant 0 : index
    %c0_468 = arith.constant 0 : index
    %679 = vector.load %arg4[%c11_466, %c0_467, %c0_468] : memref<16x12x128xf32, #tpu.memory_space<vmem>>, vector<1x12x128xf32>
    %680 = vector.shape_cast %679 : vector<1x12x128xf32> to vector<12x128xf32>
    %c11_469 = arith.constant 11 : index
    %c4_470 = arith.constant 4 : index
    %c0_471 = arith.constant 0 : index
    %681 = vector.load %arg3[%c11_469, %c4_470, %c0_471] : memref<16x10x128xf32, #tpu.memory_space<vmem>>, vector<1x1x128xf32>
    %682 = vector.shape_cast %681 : vector<1x1x128xf32> to vector<1x128xf32>
    %683 = vector.broadcast %682 : vector<1x128xf32> to vector<12x128xf32>
    %684 = arith.subf %680, %683 : vector<12x128xf32>
    %685 = arith.mulf %684, %684 : vector<12x128xf32>
    %686 = arith.addf %678, %685 : vector<12x128xf32>
    %c12_472 = arith.constant 12 : index
    %c0_473 = arith.constant 0 : index
    %c0_474 = arith.constant 0 : index
    %687 = vector.load %arg4[%c12_472, %c0_473, %c0_474] : memref<16x12x128xf32, #tpu.memory_space<vmem>>, vector<1x12x128xf32>
    %688 = vector.shape_cast %687 : vector<1x12x128xf32> to vector<12x128xf32>
    %c12_475 = arith.constant 12 : index
    %c4_476 = arith.constant 4 : index
    %c0_477 = arith.constant 0 : index
    %689 = vector.load %arg3[%c12_475, %c4_476, %c0_477] : memref<16x10x128xf32, #tpu.memory_space<vmem>>, vector<1x1x128xf32>
    %690 = vector.shape_cast %689 : vector<1x1x128xf32> to vector<1x128xf32>
    %691 = vector.broadcast %690 : vector<1x128xf32> to vector<12x128xf32>
    %692 = arith.subf %688, %691 : vector<12x128xf32>
    %693 = arith.mulf %692, %692 : vector<12x128xf32>
    %694 = arith.addf %686, %693 : vector<12x128xf32>
    %c13_478 = arith.constant 13 : index
    %c0_479 = arith.constant 0 : index
    %c0_480 = arith.constant 0 : index
    %695 = vector.load %arg4[%c13_478, %c0_479, %c0_480] : memref<16x12x128xf32, #tpu.memory_space<vmem>>, vector<1x12x128xf32>
    %696 = vector.shape_cast %695 : vector<1x12x128xf32> to vector<12x128xf32>
    %c13_481 = arith.constant 13 : index
    %c4_482 = arith.constant 4 : index
    %c0_483 = arith.constant 0 : index
    %697 = vector.load %arg3[%c13_481, %c4_482, %c0_483] : memref<16x10x128xf32, #tpu.memory_space<vmem>>, vector<1x1x128xf32>
    %698 = vector.shape_cast %697 : vector<1x1x128xf32> to vector<1x128xf32>
    %699 = vector.broadcast %698 : vector<1x128xf32> to vector<12x128xf32>
    %700 = arith.subf %696, %699 : vector<12x128xf32>
    %701 = arith.mulf %700, %700 : vector<12x128xf32>
    %702 = arith.addf %694, %701 : vector<12x128xf32>
    %c14_484 = arith.constant 14 : index
    %c0_485 = arith.constant 0 : index
    %c0_486 = arith.constant 0 : index
    %703 = vector.load %arg4[%c14_484, %c0_485, %c0_486] : memref<16x12x128xf32, #tpu.memory_space<vmem>>, vector<1x12x128xf32>
    %704 = vector.shape_cast %703 : vector<1x12x128xf32> to vector<12x128xf32>
    %c14_487 = arith.constant 14 : index
    %c4_488 = arith.constant 4 : index
    %c0_489 = arith.constant 0 : index
    %705 = vector.load %arg3[%c14_487, %c4_488, %c0_489] : memref<16x10x128xf32, #tpu.memory_space<vmem>>, vector<1x1x128xf32>
    %706 = vector.shape_cast %705 : vector<1x1x128xf32> to vector<1x128xf32>
    %707 = vector.broadcast %706 : vector<1x128xf32> to vector<12x128xf32>
    %708 = arith.subf %704, %707 : vector<12x128xf32>
    %709 = arith.mulf %708, %708 : vector<12x128xf32>
    %710 = arith.addf %702, %709 : vector<12x128xf32>
    %c15_490 = arith.constant 15 : index
    %c0_491 = arith.constant 0 : index
    %c0_492 = arith.constant 0 : index
    %711 = vector.load %arg4[%c15_490, %c0_491, %c0_492] : memref<16x12x128xf32, #tpu.memory_space<vmem>>, vector<1x12x128xf32>
    %712 = vector.shape_cast %711 : vector<1x12x128xf32> to vector<12x128xf32>
    %c15_493 = arith.constant 15 : index
    %c4_494 = arith.constant 4 : index
    %c0_495 = arith.constant 0 : index
    %713 = vector.load %arg3[%c15_493, %c4_494, %c0_495] : memref<16x10x128xf32, #tpu.memory_space<vmem>>, vector<1x1x128xf32>
    %714 = vector.shape_cast %713 : vector<1x1x128xf32> to vector<1x128xf32>
    %715 = vector.broadcast %714 : vector<1x128xf32> to vector<12x128xf32>
    %716 = arith.subf %712, %715 : vector<12x128xf32>
    %717 = arith.mulf %716, %716 : vector<12x128xf32>
    %718 = arith.addf %710, %717 : vector<12x128xf32>
    %c4_i32 = arith.constant 4 : i32
    %719 = vector.broadcast %c4_i32 : i32 to vector<1x128xi32>
    %720 = arith.cmpi sle, %0, %719 : vector<1x128xi32>
    %cst_496 = arith.constant 1.000000e+30 : f32
    %cst_497 = arith.constant 0.000000e+00 : f32
    %721 = vector.broadcast %cst_496 : f32 to vector<1x128xf32>
    %722 = vector.broadcast %cst_497 : f32 to vector<1x128xf32>
    %723 = arith.select %720, %721, %722 : vector<1x128xi1>, vector<1x128xf32>
    %724 = arith.addf %718, %7 : vector<12x128xf32>
    %725 = vector.broadcast %723 : vector<1x128xf32> to vector<12x128xf32>
    %726 = arith.addf %724, %725 : vector<12x128xf32>
    %727 = arith.minimumf %582, %726 : vector<12x128xf32>
    %cst_498 = arith.constant dense<0x7F800000> : vector<128xf32>
    %728 = vector.multi_reduction <minimumf>, %726, %cst_498 [0] : vector<12x128xf32> to vector<128xf32>
    %729 = vector.shape_cast %728 : vector<128xf32> to vector<1x128xf32>
    %cst_499 = arith.constant 5.000000e+29 : f32
    %730 = vector.broadcast %cst_499 : f32 to vector<1x128xf32>
    %731 = arith.cmpf oge, %729, %730 : vector<1x128xf32>
    %cst_500 = arith.constant 0.000000e+00 : f32
    %732 = vector.broadcast %cst_500 : f32 to vector<1x128xf32>
    %733 = arith.select %731, %732, %729 : vector<1x128xi1>, vector<1x128xf32>
    %734 = arith.maximumf %589, %733 : vector<1x128xf32>
    %cst_501 = arith.constant 0.000000e+00 : f32
    %735 = vector.broadcast %cst_501 : f32 to vector<12x128xf32>
    %c0_502 = arith.constant 0 : index
    %c0_503 = arith.constant 0 : index
    %c0_504 = arith.constant 0 : index
    %736 = vector.load %arg4[%c0_502, %c0_503, %c0_504] : memref<16x12x128xf32, #tpu.memory_space<vmem>>, vector<1x12x128xf32>
    %737 = vector.shape_cast %736 : vector<1x12x128xf32> to vector<12x128xf32>
    %c0_505 = arith.constant 0 : index
    %c5_506 = arith.constant 5 : index
    %c0_507 = arith.constant 0 : index
    %738 = vector.load %arg3[%c0_505, %c5_506, %c0_507] : memref<16x10x128xf32, #tpu.memory_space<vmem>>, vector<1x1x128xf32>
    %739 = vector.shape_cast %738 : vector<1x1x128xf32> to vector<1x128xf32>
    %740 = vector.broadcast %739 : vector<1x128xf32> to vector<12x128xf32>
    %741 = arith.subf %737, %740 : vector<12x128xf32>
    %742 = arith.mulf %741, %741 : vector<12x128xf32>
    %743 = arith.addf %735, %742 : vector<12x128xf32>
    %c1_508 = arith.constant 1 : index
    %c0_509 = arith.constant 0 : index
    %c0_510 = arith.constant 0 : index
    %744 = vector.load %arg4[%c1_508, %c0_509, %c0_510] : memref<16x12x128xf32, #tpu.memory_space<vmem>>, vector<1x12x128xf32>
    %745 = vector.shape_cast %744 : vector<1x12x128xf32> to vector<12x128xf32>
    %c1_511 = arith.constant 1 : index
    %c5_512 = arith.constant 5 : index
    %c0_513 = arith.constant 0 : index
    %746 = vector.load %arg3[%c1_511, %c5_512, %c0_513] : memref<16x10x128xf32, #tpu.memory_space<vmem>>, vector<1x1x128xf32>
    %747 = vector.shape_cast %746 : vector<1x1x128xf32> to vector<1x128xf32>
    %748 = vector.broadcast %747 : vector<1x128xf32> to vector<12x128xf32>
    %749 = arith.subf %745, %748 : vector<12x128xf32>
    %750 = arith.mulf %749, %749 : vector<12x128xf32>
    %751 = arith.addf %743, %750 : vector<12x128xf32>
    %c2_514 = arith.constant 2 : index
    %c0_515 = arith.constant 0 : index
    %c0_516 = arith.constant 0 : index
    %752 = vector.load %arg4[%c2_514, %c0_515, %c0_516] : memref<16x12x128xf32, #tpu.memory_space<vmem>>, vector<1x12x128xf32>
    %753 = vector.shape_cast %752 : vector<1x12x128xf32> to vector<12x128xf32>
    %c2_517 = arith.constant 2 : index
    %c5_518 = arith.constant 5 : index
    %c0_519 = arith.constant 0 : index
    %754 = vector.load %arg3[%c2_517, %c5_518, %c0_519] : memref<16x10x128xf32, #tpu.memory_space<vmem>>, vector<1x1x128xf32>
    %755 = vector.shape_cast %754 : vector<1x1x128xf32> to vector<1x128xf32>
    %756 = vector.broadcast %755 : vector<1x128xf32> to vector<12x128xf32>
    %757 = arith.subf %753, %756 : vector<12x128xf32>
    %758 = arith.mulf %757, %757 : vector<12x128xf32>
    %759 = arith.addf %751, %758 : vector<12x128xf32>
    %c3_520 = arith.constant 3 : index
    %c0_521 = arith.constant 0 : index
    %c0_522 = arith.constant 0 : index
    %760 = vector.load %arg4[%c3_520, %c0_521, %c0_522] : memref<16x12x128xf32, #tpu.memory_space<vmem>>, vector<1x12x128xf32>
    %761 = vector.shape_cast %760 : vector<1x12x128xf32> to vector<12x128xf32>
    %c3_523 = arith.constant 3 : index
    %c5_524 = arith.constant 5 : index
    %c0_525 = arith.constant 0 : index
    %762 = vector.load %arg3[%c3_523, %c5_524, %c0_525] : memref<16x10x128xf32, #tpu.memory_space<vmem>>, vector<1x1x128xf32>
    %763 = vector.shape_cast %762 : vector<1x1x128xf32> to vector<1x128xf32>
    %764 = vector.broadcast %763 : vector<1x128xf32> to vector<12x128xf32>
    %765 = arith.subf %761, %764 : vector<12x128xf32>
    %766 = arith.mulf %765, %765 : vector<12x128xf32>
    %767 = arith.addf %759, %766 : vector<12x128xf32>
    %c4_526 = arith.constant 4 : index
    %c0_527 = arith.constant 0 : index
    %c0_528 = arith.constant 0 : index
    %768 = vector.load %arg4[%c4_526, %c0_527, %c0_528] : memref<16x12x128xf32, #tpu.memory_space<vmem>>, vector<1x12x128xf32>
    %769 = vector.shape_cast %768 : vector<1x12x128xf32> to vector<12x128xf32>
    %c4_529 = arith.constant 4 : index
    %c5_530 = arith.constant 5 : index
    %c0_531 = arith.constant 0 : index
    %770 = vector.load %arg3[%c4_529, %c5_530, %c0_531] : memref<16x10x128xf32, #tpu.memory_space<vmem>>, vector<1x1x128xf32>
    %771 = vector.shape_cast %770 : vector<1x1x128xf32> to vector<1x128xf32>
    %772 = vector.broadcast %771 : vector<1x128xf32> to vector<12x128xf32>
    %773 = arith.subf %769, %772 : vector<12x128xf32>
    %774 = arith.mulf %773, %773 : vector<12x128xf32>
    %775 = arith.addf %767, %774 : vector<12x128xf32>
    %c5_532 = arith.constant 5 : index
    %c0_533 = arith.constant 0 : index
    %c0_534 = arith.constant 0 : index
    %776 = vector.load %arg4[%c5_532, %c0_533, %c0_534] : memref<16x12x128xf32, #tpu.memory_space<vmem>>, vector<1x12x128xf32>
    %777 = vector.shape_cast %776 : vector<1x12x128xf32> to vector<12x128xf32>
    %c5_535 = arith.constant 5 : index
    %c5_536 = arith.constant 5 : index
    %c0_537 = arith.constant 0 : index
    %778 = vector.load %arg3[%c5_535, %c5_536, %c0_537] : memref<16x10x128xf32, #tpu.memory_space<vmem>>, vector<1x1x128xf32>
    %779 = vector.shape_cast %778 : vector<1x1x128xf32> to vector<1x128xf32>
    %780 = vector.broadcast %779 : vector<1x128xf32> to vector<12x128xf32>
    %781 = arith.subf %777, %780 : vector<12x128xf32>
    %782 = arith.mulf %781, %781 : vector<12x128xf32>
    %783 = arith.addf %775, %782 : vector<12x128xf32>
    %c6_538 = arith.constant 6 : index
    %c0_539 = arith.constant 0 : index
    %c0_540 = arith.constant 0 : index
    %784 = vector.load %arg4[%c6_538, %c0_539, %c0_540] : memref<16x12x128xf32, #tpu.memory_space<vmem>>, vector<1x12x128xf32>
    %785 = vector.shape_cast %784 : vector<1x12x128xf32> to vector<12x128xf32>
    %c6_541 = arith.constant 6 : index
    %c5_542 = arith.constant 5 : index
    %c0_543 = arith.constant 0 : index
    %786 = vector.load %arg3[%c6_541, %c5_542, %c0_543] : memref<16x10x128xf32, #tpu.memory_space<vmem>>, vector<1x1x128xf32>
    %787 = vector.shape_cast %786 : vector<1x1x128xf32> to vector<1x128xf32>
    %788 = vector.broadcast %787 : vector<1x128xf32> to vector<12x128xf32>
    %789 = arith.subf %785, %788 : vector<12x128xf32>
    %790 = arith.mulf %789, %789 : vector<12x128xf32>
    %791 = arith.addf %783, %790 : vector<12x128xf32>
    %c7_544 = arith.constant 7 : index
    %c0_545 = arith.constant 0 : index
    %c0_546 = arith.constant 0 : index
    %792 = vector.load %arg4[%c7_544, %c0_545, %c0_546] : memref<16x12x128xf32, #tpu.memory_space<vmem>>, vector<1x12x128xf32>
    %793 = vector.shape_cast %792 : vector<1x12x128xf32> to vector<12x128xf32>
    %c7_547 = arith.constant 7 : index
    %c5_548 = arith.constant 5 : index
    %c0_549 = arith.constant 0 : index
    %794 = vector.load %arg3[%c7_547, %c5_548, %c0_549] : memref<16x10x128xf32, #tpu.memory_space<vmem>>, vector<1x1x128xf32>
    %795 = vector.shape_cast %794 : vector<1x1x128xf32> to vector<1x128xf32>
    %796 = vector.broadcast %795 : vector<1x128xf32> to vector<12x128xf32>
    %797 = arith.subf %793, %796 : vector<12x128xf32>
    %798 = arith.mulf %797, %797 : vector<12x128xf32>
    %799 = arith.addf %791, %798 : vector<12x128xf32>
    %c8_550 = arith.constant 8 : index
    %c0_551 = arith.constant 0 : index
    %c0_552 = arith.constant 0 : index
    %800 = vector.load %arg4[%c8_550, %c0_551, %c0_552] : memref<16x12x128xf32, #tpu.memory_space<vmem>>, vector<1x12x128xf32>
    %801 = vector.shape_cast %800 : vector<1x12x128xf32> to vector<12x128xf32>
    %c8_553 = arith.constant 8 : index
    %c5_554 = arith.constant 5 : index
    %c0_555 = arith.constant 0 : index
    %802 = vector.load %arg3[%c8_553, %c5_554, %c0_555] : memref<16x10x128xf32, #tpu.memory_space<vmem>>, vector<1x1x128xf32>
    %803 = vector.shape_cast %802 : vector<1x1x128xf32> to vector<1x128xf32>
    %804 = vector.broadcast %803 : vector<1x128xf32> to vector<12x128xf32>
    %805 = arith.subf %801, %804 : vector<12x128xf32>
    %806 = arith.mulf %805, %805 : vector<12x128xf32>
    %807 = arith.addf %799, %806 : vector<12x128xf32>
    %c9_556 = arith.constant 9 : index
    %c0_557 = arith.constant 0 : index
    %c0_558 = arith.constant 0 : index
    %808 = vector.load %arg4[%c9_556, %c0_557, %c0_558] : memref<16x12x128xf32, #tpu.memory_space<vmem>>, vector<1x12x128xf32>
    %809 = vector.shape_cast %808 : vector<1x12x128xf32> to vector<12x128xf32>
    %c9_559 = arith.constant 9 : index
    %c5_560 = arith.constant 5 : index
    %c0_561 = arith.constant 0 : index
    %810 = vector.load %arg3[%c9_559, %c5_560, %c0_561] : memref<16x10x128xf32, #tpu.memory_space<vmem>>, vector<1x1x128xf32>
    %811 = vector.shape_cast %810 : vector<1x1x128xf32> to vector<1x128xf32>
    %812 = vector.broadcast %811 : vector<1x128xf32> to vector<12x128xf32>
    %813 = arith.subf %809, %812 : vector<12x128xf32>
    %814 = arith.mulf %813, %813 : vector<12x128xf32>
    %815 = arith.addf %807, %814 : vector<12x128xf32>
    %c10_562 = arith.constant 10 : index
    %c0_563 = arith.constant 0 : index
    %c0_564 = arith.constant 0 : index
    %816 = vector.load %arg4[%c10_562, %c0_563, %c0_564] : memref<16x12x128xf32, #tpu.memory_space<vmem>>, vector<1x12x128xf32>
    %817 = vector.shape_cast %816 : vector<1x12x128xf32> to vector<12x128xf32>
    %c10_565 = arith.constant 10 : index
    %c5_566 = arith.constant 5 : index
    %c0_567 = arith.constant 0 : index
    %818 = vector.load %arg3[%c10_565, %c5_566, %c0_567] : memref<16x10x128xf32, #tpu.memory_space<vmem>>, vector<1x1x128xf32>
    %819 = vector.shape_cast %818 : vector<1x1x128xf32> to vector<1x128xf32>
    %820 = vector.broadcast %819 : vector<1x128xf32> to vector<12x128xf32>
    %821 = arith.subf %817, %820 : vector<12x128xf32>
    %822 = arith.mulf %821, %821 : vector<12x128xf32>
    %823 = arith.addf %815, %822 : vector<12x128xf32>
    %c11_568 = arith.constant 11 : index
    %c0_569 = arith.constant 0 : index
    %c0_570 = arith.constant 0 : index
    %824 = vector.load %arg4[%c11_568, %c0_569, %c0_570] : memref<16x12x128xf32, #tpu.memory_space<vmem>>, vector<1x12x128xf32>
    %825 = vector.shape_cast %824 : vector<1x12x128xf32> to vector<12x128xf32>
    %c11_571 = arith.constant 11 : index
    %c5_572 = arith.constant 5 : index
    %c0_573 = arith.constant 0 : index
    %826 = vector.load %arg3[%c11_571, %c5_572, %c0_573] : memref<16x10x128xf32, #tpu.memory_space<vmem>>, vector<1x1x128xf32>
    %827 = vector.shape_cast %826 : vector<1x1x128xf32> to vector<1x128xf32>
    %828 = vector.broadcast %827 : vector<1x128xf32> to vector<12x128xf32>
    %829 = arith.subf %825, %828 : vector<12x128xf32>
    %830 = arith.mulf %829, %829 : vector<12x128xf32>
    %831 = arith.addf %823, %830 : vector<12x128xf32>
    %c12_574 = arith.constant 12 : index
    %c0_575 = arith.constant 0 : index
    %c0_576 = arith.constant 0 : index
    %832 = vector.load %arg4[%c12_574, %c0_575, %c0_576] : memref<16x12x128xf32, #tpu.memory_space<vmem>>, vector<1x12x128xf32>
    %833 = vector.shape_cast %832 : vector<1x12x128xf32> to vector<12x128xf32>
    %c12_577 = arith.constant 12 : index
    %c5_578 = arith.constant 5 : index
    %c0_579 = arith.constant 0 : index
    %834 = vector.load %arg3[%c12_577, %c5_578, %c0_579] : memref<16x10x128xf32, #tpu.memory_space<vmem>>, vector<1x1x128xf32>
    %835 = vector.shape_cast %834 : vector<1x1x128xf32> to vector<1x128xf32>
    %836 = vector.broadcast %835 : vector<1x128xf32> to vector<12x128xf32>
    %837 = arith.subf %833, %836 : vector<12x128xf32>
    %838 = arith.mulf %837, %837 : vector<12x128xf32>
    %839 = arith.addf %831, %838 : vector<12x128xf32>
    %c13_580 = arith.constant 13 : index
    %c0_581 = arith.constant 0 : index
    %c0_582 = arith.constant 0 : index
    %840 = vector.load %arg4[%c13_580, %c0_581, %c0_582] : memref<16x12x128xf32, #tpu.memory_space<vmem>>, vector<1x12x128xf32>
    %841 = vector.shape_cast %840 : vector<1x12x128xf32> to vector<12x128xf32>
    %c13_583 = arith.constant 13 : index
    %c5_584 = arith.constant 5 : index
    %c0_585 = arith.constant 0 : index
    %842 = vector.load %arg3[%c13_583, %c5_584, %c0_585] : memref<16x10x128xf32, #tpu.memory_space<vmem>>, vector<1x1x128xf32>
    %843 = vector.shape_cast %842 : vector<1x1x128xf32> to vector<1x128xf32>
    %844 = vector.broadcast %843 : vector<1x128xf32> to vector<12x128xf32>
    %845 = arith.subf %841, %844 : vector<12x128xf32>
    %846 = arith.mulf %845, %845 : vector<12x128xf32>
    %847 = arith.addf %839, %846 : vector<12x128xf32>
    %c14_586 = arith.constant 14 : index
    %c0_587 = arith.constant 0 : index
    %c0_588 = arith.constant 0 : index
    %848 = vector.load %arg4[%c14_586, %c0_587, %c0_588] : memref<16x12x128xf32, #tpu.memory_space<vmem>>, vector<1x12x128xf32>
    %849 = vector.shape_cast %848 : vector<1x12x128xf32> to vector<12x128xf32>
    %c14_589 = arith.constant 14 : index
    %c5_590 = arith.constant 5 : index
    %c0_591 = arith.constant 0 : index
    %850 = vector.load %arg3[%c14_589, %c5_590, %c0_591] : memref<16x10x128xf32, #tpu.memory_space<vmem>>, vector<1x1x128xf32>
    %851 = vector.shape_cast %850 : vector<1x1x128xf32> to vector<1x128xf32>
    %852 = vector.broadcast %851 : vector<1x128xf32> to vector<12x128xf32>
    %853 = arith.subf %849, %852 : vector<12x128xf32>
    %854 = arith.mulf %853, %853 : vector<12x128xf32>
    %855 = arith.addf %847, %854 : vector<12x128xf32>
    %c15_592 = arith.constant 15 : index
    %c0_593 = arith.constant 0 : index
    %c0_594 = arith.constant 0 : index
    %856 = vector.load %arg4[%c15_592, %c0_593, %c0_594] : memref<16x12x128xf32, #tpu.memory_space<vmem>>, vector<1x12x128xf32>
    %857 = vector.shape_cast %856 : vector<1x12x128xf32> to vector<12x128xf32>
    %c15_595 = arith.constant 15 : index
    %c5_596 = arith.constant 5 : index
    %c0_597 = arith.constant 0 : index
    %858 = vector.load %arg3[%c15_595, %c5_596, %c0_597] : memref<16x10x128xf32, #tpu.memory_space<vmem>>, vector<1x1x128xf32>
    %859 = vector.shape_cast %858 : vector<1x1x128xf32> to vector<1x128xf32>
    %860 = vector.broadcast %859 : vector<1x128xf32> to vector<12x128xf32>
    %861 = arith.subf %857, %860 : vector<12x128xf32>
    %862 = arith.mulf %861, %861 : vector<12x128xf32>
    %863 = arith.addf %855, %862 : vector<12x128xf32>
    %c5_i32 = arith.constant 5 : i32
    %864 = vector.broadcast %c5_i32 : i32 to vector<1x128xi32>
    %865 = arith.cmpi sle, %0, %864 : vector<1x128xi32>
    %cst_598 = arith.constant 1.000000e+30 : f32
    %cst_599 = arith.constant 0.000000e+00 : f32
    %866 = vector.broadcast %cst_598 : f32 to vector<1x128xf32>
    %867 = vector.broadcast %cst_599 : f32 to vector<1x128xf32>
    %868 = arith.select %865, %866, %867 : vector<1x128xi1>, vector<1x128xf32>
    %869 = arith.addf %863, %7 : vector<12x128xf32>
    %870 = vector.broadcast %868 : vector<1x128xf32> to vector<12x128xf32>
    %871 = arith.addf %869, %870 : vector<12x128xf32>
    %872 = arith.minimumf %727, %871 : vector<12x128xf32>
    %cst_600 = arith.constant dense<0x7F800000> : vector<128xf32>
    %873 = vector.multi_reduction <minimumf>, %871, %cst_600 [0] : vector<12x128xf32> to vector<128xf32>
    %874 = vector.shape_cast %873 : vector<128xf32> to vector<1x128xf32>
    %cst_601 = arith.constant 5.000000e+29 : f32
    %875 = vector.broadcast %cst_601 : f32 to vector<1x128xf32>
    %876 = arith.cmpf oge, %874, %875 : vector<1x128xf32>
    %cst_602 = arith.constant 0.000000e+00 : f32
    %877 = vector.broadcast %cst_602 : f32 to vector<1x128xf32>
    %878 = arith.select %876, %877, %874 : vector<1x128xi1>, vector<1x128xf32>
    %879 = arith.maximumf %734, %878 : vector<1x128xf32>
    %cst_603 = arith.constant 0.000000e+00 : f32
    %880 = vector.broadcast %cst_603 : f32 to vector<12x128xf32>
    %c0_604 = arith.constant 0 : index
    %c0_605 = arith.constant 0 : index
    %c0_606 = arith.constant 0 : index
    %881 = vector.load %arg4[%c0_604, %c0_605, %c0_606] : memref<16x12x128xf32, #tpu.memory_space<vmem>>, vector<1x12x128xf32>
    %882 = vector.shape_cast %881 : vector<1x12x128xf32> to vector<12x128xf32>
    %c0_607 = arith.constant 0 : index
    %c6_608 = arith.constant 6 : index
    %c0_609 = arith.constant 0 : index
    %883 = vector.load %arg3[%c0_607, %c6_608, %c0_609] : memref<16x10x128xf32, #tpu.memory_space<vmem>>, vector<1x1x128xf32>
    %884 = vector.shape_cast %883 : vector<1x1x128xf32> to vector<1x128xf32>
    %885 = vector.broadcast %884 : vector<1x128xf32> to vector<12x128xf32>
    %886 = arith.subf %882, %885 : vector<12x128xf32>
    %887 = arith.mulf %886, %886 : vector<12x128xf32>
    %888 = arith.addf %880, %887 : vector<12x128xf32>
    %c1_610 = arith.constant 1 : index
    %c0_611 = arith.constant 0 : index
    %c0_612 = arith.constant 0 : index
    %889 = vector.load %arg4[%c1_610, %c0_611, %c0_612] : memref<16x12x128xf32, #tpu.memory_space<vmem>>, vector<1x12x128xf32>
    %890 = vector.shape_cast %889 : vector<1x12x128xf32> to vector<12x128xf32>
    %c1_613 = arith.constant 1 : index
    %c6_614 = arith.constant 6 : index
    %c0_615 = arith.constant 0 : index
    %891 = vector.load %arg3[%c1_613, %c6_614, %c0_615] : memref<16x10x128xf32, #tpu.memory_space<vmem>>, vector<1x1x128xf32>
    %892 = vector.shape_cast %891 : vector<1x1x128xf32> to vector<1x128xf32>
    %893 = vector.broadcast %892 : vector<1x128xf32> to vector<12x128xf32>
    %894 = arith.subf %890, %893 : vector<12x128xf32>
    %895 = arith.mulf %894, %894 : vector<12x128xf32>
    %896 = arith.addf %888, %895 : vector<12x128xf32>
    %c2_616 = arith.constant 2 : index
    %c0_617 = arith.constant 0 : index
    %c0_618 = arith.constant 0 : index
    %897 = vector.load %arg4[%c2_616, %c0_617, %c0_618] : memref<16x12x128xf32, #tpu.memory_space<vmem>>, vector<1x12x128xf32>
    %898 = vector.shape_cast %897 : vector<1x12x128xf32> to vector<12x128xf32>
    %c2_619 = arith.constant 2 : index
    %c6_620 = arith.constant 6 : index
    %c0_621 = arith.constant 0 : index
    %899 = vector.load %arg3[%c2_619, %c6_620, %c0_621] : memref<16x10x128xf32, #tpu.memory_space<vmem>>, vector<1x1x128xf32>
    %900 = vector.shape_cast %899 : vector<1x1x128xf32> to vector<1x128xf32>
    %901 = vector.broadcast %900 : vector<1x128xf32> to vector<12x128xf32>
    %902 = arith.subf %898, %901 : vector<12x128xf32>
    %903 = arith.mulf %902, %902 : vector<12x128xf32>
    %904 = arith.addf %896, %903 : vector<12x128xf32>
    %c3_622 = arith.constant 3 : index
    %c0_623 = arith.constant 0 : index
    %c0_624 = arith.constant 0 : index
    %905 = vector.load %arg4[%c3_622, %c0_623, %c0_624] : memref<16x12x128xf32, #tpu.memory_space<vmem>>, vector<1x12x128xf32>
    %906 = vector.shape_cast %905 : vector<1x12x128xf32> to vector<12x128xf32>
    %c3_625 = arith.constant 3 : index
    %c6_626 = arith.constant 6 : index
    %c0_627 = arith.constant 0 : index
    %907 = vector.load %arg3[%c3_625, %c6_626, %c0_627] : memref<16x10x128xf32, #tpu.memory_space<vmem>>, vector<1x1x128xf32>
    %908 = vector.shape_cast %907 : vector<1x1x128xf32> to vector<1x128xf32>
    %909 = vector.broadcast %908 : vector<1x128xf32> to vector<12x128xf32>
    %910 = arith.subf %906, %909 : vector<12x128xf32>
    %911 = arith.mulf %910, %910 : vector<12x128xf32>
    %912 = arith.addf %904, %911 : vector<12x128xf32>
    %c4_628 = arith.constant 4 : index
    %c0_629 = arith.constant 0 : index
    %c0_630 = arith.constant 0 : index
    %913 = vector.load %arg4[%c4_628, %c0_629, %c0_630] : memref<16x12x128xf32, #tpu.memory_space<vmem>>, vector<1x12x128xf32>
    %914 = vector.shape_cast %913 : vector<1x12x128xf32> to vector<12x128xf32>
    %c4_631 = arith.constant 4 : index
    %c6_632 = arith.constant 6 : index
    %c0_633 = arith.constant 0 : index
    %915 = vector.load %arg3[%c4_631, %c6_632, %c0_633] : memref<16x10x128xf32, #tpu.memory_space<vmem>>, vector<1x1x128xf32>
    %916 = vector.shape_cast %915 : vector<1x1x128xf32> to vector<1x128xf32>
    %917 = vector.broadcast %916 : vector<1x128xf32> to vector<12x128xf32>
    %918 = arith.subf %914, %917 : vector<12x128xf32>
    %919 = arith.mulf %918, %918 : vector<12x128xf32>
    %920 = arith.addf %912, %919 : vector<12x128xf32>
    %c5_634 = arith.constant 5 : index
    %c0_635 = arith.constant 0 : index
    %c0_636 = arith.constant 0 : index
    %921 = vector.load %arg4[%c5_634, %c0_635, %c0_636] : memref<16x12x128xf32, #tpu.memory_space<vmem>>, vector<1x12x128xf32>
    %922 = vector.shape_cast %921 : vector<1x12x128xf32> to vector<12x128xf32>
    %c5_637 = arith.constant 5 : index
    %c6_638 = arith.constant 6 : index
    %c0_639 = arith.constant 0 : index
    %923 = vector.load %arg3[%c5_637, %c6_638, %c0_639] : memref<16x10x128xf32, #tpu.memory_space<vmem>>, vector<1x1x128xf32>
    %924 = vector.shape_cast %923 : vector<1x1x128xf32> to vector<1x128xf32>
    %925 = vector.broadcast %924 : vector<1x128xf32> to vector<12x128xf32>
    %926 = arith.subf %922, %925 : vector<12x128xf32>
    %927 = arith.mulf %926, %926 : vector<12x128xf32>
    %928 = arith.addf %920, %927 : vector<12x128xf32>
    %c6_640 = arith.constant 6 : index
    %c0_641 = arith.constant 0 : index
    %c0_642 = arith.constant 0 : index
    %929 = vector.load %arg4[%c6_640, %c0_641, %c0_642] : memref<16x12x128xf32, #tpu.memory_space<vmem>>, vector<1x12x128xf32>
    %930 = vector.shape_cast %929 : vector<1x12x128xf32> to vector<12x128xf32>
    %c6_643 = arith.constant 6 : index
    %c6_644 = arith.constant 6 : index
    %c0_645 = arith.constant 0 : index
    %931 = vector.load %arg3[%c6_643, %c6_644, %c0_645] : memref<16x10x128xf32, #tpu.memory_space<vmem>>, vector<1x1x128xf32>
    %932 = vector.shape_cast %931 : vector<1x1x128xf32> to vector<1x128xf32>
    %933 = vector.broadcast %932 : vector<1x128xf32> to vector<12x128xf32>
    %934 = arith.subf %930, %933 : vector<12x128xf32>
    %935 = arith.mulf %934, %934 : vector<12x128xf32>
    %936 = arith.addf %928, %935 : vector<12x128xf32>
    %c7_646 = arith.constant 7 : index
    %c0_647 = arith.constant 0 : index
    %c0_648 = arith.constant 0 : index
    %937 = vector.load %arg4[%c7_646, %c0_647, %c0_648] : memref<16x12x128xf32, #tpu.memory_space<vmem>>, vector<1x12x128xf32>
    %938 = vector.shape_cast %937 : vector<1x12x128xf32> to vector<12x128xf32>
    %c7_649 = arith.constant 7 : index
    %c6_650 = arith.constant 6 : index
    %c0_651 = arith.constant 0 : index
    %939 = vector.load %arg3[%c7_649, %c6_650, %c0_651] : memref<16x10x128xf32, #tpu.memory_space<vmem>>, vector<1x1x128xf32>
    %940 = vector.shape_cast %939 : vector<1x1x128xf32> to vector<1x128xf32>
    %941 = vector.broadcast %940 : vector<1x128xf32> to vector<12x128xf32>
    %942 = arith.subf %938, %941 : vector<12x128xf32>
    %943 = arith.mulf %942, %942 : vector<12x128xf32>
    %944 = arith.addf %936, %943 : vector<12x128xf32>
    %c8_652 = arith.constant 8 : index
    %c0_653 = arith.constant 0 : index
    %c0_654 = arith.constant 0 : index
    %945 = vector.load %arg4[%c8_652, %c0_653, %c0_654] : memref<16x12x128xf32, #tpu.memory_space<vmem>>, vector<1x12x128xf32>
    %946 = vector.shape_cast %945 : vector<1x12x128xf32> to vector<12x128xf32>
    %c8_655 = arith.constant 8 : index
    %c6_656 = arith.constant 6 : index
    %c0_657 = arith.constant 0 : index
    %947 = vector.load %arg3[%c8_655, %c6_656, %c0_657] : memref<16x10x128xf32, #tpu.memory_space<vmem>>, vector<1x1x128xf32>
    %948 = vector.shape_cast %947 : vector<1x1x128xf32> to vector<1x128xf32>
    %949 = vector.broadcast %948 : vector<1x128xf32> to vector<12x128xf32>
    %950 = arith.subf %946, %949 : vector<12x128xf32>
    %951 = arith.mulf %950, %950 : vector<12x128xf32>
    %952 = arith.addf %944, %951 : vector<12x128xf32>
    %c9_658 = arith.constant 9 : index
    %c0_659 = arith.constant 0 : index
    %c0_660 = arith.constant 0 : index
    %953 = vector.load %arg4[%c9_658, %c0_659, %c0_660] : memref<16x12x128xf32, #tpu.memory_space<vmem>>, vector<1x12x128xf32>
    %954 = vector.shape_cast %953 : vector<1x12x128xf32> to vector<12x128xf32>
    %c9_661 = arith.constant 9 : index
    %c6_662 = arith.constant 6 : index
    %c0_663 = arith.constant 0 : index
    %955 = vector.load %arg3[%c9_661, %c6_662, %c0_663] : memref<16x10x128xf32, #tpu.memory_space<vmem>>, vector<1x1x128xf32>
    %956 = vector.shape_cast %955 : vector<1x1x128xf32> to vector<1x128xf32>
    %957 = vector.broadcast %956 : vector<1x128xf32> to vector<12x128xf32>
    %958 = arith.subf %954, %957 : vector<12x128xf32>
    %959 = arith.mulf %958, %958 : vector<12x128xf32>
    %960 = arith.addf %952, %959 : vector<12x128xf32>
    %c10_664 = arith.constant 10 : index
    %c0_665 = arith.constant 0 : index
    %c0_666 = arith.constant 0 : index
    %961 = vector.load %arg4[%c10_664, %c0_665, %c0_666] : memref<16x12x128xf32, #tpu.memory_space<vmem>>, vector<1x12x128xf32>
    %962 = vector.shape_cast %961 : vector<1x12x128xf32> to vector<12x128xf32>
    %c10_667 = arith.constant 10 : index
    %c6_668 = arith.constant 6 : index
    %c0_669 = arith.constant 0 : index
    %963 = vector.load %arg3[%c10_667, %c6_668, %c0_669] : memref<16x10x128xf32, #tpu.memory_space<vmem>>, vector<1x1x128xf32>
    %964 = vector.shape_cast %963 : vector<1x1x128xf32> to vector<1x128xf32>
    %965 = vector.broadcast %964 : vector<1x128xf32> to vector<12x128xf32>
    %966 = arith.subf %962, %965 : vector<12x128xf32>
    %967 = arith.mulf %966, %966 : vector<12x128xf32>
    %968 = arith.addf %960, %967 : vector<12x128xf32>
    %c11_670 = arith.constant 11 : index
    %c0_671 = arith.constant 0 : index
    %c0_672 = arith.constant 0 : index
    %969 = vector.load %arg4[%c11_670, %c0_671, %c0_672] : memref<16x12x128xf32, #tpu.memory_space<vmem>>, vector<1x12x128xf32>
    %970 = vector.shape_cast %969 : vector<1x12x128xf32> to vector<12x128xf32>
    %c11_673 = arith.constant 11 : index
    %c6_674 = arith.constant 6 : index
    %c0_675 = arith.constant 0 : index
    %971 = vector.load %arg3[%c11_673, %c6_674, %c0_675] : memref<16x10x128xf32, #tpu.memory_space<vmem>>, vector<1x1x128xf32>
    %972 = vector.shape_cast %971 : vector<1x1x128xf32> to vector<1x128xf32>
    %973 = vector.broadcast %972 : vector<1x128xf32> to vector<12x128xf32>
    %974 = arith.subf %970, %973 : vector<12x128xf32>
    %975 = arith.mulf %974, %974 : vector<12x128xf32>
    %976 = arith.addf %968, %975 : vector<12x128xf32>
    %c12_676 = arith.constant 12 : index
    %c0_677 = arith.constant 0 : index
    %c0_678 = arith.constant 0 : index
    %977 = vector.load %arg4[%c12_676, %c0_677, %c0_678] : memref<16x12x128xf32, #tpu.memory_space<vmem>>, vector<1x12x128xf32>
    %978 = vector.shape_cast %977 : vector<1x12x128xf32> to vector<12x128xf32>
    %c12_679 = arith.constant 12 : index
    %c6_680 = arith.constant 6 : index
    %c0_681 = arith.constant 0 : index
    %979 = vector.load %arg3[%c12_679, %c6_680, %c0_681] : memref<16x10x128xf32, #tpu.memory_space<vmem>>, vector<1x1x128xf32>
    %980 = vector.shape_cast %979 : vector<1x1x128xf32> to vector<1x128xf32>
    %981 = vector.broadcast %980 : vector<1x128xf32> to vector<12x128xf32>
    %982 = arith.subf %978, %981 : vector<12x128xf32>
    %983 = arith.mulf %982, %982 : vector<12x128xf32>
    %984 = arith.addf %976, %983 : vector<12x128xf32>
    %c13_682 = arith.constant 13 : index
    %c0_683 = arith.constant 0 : index
    %c0_684 = arith.constant 0 : index
    %985 = vector.load %arg4[%c13_682, %c0_683, %c0_684] : memref<16x12x128xf32, #tpu.memory_space<vmem>>, vector<1x12x128xf32>
    %986 = vector.shape_cast %985 : vector<1x12x128xf32> to vector<12x128xf32>
    %c13_685 = arith.constant 13 : index
    %c6_686 = arith.constant 6 : index
    %c0_687 = arith.constant 0 : index
    %987 = vector.load %arg3[%c13_685, %c6_686, %c0_687] : memref<16x10x128xf32, #tpu.memory_space<vmem>>, vector<1x1x128xf32>
    %988 = vector.shape_cast %987 : vector<1x1x128xf32> to vector<1x128xf32>
    %989 = vector.broadcast %988 : vector<1x128xf32> to vector<12x128xf32>
    %990 = arith.subf %986, %989 : vector<12x128xf32>
    %991 = arith.mulf %990, %990 : vector<12x128xf32>
    %992 = arith.addf %984, %991 : vector<12x128xf32>
    %c14_688 = arith.constant 14 : index
    %c0_689 = arith.constant 0 : index
    %c0_690 = arith.constant 0 : index
    %993 = vector.load %arg4[%c14_688, %c0_689, %c0_690] : memref<16x12x128xf32, #tpu.memory_space<vmem>>, vector<1x12x128xf32>
    %994 = vector.shape_cast %993 : vector<1x12x128xf32> to vector<12x128xf32>
    %c14_691 = arith.constant 14 : index
    %c6_692 = arith.constant 6 : index
    %c0_693 = arith.constant 0 : index
    %995 = vector.load %arg3[%c14_691, %c6_692, %c0_693] : memref<16x10x128xf32, #tpu.memory_space<vmem>>, vector<1x1x128xf32>
    %996 = vector.shape_cast %995 : vector<1x1x128xf32> to vector<1x128xf32>
    %997 = vector.broadcast %996 : vector<1x128xf32> to vector<12x128xf32>
    %998 = arith.subf %994, %997 : vector<12x128xf32>
    %999 = arith.mulf %998, %998 : vector<12x128xf32>
    %1000 = arith.addf %992, %999 : vector<12x128xf32>
    %c15_694 = arith.constant 15 : index
    %c0_695 = arith.constant 0 : index
    %c0_696 = arith.constant 0 : index
    %1001 = vector.load %arg4[%c15_694, %c0_695, %c0_696] : memref<16x12x128xf32, #tpu.memory_space<vmem>>, vector<1x12x128xf32>
    %1002 = vector.shape_cast %1001 : vector<1x12x128xf32> to vector<12x128xf32>
    %c15_697 = arith.constant 15 : index
    %c6_698 = arith.constant 6 : index
    %c0_699 = arith.constant 0 : index
    %1003 = vector.load %arg3[%c15_697, %c6_698, %c0_699] : memref<16x10x128xf32, #tpu.memory_space<vmem>>, vector<1x1x128xf32>
    %1004 = vector.shape_cast %1003 : vector<1x1x128xf32> to vector<1x128xf32>
    %1005 = vector.broadcast %1004 : vector<1x128xf32> to vector<12x128xf32>
    %1006 = arith.subf %1002, %1005 : vector<12x128xf32>
    %1007 = arith.mulf %1006, %1006 : vector<12x128xf32>
    %1008 = arith.addf %1000, %1007 : vector<12x128xf32>
    %c6_i32 = arith.constant 6 : i32
    %1009 = vector.broadcast %c6_i32 : i32 to vector<1x128xi32>
    %1010 = arith.cmpi sle, %0, %1009 : vector<1x128xi32>
    %cst_700 = arith.constant 1.000000e+30 : f32
    %cst_701 = arith.constant 0.000000e+00 : f32
    %1011 = vector.broadcast %cst_700 : f32 to vector<1x128xf32>
    %1012 = vector.broadcast %cst_701 : f32 to vector<1x128xf32>
    %1013 = arith.select %1010, %1011, %1012 : vector<1x128xi1>, vector<1x128xf32>
    %1014 = arith.addf %1008, %7 : vector<12x128xf32>
    %1015 = vector.broadcast %1013 : vector<1x128xf32> to vector<12x128xf32>
    %1016 = arith.addf %1014, %1015 : vector<12x128xf32>
    %1017 = arith.minimumf %872, %1016 : vector<12x128xf32>
    %cst_702 = arith.constant dense<0x7F800000> : vector<128xf32>
    %1018 = vector.multi_reduction <minimumf>, %1016, %cst_702 [0] : vector<12x128xf32> to vector<128xf32>
    %1019 = vector.shape_cast %1018 : vector<128xf32> to vector<1x128xf32>
    %cst_703 = arith.constant 5.000000e+29 : f32
    %1020 = vector.broadcast %cst_703 : f32 to vector<1x128xf32>
    %1021 = arith.cmpf oge, %1019, %1020 : vector<1x128xf32>
    %cst_704 = arith.constant 0.000000e+00 : f32
    %1022 = vector.broadcast %cst_704 : f32 to vector<1x128xf32>
    %1023 = arith.select %1021, %1022, %1019 : vector<1x128xi1>, vector<1x128xf32>
    %1024 = arith.maximumf %879, %1023 : vector<1x128xf32>
    %cst_705 = arith.constant 0.000000e+00 : f32
    %1025 = vector.broadcast %cst_705 : f32 to vector<12x128xf32>
    %c0_706 = arith.constant 0 : index
    %c0_707 = arith.constant 0 : index
    %c0_708 = arith.constant 0 : index
    %1026 = vector.load %arg4[%c0_706, %c0_707, %c0_708] : memref<16x12x128xf32, #tpu.memory_space<vmem>>, vector<1x12x128xf32>
    %1027 = vector.shape_cast %1026 : vector<1x12x128xf32> to vector<12x128xf32>
    %c0_709 = arith.constant 0 : index
    %c7_710 = arith.constant 7 : index
    %c0_711 = arith.constant 0 : index
    %1028 = vector.load %arg3[%c0_709, %c7_710, %c0_711] : memref<16x10x128xf32, #tpu.memory_space<vmem>>, vector<1x1x128xf32>
    %1029 = vector.shape_cast %1028 : vector<1x1x128xf32> to vector<1x128xf32>
    %1030 = vector.broadcast %1029 : vector<1x128xf32> to vector<12x128xf32>
    %1031 = arith.subf %1027, %1030 : vector<12x128xf32>
    %1032 = arith.mulf %1031, %1031 : vector<12x128xf32>
    %1033 = arith.addf %1025, %1032 : vector<12x128xf32>
    %c1_712 = arith.constant 1 : index
    %c0_713 = arith.constant 0 : index
    %c0_714 = arith.constant 0 : index
    %1034 = vector.load %arg4[%c1_712, %c0_713, %c0_714] : memref<16x12x128xf32, #tpu.memory_space<vmem>>, vector<1x12x128xf32>
    %1035 = vector.shape_cast %1034 : vector<1x12x128xf32> to vector<12x128xf32>
    %c1_715 = arith.constant 1 : index
    %c7_716 = arith.constant 7 : index
    %c0_717 = arith.constant 0 : index
    %1036 = vector.load %arg3[%c1_715, %c7_716, %c0_717] : memref<16x10x128xf32, #tpu.memory_space<vmem>>, vector<1x1x128xf32>
    %1037 = vector.shape_cast %1036 : vector<1x1x128xf32> to vector<1x128xf32>
    %1038 = vector.broadcast %1037 : vector<1x128xf32> to vector<12x128xf32>
    %1039 = arith.subf %1035, %1038 : vector<12x128xf32>
    %1040 = arith.mulf %1039, %1039 : vector<12x128xf32>
    %1041 = arith.addf %1033, %1040 : vector<12x128xf32>
    %c2_718 = arith.constant 2 : index
    %c0_719 = arith.constant 0 : index
    %c0_720 = arith.constant 0 : index
    %1042 = vector.load %arg4[%c2_718, %c0_719, %c0_720] : memref<16x12x128xf32, #tpu.memory_space<vmem>>, vector<1x12x128xf32>
    %1043 = vector.shape_cast %1042 : vector<1x12x128xf32> to vector<12x128xf32>
    %c2_721 = arith.constant 2 : index
    %c7_722 = arith.constant 7 : index
    %c0_723 = arith.constant 0 : index
    %1044 = vector.load %arg3[%c2_721, %c7_722, %c0_723] : memref<16x10x128xf32, #tpu.memory_space<vmem>>, vector<1x1x128xf32>
    %1045 = vector.shape_cast %1044 : vector<1x1x128xf32> to vector<1x128xf32>
    %1046 = vector.broadcast %1045 : vector<1x128xf32> to vector<12x128xf32>
    %1047 = arith.subf %1043, %1046 : vector<12x128xf32>
    %1048 = arith.mulf %1047, %1047 : vector<12x128xf32>
    %1049 = arith.addf %1041, %1048 : vector<12x128xf32>
    %c3_724 = arith.constant 3 : index
    %c0_725 = arith.constant 0 : index
    %c0_726 = arith.constant 0 : index
    %1050 = vector.load %arg4[%c3_724, %c0_725, %c0_726] : memref<16x12x128xf32, #tpu.memory_space<vmem>>, vector<1x12x128xf32>
    %1051 = vector.shape_cast %1050 : vector<1x12x128xf32> to vector<12x128xf32>
    %c3_727 = arith.constant 3 : index
    %c7_728 = arith.constant 7 : index
    %c0_729 = arith.constant 0 : index
    %1052 = vector.load %arg3[%c3_727, %c7_728, %c0_729] : memref<16x10x128xf32, #tpu.memory_space<vmem>>, vector<1x1x128xf32>
    %1053 = vector.shape_cast %1052 : vector<1x1x128xf32> to vector<1x128xf32>
    %1054 = vector.broadcast %1053 : vector<1x128xf32> to vector<12x128xf32>
    %1055 = arith.subf %1051, %1054 : vector<12x128xf32>
    %1056 = arith.mulf %1055, %1055 : vector<12x128xf32>
    %1057 = arith.addf %1049, %1056 : vector<12x128xf32>
    %c4_730 = arith.constant 4 : index
    %c0_731 = arith.constant 0 : index
    %c0_732 = arith.constant 0 : index
    %1058 = vector.load %arg4[%c4_730, %c0_731, %c0_732] : memref<16x12x128xf32, #tpu.memory_space<vmem>>, vector<1x12x128xf32>
    %1059 = vector.shape_cast %1058 : vector<1x12x128xf32> to vector<12x128xf32>
    %c4_733 = arith.constant 4 : index
    %c7_734 = arith.constant 7 : index
    %c0_735 = arith.constant 0 : index
    %1060 = vector.load %arg3[%c4_733, %c7_734, %c0_735] : memref<16x10x128xf32, #tpu.memory_space<vmem>>, vector<1x1x128xf32>
    %1061 = vector.shape_cast %1060 : vector<1x1x128xf32> to vector<1x128xf32>
    %1062 = vector.broadcast %1061 : vector<1x128xf32> to vector<12x128xf32>
    %1063 = arith.subf %1059, %1062 : vector<12x128xf32>
    %1064 = arith.mulf %1063, %1063 : vector<12x128xf32>
    %1065 = arith.addf %1057, %1064 : vector<12x128xf32>
    %c5_736 = arith.constant 5 : index
    %c0_737 = arith.constant 0 : index
    %c0_738 = arith.constant 0 : index
    %1066 = vector.load %arg4[%c5_736, %c0_737, %c0_738] : memref<16x12x128xf32, #tpu.memory_space<vmem>>, vector<1x12x128xf32>
    %1067 = vector.shape_cast %1066 : vector<1x12x128xf32> to vector<12x128xf32>
    %c5_739 = arith.constant 5 : index
    %c7_740 = arith.constant 7 : index
    %c0_741 = arith.constant 0 : index
    %1068 = vector.load %arg3[%c5_739, %c7_740, %c0_741] : memref<16x10x128xf32, #tpu.memory_space<vmem>>, vector<1x1x128xf32>
    %1069 = vector.shape_cast %1068 : vector<1x1x128xf32> to vector<1x128xf32>
    %1070 = vector.broadcast %1069 : vector<1x128xf32> to vector<12x128xf32>
    %1071 = arith.subf %1067, %1070 : vector<12x128xf32>
    %1072 = arith.mulf %1071, %1071 : vector<12x128xf32>
    %1073 = arith.addf %1065, %1072 : vector<12x128xf32>
    %c6_742 = arith.constant 6 : index
    %c0_743 = arith.constant 0 : index
    %c0_744 = arith.constant 0 : index
    %1074 = vector.load %arg4[%c6_742, %c0_743, %c0_744] : memref<16x12x128xf32, #tpu.memory_space<vmem>>, vector<1x12x128xf32>
    %1075 = vector.shape_cast %1074 : vector<1x12x128xf32> to vector<12x128xf32>
    %c6_745 = arith.constant 6 : index
    %c7_746 = arith.constant 7 : index
    %c0_747 = arith.constant 0 : index
    %1076 = vector.load %arg3[%c6_745, %c7_746, %c0_747] : memref<16x10x128xf32, #tpu.memory_space<vmem>>, vector<1x1x128xf32>
    %1077 = vector.shape_cast %1076 : vector<1x1x128xf32> to vector<1x128xf32>
    %1078 = vector.broadcast %1077 : vector<1x128xf32> to vector<12x128xf32>
    %1079 = arith.subf %1075, %1078 : vector<12x128xf32>
    %1080 = arith.mulf %1079, %1079 : vector<12x128xf32>
    %1081 = arith.addf %1073, %1080 : vector<12x128xf32>
    %c7_748 = arith.constant 7 : index
    %c0_749 = arith.constant 0 : index
    %c0_750 = arith.constant 0 : index
    %1082 = vector.load %arg4[%c7_748, %c0_749, %c0_750] : memref<16x12x128xf32, #tpu.memory_space<vmem>>, vector<1x12x128xf32>
    %1083 = vector.shape_cast %1082 : vector<1x12x128xf32> to vector<12x128xf32>
    %c7_751 = arith.constant 7 : index
    %c7_752 = arith.constant 7 : index
    %c0_753 = arith.constant 0 : index
    %1084 = vector.load %arg3[%c7_751, %c7_752, %c0_753] : memref<16x10x128xf32, #tpu.memory_space<vmem>>, vector<1x1x128xf32>
    %1085 = vector.shape_cast %1084 : vector<1x1x128xf32> to vector<1x128xf32>
    %1086 = vector.broadcast %1085 : vector<1x128xf32> to vector<12x128xf32>
    %1087 = arith.subf %1083, %1086 : vector<12x128xf32>
    %1088 = arith.mulf %1087, %1087 : vector<12x128xf32>
    %1089 = arith.addf %1081, %1088 : vector<12x128xf32>
    %c8_754 = arith.constant 8 : index
    %c0_755 = arith.constant 0 : index
    %c0_756 = arith.constant 0 : index
    %1090 = vector.load %arg4[%c8_754, %c0_755, %c0_756] : memref<16x12x128xf32, #tpu.memory_space<vmem>>, vector<1x12x128xf32>
    %1091 = vector.shape_cast %1090 : vector<1x12x128xf32> to vector<12x128xf32>
    %c8_757 = arith.constant 8 : index
    %c7_758 = arith.constant 7 : index
    %c0_759 = arith.constant 0 : index
    %1092 = vector.load %arg3[%c8_757, %c7_758, %c0_759] : memref<16x10x128xf32, #tpu.memory_space<vmem>>, vector<1x1x128xf32>
    %1093 = vector.shape_cast %1092 : vector<1x1x128xf32> to vector<1x128xf32>
    %1094 = vector.broadcast %1093 : vector<1x128xf32> to vector<12x128xf32>
    %1095 = arith.subf %1091, %1094 : vector<12x128xf32>
    %1096 = arith.mulf %1095, %1095 : vector<12x128xf32>
    %1097 = arith.addf %1089, %1096 : vector<12x128xf32>
    %c9_760 = arith.constant 9 : index
    %c0_761 = arith.constant 0 : index
    %c0_762 = arith.constant 0 : index
    %1098 = vector.load %arg4[%c9_760, %c0_761, %c0_762] : memref<16x12x128xf32, #tpu.memory_space<vmem>>, vector<1x12x128xf32>
    %1099 = vector.shape_cast %1098 : vector<1x12x128xf32> to vector<12x128xf32>
    %c9_763 = arith.constant 9 : index
    %c7_764 = arith.constant 7 : index
    %c0_765 = arith.constant 0 : index
    %1100 = vector.load %arg3[%c9_763, %c7_764, %c0_765] : memref<16x10x128xf32, #tpu.memory_space<vmem>>, vector<1x1x128xf32>
    %1101 = vector.shape_cast %1100 : vector<1x1x128xf32> to vector<1x128xf32>
    %1102 = vector.broadcast %1101 : vector<1x128xf32> to vector<12x128xf32>
    %1103 = arith.subf %1099, %1102 : vector<12x128xf32>
    %1104 = arith.mulf %1103, %1103 : vector<12x128xf32>
    %1105 = arith.addf %1097, %1104 : vector<12x128xf32>
    %c10_766 = arith.constant 10 : index
    %c0_767 = arith.constant 0 : index
    %c0_768 = arith.constant 0 : index
    %1106 = vector.load %arg4[%c10_766, %c0_767, %c0_768] : memref<16x12x128xf32, #tpu.memory_space<vmem>>, vector<1x12x128xf32>
    %1107 = vector.shape_cast %1106 : vector<1x12x128xf32> to vector<12x128xf32>
    %c10_769 = arith.constant 10 : index
    %c7_770 = arith.constant 7 : index
    %c0_771 = arith.constant 0 : index
    %1108 = vector.load %arg3[%c10_769, %c7_770, %c0_771] : memref<16x10x128xf32, #tpu.memory_space<vmem>>, vector<1x1x128xf32>
    %1109 = vector.shape_cast %1108 : vector<1x1x128xf32> to vector<1x128xf32>
    %1110 = vector.broadcast %1109 : vector<1x128xf32> to vector<12x128xf32>
    %1111 = arith.subf %1107, %1110 : vector<12x128xf32>
    %1112 = arith.mulf %1111, %1111 : vector<12x128xf32>
    %1113 = arith.addf %1105, %1112 : vector<12x128xf32>
    %c11_772 = arith.constant 11 : index
    %c0_773 = arith.constant 0 : index
    %c0_774 = arith.constant 0 : index
    %1114 = vector.load %arg4[%c11_772, %c0_773, %c0_774] : memref<16x12x128xf32, #tpu.memory_space<vmem>>, vector<1x12x128xf32>
    %1115 = vector.shape_cast %1114 : vector<1x12x128xf32> to vector<12x128xf32>
    %c11_775 = arith.constant 11 : index
    %c7_776 = arith.constant 7 : index
    %c0_777 = arith.constant 0 : index
    %1116 = vector.load %arg3[%c11_775, %c7_776, %c0_777] : memref<16x10x128xf32, #tpu.memory_space<vmem>>, vector<1x1x128xf32>
    %1117 = vector.shape_cast %1116 : vector<1x1x128xf32> to vector<1x128xf32>
    %1118 = vector.broadcast %1117 : vector<1x128xf32> to vector<12x128xf32>
    %1119 = arith.subf %1115, %1118 : vector<12x128xf32>
    %1120 = arith.mulf %1119, %1119 : vector<12x128xf32>
    %1121 = arith.addf %1113, %1120 : vector<12x128xf32>
    %c12_778 = arith.constant 12 : index
    %c0_779 = arith.constant 0 : index
    %c0_780 = arith.constant 0 : index
    %1122 = vector.load %arg4[%c12_778, %c0_779, %c0_780] : memref<16x12x128xf32, #tpu.memory_space<vmem>>, vector<1x12x128xf32>
    %1123 = vector.shape_cast %1122 : vector<1x12x128xf32> to vector<12x128xf32>
    %c12_781 = arith.constant 12 : index
    %c7_782 = arith.constant 7 : index
    %c0_783 = arith.constant 0 : index
    %1124 = vector.load %arg3[%c12_781, %c7_782, %c0_783] : memref<16x10x128xf32, #tpu.memory_space<vmem>>, vector<1x1x128xf32>
    %1125 = vector.shape_cast %1124 : vector<1x1x128xf32> to vector<1x128xf32>
    %1126 = vector.broadcast %1125 : vector<1x128xf32> to vector<12x128xf32>
    %1127 = arith.subf %1123, %1126 : vector<12x128xf32>
    %1128 = arith.mulf %1127, %1127 : vector<12x128xf32>
    %1129 = arith.addf %1121, %1128 : vector<12x128xf32>
    %c13_784 = arith.constant 13 : index
    %c0_785 = arith.constant 0 : index
    %c0_786 = arith.constant 0 : index
    %1130 = vector.load %arg4[%c13_784, %c0_785, %c0_786] : memref<16x12x128xf32, #tpu.memory_space<vmem>>, vector<1x12x128xf32>
    %1131 = vector.shape_cast %1130 : vector<1x12x128xf32> to vector<12x128xf32>
    %c13_787 = arith.constant 13 : index
    %c7_788 = arith.constant 7 : index
    %c0_789 = arith.constant 0 : index
    %1132 = vector.load %arg3[%c13_787, %c7_788, %c0_789] : memref<16x10x128xf32, #tpu.memory_space<vmem>>, vector<1x1x128xf32>
    %1133 = vector.shape_cast %1132 : vector<1x1x128xf32> to vector<1x128xf32>
    %1134 = vector.broadcast %1133 : vector<1x128xf32> to vector<12x128xf32>
    %1135 = arith.subf %1131, %1134 : vector<12x128xf32>
    %1136 = arith.mulf %1135, %1135 : vector<12x128xf32>
    %1137 = arith.addf %1129, %1136 : vector<12x128xf32>
    %c14_790 = arith.constant 14 : index
    %c0_791 = arith.constant 0 : index
    %c0_792 = arith.constant 0 : index
    %1138 = vector.load %arg4[%c14_790, %c0_791, %c0_792] : memref<16x12x128xf32, #tpu.memory_space<vmem>>, vector<1x12x128xf32>
    %1139 = vector.shape_cast %1138 : vector<1x12x128xf32> to vector<12x128xf32>
    %c14_793 = arith.constant 14 : index
    %c7_794 = arith.constant 7 : index
    %c0_795 = arith.constant 0 : index
    %1140 = vector.load %arg3[%c14_793, %c7_794, %c0_795] : memref<16x10x128xf32, #tpu.memory_space<vmem>>, vector<1x1x128xf32>
    %1141 = vector.shape_cast %1140 : vector<1x1x128xf32> to vector<1x128xf32>
    %1142 = vector.broadcast %1141 : vector<1x128xf32> to vector<12x128xf32>
    %1143 = arith.subf %1139, %1142 : vector<12x128xf32>
    %1144 = arith.mulf %1143, %1143 : vector<12x128xf32>
    %1145 = arith.addf %1137, %1144 : vector<12x128xf32>
    %c15_796 = arith.constant 15 : index
    %c0_797 = arith.constant 0 : index
    %c0_798 = arith.constant 0 : index
    %1146 = vector.load %arg4[%c15_796, %c0_797, %c0_798] : memref<16x12x128xf32, #tpu.memory_space<vmem>>, vector<1x12x128xf32>
    %1147 = vector.shape_cast %1146 : vector<1x12x128xf32> to vector<12x128xf32>
    %c15_799 = arith.constant 15 : index
    %c7_800 = arith.constant 7 : index
    %c0_801 = arith.constant 0 : index
    %1148 = vector.load %arg3[%c15_799, %c7_800, %c0_801] : memref<16x10x128xf32, #tpu.memory_space<vmem>>, vector<1x1x128xf32>
    %1149 = vector.shape_cast %1148 : vector<1x1x128xf32> to vector<1x128xf32>
    %1150 = vector.broadcast %1149 : vector<1x128xf32> to vector<12x128xf32>
    %1151 = arith.subf %1147, %1150 : vector<12x128xf32>
    %1152 = arith.mulf %1151, %1151 : vector<12x128xf32>
    %1153 = arith.addf %1145, %1152 : vector<12x128xf32>
    %c7_i32 = arith.constant 7 : i32
    %1154 = vector.broadcast %c7_i32 : i32 to vector<1x128xi32>
    %1155 = arith.cmpi sle, %0, %1154 : vector<1x128xi32>
    %cst_802 = arith.constant 1.000000e+30 : f32
    %cst_803 = arith.constant 0.000000e+00 : f32
    %1156 = vector.broadcast %cst_802 : f32 to vector<1x128xf32>
    %1157 = vector.broadcast %cst_803 : f32 to vector<1x128xf32>
    %1158 = arith.select %1155, %1156, %1157 : vector<1x128xi1>, vector<1x128xf32>
    %1159 = arith.addf %1153, %7 : vector<12x128xf32>
    %1160 = vector.broadcast %1158 : vector<1x128xf32> to vector<12x128xf32>
    %1161 = arith.addf %1159, %1160 : vector<12x128xf32>
    %1162 = arith.minimumf %1017, %1161 : vector<12x128xf32>
    %cst_804 = arith.constant dense<0x7F800000> : vector<128xf32>
    %1163 = vector.multi_reduction <minimumf>, %1161, %cst_804 [0] : vector<12x128xf32> to vector<128xf32>
    %1164 = vector.shape_cast %1163 : vector<128xf32> to vector<1x128xf32>
    %cst_805 = arith.constant 5.000000e+29 : f32
    %1165 = vector.broadcast %cst_805 : f32 to vector<1x128xf32>
    %1166 = arith.cmpf oge, %1164, %1165 : vector<1x128xf32>
    %cst_806 = arith.constant 0.000000e+00 : f32
    %1167 = vector.broadcast %cst_806 : f32 to vector<1x128xf32>
    %1168 = arith.select %1166, %1167, %1164 : vector<1x128xi1>, vector<1x128xf32>
    %1169 = arith.maximumf %1024, %1168 : vector<1x128xf32>
    %cst_807 = arith.constant 0.000000e+00 : f32
    %1170 = vector.broadcast %cst_807 : f32 to vector<12x128xf32>
    %c0_808 = arith.constant 0 : index
    %c0_809 = arith.constant 0 : index
    %c0_810 = arith.constant 0 : index
    %1171 = vector.load %arg4[%c0_808, %c0_809, %c0_810] : memref<16x12x128xf32, #tpu.memory_space<vmem>>, vector<1x12x128xf32>
    %1172 = vector.shape_cast %1171 : vector<1x12x128xf32> to vector<12x128xf32>
    %c0_811 = arith.constant 0 : index
    %c8_812 = arith.constant 8 : index
    %c0_813 = arith.constant 0 : index
    %1173 = vector.load %arg3[%c0_811, %c8_812, %c0_813] : memref<16x10x128xf32, #tpu.memory_space<vmem>>, vector<1x1x128xf32>
    %1174 = vector.shape_cast %1173 : vector<1x1x128xf32> to vector<1x128xf32>
    %1175 = vector.broadcast %1174 : vector<1x128xf32> to vector<12x128xf32>
    %1176 = arith.subf %1172, %1175 : vector<12x128xf32>
    %1177 = arith.mulf %1176, %1176 : vector<12x128xf32>
    %1178 = arith.addf %1170, %1177 : vector<12x128xf32>
    %c1_814 = arith.constant 1 : index
    %c0_815 = arith.constant 0 : index
    %c0_816 = arith.constant 0 : index
    %1179 = vector.load %arg4[%c1_814, %c0_815, %c0_816] : memref<16x12x128xf32, #tpu.memory_space<vmem>>, vector<1x12x128xf32>
    %1180 = vector.shape_cast %1179 : vector<1x12x128xf32> to vector<12x128xf32>
    %c1_817 = arith.constant 1 : index
    %c8_818 = arith.constant 8 : index
    %c0_819 = arith.constant 0 : index
    %1181 = vector.load %arg3[%c1_817, %c8_818, %c0_819] : memref<16x10x128xf32, #tpu.memory_space<vmem>>, vector<1x1x128xf32>
    %1182 = vector.shape_cast %1181 : vector<1x1x128xf32> to vector<1x128xf32>
    %1183 = vector.broadcast %1182 : vector<1x128xf32> to vector<12x128xf32>
    %1184 = arith.subf %1180, %1183 : vector<12x128xf32>
    %1185 = arith.mulf %1184, %1184 : vector<12x128xf32>
    %1186 = arith.addf %1178, %1185 : vector<12x128xf32>
    %c2_820 = arith.constant 2 : index
    %c0_821 = arith.constant 0 : index
    %c0_822 = arith.constant 0 : index
    %1187 = vector.load %arg4[%c2_820, %c0_821, %c0_822] : memref<16x12x128xf32, #tpu.memory_space<vmem>>, vector<1x12x128xf32>
    %1188 = vector.shape_cast %1187 : vector<1x12x128xf32> to vector<12x128xf32>
    %c2_823 = arith.constant 2 : index
    %c8_824 = arith.constant 8 : index
    %c0_825 = arith.constant 0 : index
    %1189 = vector.load %arg3[%c2_823, %c8_824, %c0_825] : memref<16x10x128xf32, #tpu.memory_space<vmem>>, vector<1x1x128xf32>
    %1190 = vector.shape_cast %1189 : vector<1x1x128xf32> to vector<1x128xf32>
    %1191 = vector.broadcast %1190 : vector<1x128xf32> to vector<12x128xf32>
    %1192 = arith.subf %1188, %1191 : vector<12x128xf32>
    %1193 = arith.mulf %1192, %1192 : vector<12x128xf32>
    %1194 = arith.addf %1186, %1193 : vector<12x128xf32>
    %c3_826 = arith.constant 3 : index
    %c0_827 = arith.constant 0 : index
    %c0_828 = arith.constant 0 : index
    %1195 = vector.load %arg4[%c3_826, %c0_827, %c0_828] : memref<16x12x128xf32, #tpu.memory_space<vmem>>, vector<1x12x128xf32>
    %1196 = vector.shape_cast %1195 : vector<1x12x128xf32> to vector<12x128xf32>
    %c3_829 = arith.constant 3 : index
    %c8_830 = arith.constant 8 : index
    %c0_831 = arith.constant 0 : index
    %1197 = vector.load %arg3[%c3_829, %c8_830, %c0_831] : memref<16x10x128xf32, #tpu.memory_space<vmem>>, vector<1x1x128xf32>
    %1198 = vector.shape_cast %1197 : vector<1x1x128xf32> to vector<1x128xf32>
    %1199 = vector.broadcast %1198 : vector<1x128xf32> to vector<12x128xf32>
    %1200 = arith.subf %1196, %1199 : vector<12x128xf32>
    %1201 = arith.mulf %1200, %1200 : vector<12x128xf32>
    %1202 = arith.addf %1194, %1201 : vector<12x128xf32>
    %c4_832 = arith.constant 4 : index
    %c0_833 = arith.constant 0 : index
    %c0_834 = arith.constant 0 : index
    %1203 = vector.load %arg4[%c4_832, %c0_833, %c0_834] : memref<16x12x128xf32, #tpu.memory_space<vmem>>, vector<1x12x128xf32>
    %1204 = vector.shape_cast %1203 : vector<1x12x128xf32> to vector<12x128xf32>
    %c4_835 = arith.constant 4 : index
    %c8_836 = arith.constant 8 : index
    %c0_837 = arith.constant 0 : index
    %1205 = vector.load %arg3[%c4_835, %c8_836, %c0_837] : memref<16x10x128xf32, #tpu.memory_space<vmem>>, vector<1x1x128xf32>
    %1206 = vector.shape_cast %1205 : vector<1x1x128xf32> to vector<1x128xf32>
    %1207 = vector.broadcast %1206 : vector<1x128xf32> to vector<12x128xf32>
    %1208 = arith.subf %1204, %1207 : vector<12x128xf32>
    %1209 = arith.mulf %1208, %1208 : vector<12x128xf32>
    %1210 = arith.addf %1202, %1209 : vector<12x128xf32>
    %c5_838 = arith.constant 5 : index
    %c0_839 = arith.constant 0 : index
    %c0_840 = arith.constant 0 : index
    %1211 = vector.load %arg4[%c5_838, %c0_839, %c0_840] : memref<16x12x128xf32, #tpu.memory_space<vmem>>, vector<1x12x128xf32>
    %1212 = vector.shape_cast %1211 : vector<1x12x128xf32> to vector<12x128xf32>
    %c5_841 = arith.constant 5 : index
    %c8_842 = arith.constant 8 : index
    %c0_843 = arith.constant 0 : index
    %1213 = vector.load %arg3[%c5_841, %c8_842, %c0_843] : memref<16x10x128xf32, #tpu.memory_space<vmem>>, vector<1x1x128xf32>
    %1214 = vector.shape_cast %1213 : vector<1x1x128xf32> to vector<1x128xf32>
    %1215 = vector.broadcast %1214 : vector<1x128xf32> to vector<12x128xf32>
    %1216 = arith.subf %1212, %1215 : vector<12x128xf32>
    %1217 = arith.mulf %1216, %1216 : vector<12x128xf32>
    %1218 = arith.addf %1210, %1217 : vector<12x128xf32>
    %c6_844 = arith.constant 6 : index
    %c0_845 = arith.constant 0 : index
    %c0_846 = arith.constant 0 : index
    %1219 = vector.load %arg4[%c6_844, %c0_845, %c0_846] : memref<16x12x128xf32, #tpu.memory_space<vmem>>, vector<1x12x128xf32>
    %1220 = vector.shape_cast %1219 : vector<1x12x128xf32> to vector<12x128xf32>
    %c6_847 = arith.constant 6 : index
    %c8_848 = arith.constant 8 : index
    %c0_849 = arith.constant 0 : index
    %1221 = vector.load %arg3[%c6_847, %c8_848, %c0_849] : memref<16x10x128xf32, #tpu.memory_space<vmem>>, vector<1x1x128xf32>
    %1222 = vector.shape_cast %1221 : vector<1x1x128xf32> to vector<1x128xf32>
    %1223 = vector.broadcast %1222 : vector<1x128xf32> to vector<12x128xf32>
    %1224 = arith.subf %1220, %1223 : vector<12x128xf32>
    %1225 = arith.mulf %1224, %1224 : vector<12x128xf32>
    %1226 = arith.addf %1218, %1225 : vector<12x128xf32>
    %c7_850 = arith.constant 7 : index
    %c0_851 = arith.constant 0 : index
    %c0_852 = arith.constant 0 : index
    %1227 = vector.load %arg4[%c7_850, %c0_851, %c0_852] : memref<16x12x128xf32, #tpu.memory_space<vmem>>, vector<1x12x128xf32>
    %1228 = vector.shape_cast %1227 : vector<1x12x128xf32> to vector<12x128xf32>
    %c7_853 = arith.constant 7 : index
    %c8_854 = arith.constant 8 : index
    %c0_855 = arith.constant 0 : index
    %1229 = vector.load %arg3[%c7_853, %c8_854, %c0_855] : memref<16x10x128xf32, #tpu.memory_space<vmem>>, vector<1x1x128xf32>
    %1230 = vector.shape_cast %1229 : vector<1x1x128xf32> to vector<1x128xf32>
    %1231 = vector.broadcast %1230 : vector<1x128xf32> to vector<12x128xf32>
    %1232 = arith.subf %1228, %1231 : vector<12x128xf32>
    %1233 = arith.mulf %1232, %1232 : vector<12x128xf32>
    %1234 = arith.addf %1226, %1233 : vector<12x128xf32>
    %c8_856 = arith.constant 8 : index
    %c0_857 = arith.constant 0 : index
    %c0_858 = arith.constant 0 : index
    %1235 = vector.load %arg4[%c8_856, %c0_857, %c0_858] : memref<16x12x128xf32, #tpu.memory_space<vmem>>, vector<1x12x128xf32>
    %1236 = vector.shape_cast %1235 : vector<1x12x128xf32> to vector<12x128xf32>
    %c8_859 = arith.constant 8 : index
    %c8_860 = arith.constant 8 : index
    %c0_861 = arith.constant 0 : index
    %1237 = vector.load %arg3[%c8_859, %c8_860, %c0_861] : memref<16x10x128xf32, #tpu.memory_space<vmem>>, vector<1x1x128xf32>
    %1238 = vector.shape_cast %1237 : vector<1x1x128xf32> to vector<1x128xf32>
    %1239 = vector.broadcast %1238 : vector<1x128xf32> to vector<12x128xf32>
    %1240 = arith.subf %1236, %1239 : vector<12x128xf32>
    %1241 = arith.mulf %1240, %1240 : vector<12x128xf32>
    %1242 = arith.addf %1234, %1241 : vector<12x128xf32>
    %c9_862 = arith.constant 9 : index
    %c0_863 = arith.constant 0 : index
    %c0_864 = arith.constant 0 : index
    %1243 = vector.load %arg4[%c9_862, %c0_863, %c0_864] : memref<16x12x128xf32, #tpu.memory_space<vmem>>, vector<1x12x128xf32>
    %1244 = vector.shape_cast %1243 : vector<1x12x128xf32> to vector<12x128xf32>
    %c9_865 = arith.constant 9 : index
    %c8_866 = arith.constant 8 : index
    %c0_867 = arith.constant 0 : index
    %1245 = vector.load %arg3[%c9_865, %c8_866, %c0_867] : memref<16x10x128xf32, #tpu.memory_space<vmem>>, vector<1x1x128xf32>
    %1246 = vector.shape_cast %1245 : vector<1x1x128xf32> to vector<1x128xf32>
    %1247 = vector.broadcast %1246 : vector<1x128xf32> to vector<12x128xf32>
    %1248 = arith.subf %1244, %1247 : vector<12x128xf32>
    %1249 = arith.mulf %1248, %1248 : vector<12x128xf32>
    %1250 = arith.addf %1242, %1249 : vector<12x128xf32>
    %c10_868 = arith.constant 10 : index
    %c0_869 = arith.constant 0 : index
    %c0_870 = arith.constant 0 : index
    %1251 = vector.load %arg4[%c10_868, %c0_869, %c0_870] : memref<16x12x128xf32, #tpu.memory_space<vmem>>, vector<1x12x128xf32>
    %1252 = vector.shape_cast %1251 : vector<1x12x128xf32> to vector<12x128xf32>
    %c10_871 = arith.constant 10 : index
    %c8_872 = arith.constant 8 : index
    %c0_873 = arith.constant 0 : index
    %1253 = vector.load %arg3[%c10_871, %c8_872, %c0_873] : memref<16x10x128xf32, #tpu.memory_space<vmem>>, vector<1x1x128xf32>
    %1254 = vector.shape_cast %1253 : vector<1x1x128xf32> to vector<1x128xf32>
    %1255 = vector.broadcast %1254 : vector<1x128xf32> to vector<12x128xf32>
    %1256 = arith.subf %1252, %1255 : vector<12x128xf32>
    %1257 = arith.mulf %1256, %1256 : vector<12x128xf32>
    %1258 = arith.addf %1250, %1257 : vector<12x128xf32>
    %c11_874 = arith.constant 11 : index
    %c0_875 = arith.constant 0 : index
    %c0_876 = arith.constant 0 : index
    %1259 = vector.load %arg4[%c11_874, %c0_875, %c0_876] : memref<16x12x128xf32, #tpu.memory_space<vmem>>, vector<1x12x128xf32>
    %1260 = vector.shape_cast %1259 : vector<1x12x128xf32> to vector<12x128xf32>
    %c11_877 = arith.constant 11 : index
    %c8_878 = arith.constant 8 : index
    %c0_879 = arith.constant 0 : index
    %1261 = vector.load %arg3[%c11_877, %c8_878, %c0_879] : memref<16x10x128xf32, #tpu.memory_space<vmem>>, vector<1x1x128xf32>
    %1262 = vector.shape_cast %1261 : vector<1x1x128xf32> to vector<1x128xf32>
    %1263 = vector.broadcast %1262 : vector<1x128xf32> to vector<12x128xf32>
    %1264 = arith.subf %1260, %1263 : vector<12x128xf32>
    %1265 = arith.mulf %1264, %1264 : vector<12x128xf32>
    %1266 = arith.addf %1258, %1265 : vector<12x128xf32>
    %c12_880 = arith.constant 12 : index
    %c0_881 = arith.constant 0 : index
    %c0_882 = arith.constant 0 : index
    %1267 = vector.load %arg4[%c12_880, %c0_881, %c0_882] : memref<16x12x128xf32, #tpu.memory_space<vmem>>, vector<1x12x128xf32>
    %1268 = vector.shape_cast %1267 : vector<1x12x128xf32> to vector<12x128xf32>
    %c12_883 = arith.constant 12 : index
    %c8_884 = arith.constant 8 : index
    %c0_885 = arith.constant 0 : index
    %1269 = vector.load %arg3[%c12_883, %c8_884, %c0_885] : memref<16x10x128xf32, #tpu.memory_space<vmem>>, vector<1x1x128xf32>
    %1270 = vector.shape_cast %1269 : vector<1x1x128xf32> to vector<1x128xf32>
    %1271 = vector.broadcast %1270 : vector<1x128xf32> to vector<12x128xf32>
    %1272 = arith.subf %1268, %1271 : vector<12x128xf32>
    %1273 = arith.mulf %1272, %1272 : vector<12x128xf32>
    %1274 = arith.addf %1266, %1273 : vector<12x128xf32>
    %c13_886 = arith.constant 13 : index
    %c0_887 = arith.constant 0 : index
    %c0_888 = arith.constant 0 : index
    %1275 = vector.load %arg4[%c13_886, %c0_887, %c0_888] : memref<16x12x128xf32, #tpu.memory_space<vmem>>, vector<1x12x128xf32>
    %1276 = vector.shape_cast %1275 : vector<1x12x128xf32> to vector<12x128xf32>
    %c13_889 = arith.constant 13 : index
    %c8_890 = arith.constant 8 : index
    %c0_891 = arith.constant 0 : index
    %1277 = vector.load %arg3[%c13_889, %c8_890, %c0_891] : memref<16x10x128xf32, #tpu.memory_space<vmem>>, vector<1x1x128xf32>
    %1278 = vector.shape_cast %1277 : vector<1x1x128xf32> to vector<1x128xf32>
    %1279 = vector.broadcast %1278 : vector<1x128xf32> to vector<12x128xf32>
    %1280 = arith.subf %1276, %1279 : vector<12x128xf32>
    %1281 = arith.mulf %1280, %1280 : vector<12x128xf32>
    %1282 = arith.addf %1274, %1281 : vector<12x128xf32>
    %c14_892 = arith.constant 14 : index
    %c0_893 = arith.constant 0 : index
    %c0_894 = arith.constant 0 : index
    %1283 = vector.load %arg4[%c14_892, %c0_893, %c0_894] : memref<16x12x128xf32, #tpu.memory_space<vmem>>, vector<1x12x128xf32>
    %1284 = vector.shape_cast %1283 : vector<1x12x128xf32> to vector<12x128xf32>
    %c14_895 = arith.constant 14 : index
    %c8_896 = arith.constant 8 : index
    %c0_897 = arith.constant 0 : index
    %1285 = vector.load %arg3[%c14_895, %c8_896, %c0_897] : memref<16x10x128xf32, #tpu.memory_space<vmem>>, vector<1x1x128xf32>
    %1286 = vector.shape_cast %1285 : vector<1x1x128xf32> to vector<1x128xf32>
    %1287 = vector.broadcast %1286 : vector<1x128xf32> to vector<12x128xf32>
    %1288 = arith.subf %1284, %1287 : vector<12x128xf32>
    %1289 = arith.mulf %1288, %1288 : vector<12x128xf32>
    %1290 = arith.addf %1282, %1289 : vector<12x128xf32>
    %c15_898 = arith.constant 15 : index
    %c0_899 = arith.constant 0 : index
    %c0_900 = arith.constant 0 : index
    %1291 = vector.load %arg4[%c15_898, %c0_899, %c0_900] : memref<16x12x128xf32, #tpu.memory_space<vmem>>, vector<1x12x128xf32>
    %1292 = vector.shape_cast %1291 : vector<1x12x128xf32> to vector<12x128xf32>
    %c15_901 = arith.constant 15 : index
    %c8_902 = arith.constant 8 : index
    %c0_903 = arith.constant 0 : index
    %1293 = vector.load %arg3[%c15_901, %c8_902, %c0_903] : memref<16x10x128xf32, #tpu.memory_space<vmem>>, vector<1x1x128xf32>
    %1294 = vector.shape_cast %1293 : vector<1x1x128xf32> to vector<1x128xf32>
    %1295 = vector.broadcast %1294 : vector<1x128xf32> to vector<12x128xf32>
    %1296 = arith.subf %1292, %1295 : vector<12x128xf32>
    %1297 = arith.mulf %1296, %1296 : vector<12x128xf32>
    %1298 = arith.addf %1290, %1297 : vector<12x128xf32>
    %c8_i32 = arith.constant 8 : i32
    %1299 = vector.broadcast %c8_i32 : i32 to vector<1x128xi32>
    %1300 = arith.cmpi sle, %0, %1299 : vector<1x128xi32>
    %cst_904 = arith.constant 1.000000e+30 : f32
    %cst_905 = arith.constant 0.000000e+00 : f32
    %1301 = vector.broadcast %cst_904 : f32 to vector<1x128xf32>
    %1302 = vector.broadcast %cst_905 : f32 to vector<1x128xf32>
    %1303 = arith.select %1300, %1301, %1302 : vector<1x128xi1>, vector<1x128xf32>
    %1304 = arith.addf %1298, %7 : vector<12x128xf32>
    %1305 = vector.broadcast %1303 : vector<1x128xf32> to vector<12x128xf32>
    %1306 = arith.addf %1304, %1305 : vector<12x128xf32>
    %1307 = arith.minimumf %1162, %1306 : vector<12x128xf32>
    %cst_906 = arith.constant dense<0x7F800000> : vector<128xf32>
    %1308 = vector.multi_reduction <minimumf>, %1306, %cst_906 [0] : vector<12x128xf32> to vector<128xf32>
    %1309 = vector.shape_cast %1308 : vector<128xf32> to vector<1x128xf32>
    %cst_907 = arith.constant 5.000000e+29 : f32
    %1310 = vector.broadcast %cst_907 : f32 to vector<1x128xf32>
    %1311 = arith.cmpf oge, %1309, %1310 : vector<1x128xf32>
    %cst_908 = arith.constant 0.000000e+00 : f32
    %1312 = vector.broadcast %cst_908 : f32 to vector<1x128xf32>
    %1313 = arith.select %1311, %1312, %1309 : vector<1x128xi1>, vector<1x128xf32>
    %1314 = arith.maximumf %1169, %1313 : vector<1x128xf32>
    %cst_909 = arith.constant 0.000000e+00 : f32
    %1315 = vector.broadcast %cst_909 : f32 to vector<12x128xf32>
    %c0_910 = arith.constant 0 : index
    %c0_911 = arith.constant 0 : index
    %c0_912 = arith.constant 0 : index
    %1316 = vector.load %arg4[%c0_910, %c0_911, %c0_912] : memref<16x12x128xf32, #tpu.memory_space<vmem>>, vector<1x12x128xf32>
    %1317 = vector.shape_cast %1316 : vector<1x12x128xf32> to vector<12x128xf32>
    %c0_913 = arith.constant 0 : index
    %c9_914 = arith.constant 9 : index
    %c0_915 = arith.constant 0 : index
    %1318 = vector.load %arg3[%c0_913, %c9_914, %c0_915] : memref<16x10x128xf32, #tpu.memory_space<vmem>>, vector<1x1x128xf32>
    %1319 = vector.shape_cast %1318 : vector<1x1x128xf32> to vector<1x128xf32>
    %1320 = vector.broadcast %1319 : vector<1x128xf32> to vector<12x128xf32>
    %1321 = arith.subf %1317, %1320 : vector<12x128xf32>
    %1322 = arith.mulf %1321, %1321 : vector<12x128xf32>
    %1323 = arith.addf %1315, %1322 : vector<12x128xf32>
    %c1_916 = arith.constant 1 : index
    %c0_917 = arith.constant 0 : index
    %c0_918 = arith.constant 0 : index
    %1324 = vector.load %arg4[%c1_916, %c0_917, %c0_918] : memref<16x12x128xf32, #tpu.memory_space<vmem>>, vector<1x12x128xf32>
    %1325 = vector.shape_cast %1324 : vector<1x12x128xf32> to vector<12x128xf32>
    %c1_919 = arith.constant 1 : index
    %c9_920 = arith.constant 9 : index
    %c0_921 = arith.constant 0 : index
    %1326 = vector.load %arg3[%c1_919, %c9_920, %c0_921] : memref<16x10x128xf32, #tpu.memory_space<vmem>>, vector<1x1x128xf32>
    %1327 = vector.shape_cast %1326 : vector<1x1x128xf32> to vector<1x128xf32>
    %1328 = vector.broadcast %1327 : vector<1x128xf32> to vector<12x128xf32>
    %1329 = arith.subf %1325, %1328 : vector<12x128xf32>
    %1330 = arith.mulf %1329, %1329 : vector<12x128xf32>
    %1331 = arith.addf %1323, %1330 : vector<12x128xf32>
    %c2_922 = arith.constant 2 : index
    %c0_923 = arith.constant 0 : index
    %c0_924 = arith.constant 0 : index
    %1332 = vector.load %arg4[%c2_922, %c0_923, %c0_924] : memref<16x12x128xf32, #tpu.memory_space<vmem>>, vector<1x12x128xf32>
    %1333 = vector.shape_cast %1332 : vector<1x12x128xf32> to vector<12x128xf32>
    %c2_925 = arith.constant 2 : index
    %c9_926 = arith.constant 9 : index
    %c0_927 = arith.constant 0 : index
    %1334 = vector.load %arg3[%c2_925, %c9_926, %c0_927] : memref<16x10x128xf32, #tpu.memory_space<vmem>>, vector<1x1x128xf32>
    %1335 = vector.shape_cast %1334 : vector<1x1x128xf32> to vector<1x128xf32>
    %1336 = vector.broadcast %1335 : vector<1x128xf32> to vector<12x128xf32>
    %1337 = arith.subf %1333, %1336 : vector<12x128xf32>
    %1338 = arith.mulf %1337, %1337 : vector<12x128xf32>
    %1339 = arith.addf %1331, %1338 : vector<12x128xf32>
    %c3_928 = arith.constant 3 : index
    %c0_929 = arith.constant 0 : index
    %c0_930 = arith.constant 0 : index
    %1340 = vector.load %arg4[%c3_928, %c0_929, %c0_930] : memref<16x12x128xf32, #tpu.memory_space<vmem>>, vector<1x12x128xf32>
    %1341 = vector.shape_cast %1340 : vector<1x12x128xf32> to vector<12x128xf32>
    %c3_931 = arith.constant 3 : index
    %c9_932 = arith.constant 9 : index
    %c0_933 = arith.constant 0 : index
    %1342 = vector.load %arg3[%c3_931, %c9_932, %c0_933] : memref<16x10x128xf32, #tpu.memory_space<vmem>>, vector<1x1x128xf32>
    %1343 = vector.shape_cast %1342 : vector<1x1x128xf32> to vector<1x128xf32>
    %1344 = vector.broadcast %1343 : vector<1x128xf32> to vector<12x128xf32>
    %1345 = arith.subf %1341, %1344 : vector<12x128xf32>
    %1346 = arith.mulf %1345, %1345 : vector<12x128xf32>
    %1347 = arith.addf %1339, %1346 : vector<12x128xf32>
    %c4_934 = arith.constant 4 : index
    %c0_935 = arith.constant 0 : index
    %c0_936 = arith.constant 0 : index
    %1348 = vector.load %arg4[%c4_934, %c0_935, %c0_936] : memref<16x12x128xf32, #tpu.memory_space<vmem>>, vector<1x12x128xf32>
    %1349 = vector.shape_cast %1348 : vector<1x12x128xf32> to vector<12x128xf32>
    %c4_937 = arith.constant 4 : index
    %c9_938 = arith.constant 9 : index
    %c0_939 = arith.constant 0 : index
    %1350 = vector.load %arg3[%c4_937, %c9_938, %c0_939] : memref<16x10x128xf32, #tpu.memory_space<vmem>>, vector<1x1x128xf32>
    %1351 = vector.shape_cast %1350 : vector<1x1x128xf32> to vector<1x128xf32>
    %1352 = vector.broadcast %1351 : vector<1x128xf32> to vector<12x128xf32>
    %1353 = arith.subf %1349, %1352 : vector<12x128xf32>
    %1354 = arith.mulf %1353, %1353 : vector<12x128xf32>
    %1355 = arith.addf %1347, %1354 : vector<12x128xf32>
    %c5_940 = arith.constant 5 : index
    %c0_941 = arith.constant 0 : index
    %c0_942 = arith.constant 0 : index
    %1356 = vector.load %arg4[%c5_940, %c0_941, %c0_942] : memref<16x12x128xf32, #tpu.memory_space<vmem>>, vector<1x12x128xf32>
    %1357 = vector.shape_cast %1356 : vector<1x12x128xf32> to vector<12x128xf32>
    %c5_943 = arith.constant 5 : index
    %c9_944 = arith.constant 9 : index
    %c0_945 = arith.constant 0 : index
    %1358 = vector.load %arg3[%c5_943, %c9_944, %c0_945] : memref<16x10x128xf32, #tpu.memory_space<vmem>>, vector<1x1x128xf32>
    %1359 = vector.shape_cast %1358 : vector<1x1x128xf32> to vector<1x128xf32>
    %1360 = vector.broadcast %1359 : vector<1x128xf32> to vector<12x128xf32>
    %1361 = arith.subf %1357, %1360 : vector<12x128xf32>
    %1362 = arith.mulf %1361, %1361 : vector<12x128xf32>
    %1363 = arith.addf %1355, %1362 : vector<12x128xf32>
    %c6_946 = arith.constant 6 : index
    %c0_947 = arith.constant 0 : index
    %c0_948 = arith.constant 0 : index
    %1364 = vector.load %arg4[%c6_946, %c0_947, %c0_948] : memref<16x12x128xf32, #tpu.memory_space<vmem>>, vector<1x12x128xf32>
    %1365 = vector.shape_cast %1364 : vector<1x12x128xf32> to vector<12x128xf32>
    %c6_949 = arith.constant 6 : index
    %c9_950 = arith.constant 9 : index
    %c0_951 = arith.constant 0 : index
    %1366 = vector.load %arg3[%c6_949, %c9_950, %c0_951] : memref<16x10x128xf32, #tpu.memory_space<vmem>>, vector<1x1x128xf32>
    %1367 = vector.shape_cast %1366 : vector<1x1x128xf32> to vector<1x128xf32>
    %1368 = vector.broadcast %1367 : vector<1x128xf32> to vector<12x128xf32>
    %1369 = arith.subf %1365, %1368 : vector<12x128xf32>
    %1370 = arith.mulf %1369, %1369 : vector<12x128xf32>
    %1371 = arith.addf %1363, %1370 : vector<12x128xf32>
    %c7_952 = arith.constant 7 : index
    %c0_953 = arith.constant 0 : index
    %c0_954 = arith.constant 0 : index
    %1372 = vector.load %arg4[%c7_952, %c0_953, %c0_954] : memref<16x12x128xf32, #tpu.memory_space<vmem>>, vector<1x12x128xf32>
    %1373 = vector.shape_cast %1372 : vector<1x12x128xf32> to vector<12x128xf32>
    %c7_955 = arith.constant 7 : index
    %c9_956 = arith.constant 9 : index
    %c0_957 = arith.constant 0 : index
    %1374 = vector.load %arg3[%c7_955, %c9_956, %c0_957] : memref<16x10x128xf32, #tpu.memory_space<vmem>>, vector<1x1x128xf32>
    %1375 = vector.shape_cast %1374 : vector<1x1x128xf32> to vector<1x128xf32>
    %1376 = vector.broadcast %1375 : vector<1x128xf32> to vector<12x128xf32>
    %1377 = arith.subf %1373, %1376 : vector<12x128xf32>
    %1378 = arith.mulf %1377, %1377 : vector<12x128xf32>
    %1379 = arith.addf %1371, %1378 : vector<12x128xf32>
    %c8_958 = arith.constant 8 : index
    %c0_959 = arith.constant 0 : index
    %c0_960 = arith.constant 0 : index
    %1380 = vector.load %arg4[%c8_958, %c0_959, %c0_960] : memref<16x12x128xf32, #tpu.memory_space<vmem>>, vector<1x12x128xf32>
    %1381 = vector.shape_cast %1380 : vector<1x12x128xf32> to vector<12x128xf32>
    %c8_961 = arith.constant 8 : index
    %c9_962 = arith.constant 9 : index
    %c0_963 = arith.constant 0 : index
    %1382 = vector.load %arg3[%c8_961, %c9_962, %c0_963] : memref<16x10x128xf32, #tpu.memory_space<vmem>>, vector<1x1x128xf32>
    %1383 = vector.shape_cast %1382 : vector<1x1x128xf32> to vector<1x128xf32>
    %1384 = vector.broadcast %1383 : vector<1x128xf32> to vector<12x128xf32>
    %1385 = arith.subf %1381, %1384 : vector<12x128xf32>
    %1386 = arith.mulf %1385, %1385 : vector<12x128xf32>
    %1387 = arith.addf %1379, %1386 : vector<12x128xf32>
    %c9_964 = arith.constant 9 : index
    %c0_965 = arith.constant 0 : index
    %c0_966 = arith.constant 0 : index
    %1388 = vector.load %arg4[%c9_964, %c0_965, %c0_966] : memref<16x12x128xf32, #tpu.memory_space<vmem>>, vector<1x12x128xf32>
    %1389 = vector.shape_cast %1388 : vector<1x12x128xf32> to vector<12x128xf32>
    %c9_967 = arith.constant 9 : index
    %c9_968 = arith.constant 9 : index
    %c0_969 = arith.constant 0 : index
    %1390 = vector.load %arg3[%c9_967, %c9_968, %c0_969] : memref<16x10x128xf32, #tpu.memory_space<vmem>>, vector<1x1x128xf32>
    %1391 = vector.shape_cast %1390 : vector<1x1x128xf32> to vector<1x128xf32>
    %1392 = vector.broadcast %1391 : vector<1x128xf32> to vector<12x128xf32>
    %1393 = arith.subf %1389, %1392 : vector<12x128xf32>
    %1394 = arith.mulf %1393, %1393 : vector<12x128xf32>
    %1395 = arith.addf %1387, %1394 : vector<12x128xf32>
    %c10_970 = arith.constant 10 : index
    %c0_971 = arith.constant 0 : index
    %c0_972 = arith.constant 0 : index
    %1396 = vector.load %arg4[%c10_970, %c0_971, %c0_972] : memref<16x12x128xf32, #tpu.memory_space<vmem>>, vector<1x12x128xf32>
    %1397 = vector.shape_cast %1396 : vector<1x12x128xf32> to vector<12x128xf32>
    %c10_973 = arith.constant 10 : index
    %c9_974 = arith.constant 9 : index
    %c0_975 = arith.constant 0 : index
    %1398 = vector.load %arg3[%c10_973, %c9_974, %c0_975] : memref<16x10x128xf32, #tpu.memory_space<vmem>>, vector<1x1x128xf32>
    %1399 = vector.shape_cast %1398 : vector<1x1x128xf32> to vector<1x128xf32>
    %1400 = vector.broadcast %1399 : vector<1x128xf32> to vector<12x128xf32>
    %1401 = arith.subf %1397, %1400 : vector<12x128xf32>
    %1402 = arith.mulf %1401, %1401 : vector<12x128xf32>
    %1403 = arith.addf %1395, %1402 : vector<12x128xf32>
    %c11_976 = arith.constant 11 : index
    %c0_977 = arith.constant 0 : index
    %c0_978 = arith.constant 0 : index
    %1404 = vector.load %arg4[%c11_976, %c0_977, %c0_978] : memref<16x12x128xf32, #tpu.memory_space<vmem>>, vector<1x12x128xf32>
    %1405 = vector.shape_cast %1404 : vector<1x12x128xf32> to vector<12x128xf32>
    %c11_979 = arith.constant 11 : index
    %c9_980 = arith.constant 9 : index
    %c0_981 = arith.constant 0 : index
    %1406 = vector.load %arg3[%c11_979, %c9_980, %c0_981] : memref<16x10x128xf32, #tpu.memory_space<vmem>>, vector<1x1x128xf32>
    %1407 = vector.shape_cast %1406 : vector<1x1x128xf32> to vector<1x128xf32>
    %1408 = vector.broadcast %1407 : vector<1x128xf32> to vector<12x128xf32>
    %1409 = arith.subf %1405, %1408 : vector<12x128xf32>
    %1410 = arith.mulf %1409, %1409 : vector<12x128xf32>
    %1411 = arith.addf %1403, %1410 : vector<12x128xf32>
    %c12_982 = arith.constant 12 : index
    %c0_983 = arith.constant 0 : index
    %c0_984 = arith.constant 0 : index
    %1412 = vector.load %arg4[%c12_982, %c0_983, %c0_984] : memref<16x12x128xf32, #tpu.memory_space<vmem>>, vector<1x12x128xf32>
    %1413 = vector.shape_cast %1412 : vector<1x12x128xf32> to vector<12x128xf32>
    %c12_985 = arith.constant 12 : index
    %c9_986 = arith.constant 9 : index
    %c0_987 = arith.constant 0 : index
    %1414 = vector.load %arg3[%c12_985, %c9_986, %c0_987] : memref<16x10x128xf32, #tpu.memory_space<vmem>>, vector<1x1x128xf32>
    %1415 = vector.shape_cast %1414 : vector<1x1x128xf32> to vector<1x128xf32>
    %1416 = vector.broadcast %1415 : vector<1x128xf32> to vector<12x128xf32>
    %1417 = arith.subf %1413, %1416 : vector<12x128xf32>
    %1418 = arith.mulf %1417, %1417 : vector<12x128xf32>
    %1419 = arith.addf %1411, %1418 : vector<12x128xf32>
    %c13_988 = arith.constant 13 : index
    %c0_989 = arith.constant 0 : index
    %c0_990 = arith.constant 0 : index
    %1420 = vector.load %arg4[%c13_988, %c0_989, %c0_990] : memref<16x12x128xf32, #tpu.memory_space<vmem>>, vector<1x12x128xf32>
    %1421 = vector.shape_cast %1420 : vector<1x12x128xf32> to vector<12x128xf32>
    %c13_991 = arith.constant 13 : index
    %c9_992 = arith.constant 9 : index
    %c0_993 = arith.constant 0 : index
    %1422 = vector.load %arg3[%c13_991, %c9_992, %c0_993] : memref<16x10x128xf32, #tpu.memory_space<vmem>>, vector<1x1x128xf32>
    %1423 = vector.shape_cast %1422 : vector<1x1x128xf32> to vector<1x128xf32>
    %1424 = vector.broadcast %1423 : vector<1x128xf32> to vector<12x128xf32>
    %1425 = arith.subf %1421, %1424 : vector<12x128xf32>
    %1426 = arith.mulf %1425, %1425 : vector<12x128xf32>
    %1427 = arith.addf %1419, %1426 : vector<12x128xf32>
    %c14_994 = arith.constant 14 : index
    %c0_995 = arith.constant 0 : index
    %c0_996 = arith.constant 0 : index
    %1428 = vector.load %arg4[%c14_994, %c0_995, %c0_996] : memref<16x12x128xf32, #tpu.memory_space<vmem>>, vector<1x12x128xf32>
    %1429 = vector.shape_cast %1428 : vector<1x12x128xf32> to vector<12x128xf32>
    %c14_997 = arith.constant 14 : index
    %c9_998 = arith.constant 9 : index
    %c0_999 = arith.constant 0 : index
    %1430 = vector.load %arg3[%c14_997, %c9_998, %c0_999] : memref<16x10x128xf32, #tpu.memory_space<vmem>>, vector<1x1x128xf32>
    %1431 = vector.shape_cast %1430 : vector<1x1x128xf32> to vector<1x128xf32>
    %1432 = vector.broadcast %1431 : vector<1x128xf32> to vector<12x128xf32>
    %1433 = arith.subf %1429, %1432 : vector<12x128xf32>
    %1434 = arith.mulf %1433, %1433 : vector<12x128xf32>
    %1435 = arith.addf %1427, %1434 : vector<12x128xf32>
    %c15_1000 = arith.constant 15 : index
    %c0_1001 = arith.constant 0 : index
    %c0_1002 = arith.constant 0 : index
    %1436 = vector.load %arg4[%c15_1000, %c0_1001, %c0_1002] : memref<16x12x128xf32, #tpu.memory_space<vmem>>, vector<1x12x128xf32>
    %1437 = vector.shape_cast %1436 : vector<1x12x128xf32> to vector<12x128xf32>
    %c15_1003 = arith.constant 15 : index
    %c9_1004 = arith.constant 9 : index
    %c0_1005 = arith.constant 0 : index
    %1438 = vector.load %arg3[%c15_1003, %c9_1004, %c0_1005] : memref<16x10x128xf32, #tpu.memory_space<vmem>>, vector<1x1x128xf32>
    %1439 = vector.shape_cast %1438 : vector<1x1x128xf32> to vector<1x128xf32>
    %1440 = vector.broadcast %1439 : vector<1x128xf32> to vector<12x128xf32>
    %1441 = arith.subf %1437, %1440 : vector<12x128xf32>
    %1442 = arith.mulf %1441, %1441 : vector<12x128xf32>
    %1443 = arith.addf %1435, %1442 : vector<12x128xf32>
    %c9_i32 = arith.constant 9 : i32
    %1444 = vector.broadcast %c9_i32 : i32 to vector<1x128xi32>
    %1445 = arith.cmpi sle, %0, %1444 : vector<1x128xi32>
    %cst_1006 = arith.constant 1.000000e+30 : f32
    %cst_1007 = arith.constant 0.000000e+00 : f32
    %1446 = vector.broadcast %cst_1006 : f32 to vector<1x128xf32>
    %1447 = vector.broadcast %cst_1007 : f32 to vector<1x128xf32>
    %1448 = arith.select %1445, %1446, %1447 : vector<1x128xi1>, vector<1x128xf32>
    %1449 = arith.addf %1443, %7 : vector<12x128xf32>
    %1450 = vector.broadcast %1448 : vector<1x128xf32> to vector<12x128xf32>
    %1451 = arith.addf %1449, %1450 : vector<12x128xf32>
    %1452 = arith.minimumf %1307, %1451 : vector<12x128xf32>
    %cst_1008 = arith.constant dense<0x7F800000> : vector<128xf32>
    %1453 = vector.multi_reduction <minimumf>, %1451, %cst_1008 [0] : vector<12x128xf32> to vector<128xf32>
    %1454 = vector.shape_cast %1453 : vector<128xf32> to vector<1x128xf32>
    %cst_1009 = arith.constant 5.000000e+29 : f32
    %1455 = vector.broadcast %cst_1009 : f32 to vector<1x128xf32>
    %1456 = arith.cmpf oge, %1454, %1455 : vector<1x128xf32>
    %cst_1010 = arith.constant 0.000000e+00 : f32
    %1457 = vector.broadcast %cst_1010 : f32 to vector<1x128xf32>
    %1458 = arith.select %1456, %1457, %1454 : vector<1x128xi1>, vector<1x128xf32>
    %1459 = arith.maximumf %1314, %1458 : vector<1x128xf32>
    %cst_1011 = arith.constant 5.000000e+29 : f32
    %1460 = vector.broadcast %cst_1011 : f32 to vector<12x128xf32>
    %1461 = arith.cmpf oge, %1452, %1460 : vector<12x128xf32>
    %cst_1012 = arith.constant 0.000000e+00 : f32
    %1462 = vector.broadcast %cst_1012 : f32 to vector<12x128xf32>
    %1463 = arith.select %1461, %1462, %1452 : vector<12x128xi1>, vector<12x128xf32>
    %cst_1013 = arith.constant dense<0xFF800000> : vector<128xf32>
    %1464 = vector.multi_reduction <maximumf>, %1463, %cst_1013 [0] : vector<12x128xf32> to vector<128xf32>
    %1465 = vector.shape_cast %1464 : vector<128xf32> to vector<1x128xf32>
    %1466 = arith.maximumf %1465, %1459 : vector<1x128xf32>
    %1467 = math.sqrt %1466 : vector<1x128xf32>
    %c0_1014 = arith.constant 0 : index
    %c0_1015 = arith.constant 0 : index
    %1468 = vector.load %arg5[%c0_1014, %c0_1015] : memref<1x128xf32, #tpu.memory_space<vmem>>, vector<1x128xf32>
    tpu.vector_store %arg5[%c0_1014, %c0_1015], %1467 {strides = array<i32>} : memref<1x128xf32, #tpu.memory_space<vmem>>, vector<1x128xf32>,
    return
  }
  func.func @transform_0(%arg0: i32) -> (i32, i32) {
    %c0_i32 = arith.constant 0 : i32
    %c0_i32_0 = arith.constant 0 : i32
    return %c0_i32, %arg0 : i32, i32
  }
  func.func @transform_1(%arg0: i32) -> (i32, i32) {
    %c0_i32 = arith.constant 0 : i32
    %c0_i32_0 = arith.constant 0 : i32
    return %c0_i32, %arg0 : i32, i32
  }
  func.func @transform_2(%arg0: i32) -> (i32, i32, i32) {
    %c0_i32 = arith.constant 0 : i32
    %c0_i32_0 = arith.constant 0 : i32
    %c0_i32_1 = arith.constant 0 : i32
    return %c0_i32, %c0_i32_0, %arg0 : i32, i32, i32
  }
  func.func @transform_3(%arg0: i32) -> (i32, i32, i32) {
    %c0_i32 = arith.constant 0 : i32
    %c0_i32_0 = arith.constant 0 : i32
    %c0_i32_1 = arith.constant 0 : i32
    return %c0_i32, %c0_i32_0, %arg0 : i32, i32, i32
  }
  func.func @transform_4(%arg0: i32) -> (i32, i32) {
    %c0_i32 = arith.constant 0 : i32
    %c0_i32_0 = arith.constant 0 : i32
    return %c0_i32, %arg0 : i32, i32
  }
}

</mosaic_0001>

<bundles_post_ra>
// kernel: hd_forward.1
= control target key start
LH: loop header
LB: loop body
LE: loop exit
PB: predicated region body
PF: predicated region fallthrough
CT: control target
= control target key end

     0   :  { %v19_v25 = vlaneseq  ;;  %vm282_vm3 = vcmask 1043456   ;;  %s4134_s2 = inlined_call_operand.vmem [shape: f32[16,10,128], index: 2, kind: input, shape index: {}]   ;;  %s4135_s3 = inlined_call_operand.vmem [shape: f32[16,12,128], index: 3, kind: input, shape index: {}]   ;;  %s4136_s1 = inlined_call_operand.vmem [shape: s32[1,128], index: 1, kind: input, shape index: {}]   ;;  %s4137_s0 = inlined_call_operand.vmem [shape: s32[1,128], index: 0, kind: input, shape index: {}]   ;;  %s4138_s4 = inlined_call_operand.vmem [shape: f32[1,128], index: 4, kind: output, shape index: {}]  }
   0x1   :  { %v2562_v0 = vld [vmem:[%s4135_s3] sm:$0xff]  ;;  %v2567_v1 = vld [vmem:[%s4135_s3 + $0x8] sm:$0xf]  ;;  %v2575_v3 = vld [vmem:[%s4135_s3 + $0x10] sm:$0xff] }
   0x2   :  { %v2129_v2 = vld [vmem:[%s4134_s2] ss:$0 sm:$0xff]  ;;  %v2582_v6 = vld [vmem:[%s4135_s3 + $0x18] sm:$0xf]  ;;  %v2133_v7 = vld [vmem:[%s4134_s2 + $0x10] ss:$0 sm:$0xff] }
   0x3   :  { %v37_v4 = vsub.f32 %v2562_v0, %v2129_v2  ;;  %v38_v5 = vsub.f32 %v2567_v1, %v2129_v2  ;;  %v2590_v8 = vld [vmem:[%s4135_s3 + $0x20] sm:$0xff]  ;;  %v52_v9 = vsub.f32 %v2575_v3, %v2133_v7  ;;  %v53_v10 = vsub.f32 %v2582_v6, %v2133_v7  ;;  %v2597_v11 = vld [vmem:[%s4135_s3 + $0x28] sm:$0xf]  ;;  %v2605_v13 = vld [vmem:[%s4135_s3 + $0x30] sm:$0xff] }
   0x4   :  { %4187 = vst [vmem:[#allocation2_spill] sm:$0xff] %v2590_v8  ;;  %4188 = vst [vmem:[#allocation3_spill] sm:$0xff] %v2597_v11  ;;  %v2137_v12 = vld [vmem:[%s4134_s2 + $0x20] ss:$0 sm:$0xff]  ;;  %v2611_v17 = vld [vmem:[%s4135_s3 + $0x38] sm:$0xf] }
   0x5   :  { %4189 = vst [vmem:[#allocation4_spill] sm:$0xff] %v2605_v13  ;;  %v39_v14 = vmul.f32 %v37_v4, %v37_v4  ;;  %v40_v15 = vmul.f32 %v38_v5, %v38_v5  ;;  %v67_v16 = vsub.f32 %v2590_v8, %v2137_v12  ;;  %4190 = vst [vmem:[#allocation5_spill] sm:$0xff] %v2611_v17  ;;  %v2141_v18 = vld [vmem:[%s4134_s2 + $0x30] ss:$0 sm:$0xff]  ;;  %v2620_v22 = vld [vmem:[%s4135_s3 + $0x40] sm:$0xff] }
   0x6   :  { %v54_v19 = vmul.f32 %v52_v9, %v52_v9  ;;  %v55_v20 = vmul.f32 %v53_v10, %v53_v10  ;;  %v68_v21 = vsub.f32 %v2597_v11, %v2137_v12  ;;  %v2625_v23 = vld [vmem:[%s4135_s3 + $0x48] sm:$0xf]  ;;  %v2145_v24 = vld [vmem:[%s4134_s2 + $0x40] ss:$0 sm:$0xff]  ;;  %v82_v27 = vsub.f32 %v2605_v13, %v2141_v18  ;;  %v2635_v29 = vld [vmem:[%s4135_s3 + $0x50] sm:$0xff] }
   0x7   :  { %v69_v26 = vmul.f32 %v67_v16, %v67_v16  ;;  %v83_v28 = vsub.f32 %v2611_v17, %v2141_v18  ;;  %v2640_v30 = vld [vmem:[%s4135_s3 + $0x58] sm:$0xf]  ;;  %v2645_v31 = vld [vmem:[%s4135_s3 + $0x60] sm:$0xff]  ;;  %v97_v35 = vsub.f32 %v2620_v22, %v2145_v24  ;;  %v2149_v36 = vld [vmem:[%s4134_s2 + $0x50] ss:$0 sm:$0xff]  ;;  %v98_v41 = vsub.f32 %v2625_v23, %v2145_v24 }
   0x8   :  { %v56_v32 = vadd.f32 %v54_v19, %v39_v14  ;;  %v57_v33 = vadd.f32 %v55_v20, %v40_v15  ;;  %v70_v34 = vmul.f32 %v68_v21, %v68_v21  ;;  %v2654_v37 = vld [vmem:[%s4135_s3 + $0x68] sm:$0xf]  ;;  %v2153_v38 = vld [vmem:[%s4134_s2 + $0x60] ss:$0 sm:$0xff]  ;;  %v84_v39 = vmul.f32 %v82_v27, %v82_v27  ;;  %v2664_v43 = vld [vmem:[%s4135_s3 + $0x70] sm:$0xff] }
   0x9   :  { %v85_v40 = vmul.f32 %v83_v28, %v83_v28  ;;  %v112_v42 = vsub.f32 %v2635_v29, %v2149_v36  ;;  %v2157_v44 = vld [vmem:[%s4134_s2 + $0x70] ss:$0 sm:$0xff]  ;;  %v99_v47 = vmul.f32 %v97_v35, %v97_v35  ;;  %v113_v48 = vsub.f32 %v2640_v30, %v2149_v36  ;;  %v2673_v49 = vld [vmem:[%s4135_s3 + $0x78] sm:$0xf]  ;;  %v2678_v50 = vld [vmem:[%s4135_s3 + $0x80] sm:$0xff] }
   0xa   :  { %v71_v45 = vadd.f32 %v69_v26, %v56_v32  ;;  %v72_v46 = vadd.f32 %v70_v34, %v57_v33  ;;  %v2161_v51 = vld [vmem:[%s4134_s2 + $0x80] ss:$0 sm:$0xff]  ;;  %v100_v52 = vmul.f32 %v98_v41, %v98_v41  ;;  %v127_v54 = vsub.f32 %v2645_v31, %v2153_v38  ;;  %v2688_v56 = vld [vmem:[%s4135_s3 + $0x88] sm:$0xf]  ;;  %v2694_v61 = vld [vmem:[%s4135_s3 + $0x90] sm:$0xff] }
   0xb   :  { %v114_v53 = vmul.f32 %v112_v42, %v112_v42  ;;  %v128_v55 = vsub.f32 %v2654_v37, %v2153_v38  ;;  %v115_v59 = vmul.f32 %v113_v48, %v113_v48  ;;  %v142_v60 = vsub.f32 %v2664_v43, %v2157_v44  ;;  %v2699_v62 = vld [vmem:[%s4135_s3 + $0x98] sm:$0xf]  ;;  %v2165_v63 = vld [vmem:[%s4134_s2 + $0x90] ss:$0 sm:$0xff]  ;;  %v2709_v7 = vld [vmem:[%s4136_s1] ss:$0 sm:$0xff] }
   0xc   :  { %v86_v57 = vadd.f32 %v84_v39, %v71_v45  ;;  %v87_v58 = vadd.f32 %v85_v40, %v72_v46  ;;  %v129_v2 = vmul.f32 %v127_v54, %v127_v54  ;;  %v143_v4 = vsub.f32 %v2673_v49, %v2157_v44  ;;  %v2719_v19 = vld [vmem:[%s4135_s3 + $0xa0] sm:$0xff]  ;;  %v2724_v20 = vld [vmem:[%s4135_s3 + $0xa8] sm:$0xf]  ;;  %v2732_v28 = vld [vmem:[%s4135_s3 + $0xb0] sm:$0xff] }
   0xd   :  { %v157_v5 = vsub.f32 %v2678_v50, %v2161_v51  ;;  %v130_v12 = vmul.f32 %v128_v55, %v128_v55  ;;  %v158_v14 = vsub.f32 %v2688_v56, %v2161_v51  ;;  %v2712_v15 = vshrl.u32 %v19_v25, 7  ;;  %v2169_v21 = vld [vmem:[%s4134_s2 + $0xa0] ss:$0 sm:$0xff]  ;;  %v2737_v32 = vld [vmem:[%s4135_s3 + $0xb8] sm:$0xf]  ;;  %v2762_v45 = vld [vmem:[%s4135_s3 + $0xd0] sm:$0xff] }
   0xe   :  { %v101_v9 = vadd.f32 %v99_v47, %v86_v57  ;;  %v102_v10 = vadd.f32 %v100_v52, %v87_v58  ;;  %v172_v16 = vsub.f32 %v2694_v61, %v2165_v63  ;;  %v173_v18 = vsub.f32 %v2699_v62, %v2165_v63  ;;  %v2173_v33 = vld [vmem:[%s4134_s2 + $0xb0] ss:$0 sm:$0xff]  ;;  %v2747_v36 = vld [vmem:[%s4135_s3 + $0xc0] sm:$0xff]  ;;  %v2752_v38 = vld [vmem:[%s4135_s3 + $0xc8] sm:$0xf] }
   0xf   :  { %v144_v26 = vmul.f32 %v142_v60, %v142_v60  ;;  %v145_v27 = vmul.f32 %v143_v4, %v143_v4  ;;  %vm26_vm0 = vcmp.ge.s32.totalorder %v2712_v15, %v2709_v7  ;;  %v159_v34 = vmul.f32 %v157_v5, %v157_v5  ;;  %v2177_v39 = vld [vmem:[%s4134_s2 + $0xc0] ss:$0 sm:$0xff]  ;;  %v2181_v46 = vld [vmem:[%s4134_s2 + $0xd0] ss:$0 sm:$0xff]  ;;  %v2774_v58 = vld [vmem:[%s4135_s3 + $0xd8] sm:$0xf] }
  0x10   :  { %v116_v24 = vadd.f32 %v114_v53, %v101_v9  ;;  %v117_v25 = vadd.f32 %v115_v59, %v102_v10  ;;  %v160_v35 = vmul.f32 %v158_v14, %v158_v14  ;;  %v187_v42 = vsub.f32 %v2719_v19, %v2169_v21  ;;  %v2783_v63 = vld [vmem:[%s4135_s3 + $0xe0] sm:$0xff]  ;;  %v2788_v10 = vld [vmem:[%s4135_s3 + $0xe8] sm:$0xf] }
  0x11   :  { %v188_v44 = vsub.f32 %v2724_v20, %v2169_v21  ;;  %v174_v47 = vmul.f32 %v172_v16, %v172_v16  ;;  %v175_v48 = vmul.f32 %v173_v18, %v173_v18  ;;  %v202_v51 = vsub.f32 %v2732_v28, %v2173_v33  ;;  %v2190_v14 = vld [vmem:[%s4134_s2 + $0x1] ss:$0 sm:$0xff] }
  0x12   :  { %v131_v40 = vadd.f32 %v129_v2, %v116_v24  ;;  %v132_v41 = vadd.f32 %v130_v12, %v117_v25  ;;  %v203_v52 = vsub.f32 %v2737_v32, %v2173_v33  ;;  %v217_v55 = vsub.f32 %v2747_v36, %v2177_v39  ;;  %v2185_v12 = vld [vmem:[%s4134_s2 + $0xe0] ss:$0 sm:$0xff] }
  0x13   :  { %v218_v57 = vsub.f32 %v2752_v38, %v2177_v39  ;;  %v2777_v59 = vadd.s32 8, %v2712_v15  ;;  %v232_v60 = vsub.f32 %v2762_v45, %v2181_v46  ;;  %v189_v5 = vmul.f32 %v187_v42, %v187_v42  ;;  %v2194_v39 = vld [vmem:[%s4134_s2 + $0x21] ss:$0 sm:$0xff] }
  0x14   :  { %v146_v53 = vadd.f32 %v144_v26, %v131_v40  ;;  %v147_v54 = vadd.f32 %v145_v27, %v132_v41  ;;  %v190_v9 = vmul.f32 %v188_v44, %v188_v44  ;;  %v4139_v16 = vmov 0.0   ;;  %v2192_v26 = vld [vmem:[%s4134_s2 + $0x11] ss:$0 sm:$0xff] }
  0x15   :  { %v2800_v18 = vsel %vm26_vm0, 1e+30, %v4139_v16  ;;  %v204_v21 = vmul.f32 %v202_v51, %v202_v51  ;;  %v205_v24 = vmul.f32 %v203_v52, %v203_v52  ;;  %v233_v25 = vsub.f32 %v2774_v58, %v2181_v46 }
  0x16   :  { %v161_v2 = vadd.f32 %v159_v34, %v146_v53  ;;  %v162_v4 = vadd.f32 %v160_v35, %v147_v54  ;;  %v219_v34 = vmul.f32 %v217_v55, %v217_v55  ;;  %v220_v35 = vmul.f32 %v218_v57, %v218_v57 }
  0x17   :  { %v234_v40 = vmul.f32 %v232_v60, %v232_v60  ;;  %v247_v41 = vsub.f32 %v2783_v63, %v2185_v12  ;;  %v248_v42 = vsub.f32 %v2788_v10, %v2185_v12  ;;  %v299_v44 = vsub.f32 %v2562_v0, %v2190_v14  ;;  %v2822_v60 = vld [vmem:[%s4137_s0] sm:$0x1]  ;;  %v2198_v12 = vld [vmem:[%s4134_s2 + $0x41] ss:$0 sm:$0xff] }
  0x18   :  { %v176_v27 = vadd.f32 %v174_v47, %v161_v2  ;;  %v177_v33 = vadd.f32 %v175_v48, %v162_v4  ;;  %v300_v52 = vsub.f32 %v2567_v1, %v2190_v14  ;;  %v310_v47 = vsub.f32 %v2575_v3, %v2192_v26  ;;  %v2196_v48 = vld [vmem:[%s4134_s2 + $0x31] ss:$0 sm:$0xff] }
  0x19   :  { %v235_v53 = vmul.f32 %v233_v25, %v233_v25  ;;  %v301_v54 = vmul.f32 %v299_v44, %v299_v44  ;;  %v311_v55 = vsub.f32 %v2582_v6, %v2192_v26  ;;  %v321_v57 = vsub.f32 %v2590_v8, %v2194_v39  ;;  %v2830_v14 = vld [vmem:[%s4135_s3 + $0xf0] sm:$0xff] }
  0x1a   :  { %v191_v46 = vadd.f32 %v189_v5, %v176_v27  ;;  %v192_v51 = vadd.f32 %v190_v9, %v177_v33  ;;  %v302_v5 = vmul.f32 %v300_v52, %v300_v52  ;;  %v312_v9 = vmul.f32 %v310_v47, %v310_v47  ;;  %v2189_v25 = vld [vmem:[%s4134_s2 + $0xf0] ss:$0 sm:$0xff]  ;;  %v2200_v52 = vld [vmem:[%s4134_s2 + $0x51] ss:$0 sm:$0xff]  ;;  %v2844_v47 = vld [vmem:[%s4135_s3 + $0xf8] sm:$0xf] }
  0x1b   :  { %v313_v26 = vmul.f32 %v311_v55, %v311_v55  ;;  %v322_v27 = vsub.f32 %v2597_v11, %v2194_v39  ;;  %v249_v44 = vmul.f32 %v247_v41, %v247_v41  ;;  %4191 = vst [vmem:[#allocation6_spill] sm:$0xff] %v2844_v47  ;;  %vm268_vm1 = vcmp.le.s32.totalorder %v2822_v60, 0 }
  0x1c   :  { %v206_v2 = vadd.f32 %v204_v21, %v191_v46  ;;  %v207_v4 = vadd.f32 %v205_v24, %v192_v51  ;;  %v323_v21 = vmul.f32 %v321_v57, %v321_v57  ;;  %v332_v24 = vsub.f32 %v2605_v13, %v2196_v48 }
  0x1d   :  { %v314_v46 = vadd.f32 %v312_v9, %v301_v54  ;;  %v333_v51 = vsub.f32 %v2611_v17, %v2196_v48  ;;  %v315_v39 = vadd.f32 %v313_v26, %v302_v5  ;;  %v324_v55 = vmul.f32 %v322_v27, %v322_v27  ;;  %v2202_v9 = vld [vmem:[%s4134_s2 + $0x61] ss:$0 sm:$0xff] }
  0x1e   :  { %v221_v33 = vadd.f32 %v219_v34, %v206_v2  ;;  %v334_v57 = vmul.f32 %v332_v24, %v332_v24  ;;  %v343_v34 = vsub.f32 %v2620_v22, %v2198_v12  ;;  %v222_v41 = vadd.f32 %v220_v35, %v207_v4  ;;  %v2204_v4 = vld [vmem:[%s4134_s2 + $0x71] ss:$0 sm:$0xff] }
  0x1f   :  { %v262_v54 = vsub.f32 %v2830_v14, %v2189_v25  ;;  %v325_v48 = vadd.f32 %v323_v21, %v314_v46  ;;  %v335_v2 = vmul.f32 %v333_v51, %v333_v51  ;;  %v326_v16 = vadd.f32 %v324_v55, %v315_v39 }
  0x20   :  { %v344_v17 = vsub.f32 %v2625_v23, %v2198_v12  ;;  %v345_v13 = vmul.f32 %v343_v34, %v343_v34  ;;  %v354_v11 = vsub.f32 %v2635_v29, %v2200_v52  ;;  %v236_v5 = vadd.f32 %v234_v40, %v221_v33  ;;  %v2206_v40 = vld [vmem:[%s4134_s2 + $0x81] ss:$0 sm:$0xff] }
  0x21   :  { %v263_v26 = vsub.f32 %v2844_v47, %v2189_v25  ;;  %v336_v27 = vadd.f32 %v334_v57, %v325_v48  ;;  %v355_v35 = vsub.f32 %v2640_v30, %v2200_v52  ;;  %v337_v21 = vadd.f32 %v335_v2, %v326_v16 }
  0x22   :  { %v346_v24 = vmul.f32 %v344_v17, %v344_v17  ;;  %v356_v46 = vmul.f32 %v354_v11, %v354_v11  ;;  %v365_v51 = vsub.f32 %v2645_v31, %v2202_v9  ;;  %v237_v39 = vadd.f32 %v235_v53, %v222_v41 }
  0x23   :  { %v250_v12 = vmul.f32 %v248_v42, %v248_v42  ;;  %v347_v55 = vadd.f32 %v345_v13, %v336_v27  ;;  %v357_v34 = vmul.f32 %v355_v35, %v355_v35  ;;  %v366_v33 = vsub.f32 %v2654_v37, %v2202_v9  ;;  %v2208_v13 = vld [vmem:[%s4134_s2 + $0x91] ss:$0 sm:$0xff] }
  0x24   :  { %v348_v25 = vadd.f32 %v346_v24, %v337_v21  ;;  %v367_v52 = vmul.f32 %v365_v51, %v365_v51  ;;  %v376_v57 = vsub.f32 %v2664_v43, %v2204_v4  ;;  %v251_v48 = vadd.f32 %v249_v44, %v236_v5 }
  0x25   :  { %v264_v16 = vmul.f32 %v262_v54, %v262_v54  ;;  %v358_v17 = vadd.f32 %v356_v46, %v347_v55  ;;  %v377_v11 = vsub.f32 %v2673_v49, %v2204_v4  ;;  %v368_v53 = vmul.f32 %v366_v33, %v366_v33  ;;  %v2210_v4 = vld [vmem:[%s4134_s2 + $0xa1] ss:$0 sm:$0xff] }
  0x26   :  { %v359_v42 = vadd.f32 %v357_v34, %v348_v25  ;;  %v378_v41 = vmul.f32 %v376_v57, %v376_v57  ;;  %v387_v2 = vsub.f32 %v2678_v50, %v2206_v40  ;;  %v252_v27 = vadd.f32 %v250_v12, %v237_v39  ;;  %v2212_v12 = vld [vmem:[%s4134_s2 + $0xb1] ss:$0 sm:$0xff] }
  0x27   :  { %v265_v35 = vmul.f32 %v263_v26, %v263_v26  ;;  %v369_v9 = vadd.f32 %v367_v52, %v358_v17  ;;  %v379_v21 = vmul.f32 %v377_v11, %v377_v11  ;;  %v388_v44 = vsub.f32 %v2688_v56, %v2206_v40 }
  0x28   :  { %v370_v24 = vadd.f32 %v368_v53, %v359_v42  ;;  %v389_v54 = vmul.f32 %v387_v2, %v387_v2  ;;  %v398_v5 = vsub.f32 %v2694_v61, %v2208_v13  ;;  %vm27_vm2 = vcmp.ge.s32.totalorder %v2777_v59, %v2709_v7 }
  0x29   :  { %v4192_v46 = vmov 0.0   ;;  %v2881_v26 = vsub.s32 0, %v2712_v15  ;;  %v380_v39 = vadd.f32 %v378_v41, %v369_v9  ;;  %v266_v55 = vadd.f32 %v264_v16, %v251_v48  ;;  %v2214_v15 = vld [vmem:[%s4134_s2 + $0xc1] ss:$0 sm:$0xff] }
  0x2a   :  { %v269_v51 = vsel %vm268_vm1, 1e+30, %v4192_v46  ;;  %v381_v34 = vadd.f32 %v379_v21, %v370_v24  ;;  %v390_v40 = vmul.f32 %v388_v44, %v388_v44  ;;  %v399_v25 = vsub.f32 %v2699_v62, %v2208_v13 }
  0x2b   :  { %v391_v33 = vadd.f32 %v389_v54, %v380_v39  ;;  %v400_v52 = vmul.f32 %v398_v5, %v398_v5  ;;  %v409_v57 = vsub.f32 %v2719_v19, %v2210_v4  ;;  %v410_v17 = vsub.f32 %v2724_v20, %v2210_v4 }
  0x2c   :  { %v267_v11 = vadd.f32 %v265_v35, %v252_v27  ;;  %v392_v42 = vadd.f32 %v390_v40, %v381_v34  ;;  %v401_v53 = vmul.f32 %v399_v25, %v399_v25  ;;  %v420_v41 = vsub.f32 %v2732_v28, %v2212_v12  ;;  %v2216_v27 = vld [vmem:[%s4134_s2 + $0xd1] ss:$0 sm:$0xff]  ;;  %v2218_v40 = vld [vmem:[%s4134_s2 + $0xe1] ss:$0 sm:$0xff] }
  0x2d   :  { %v402_v48 = vadd.f32 %v400_v52, %v391_v33  ;;  %v411_v16 = vmul.f32 %v409_v57, %v409_v57  ;;  %v412_v2 = vmul.f32 %v410_v17, %v410_v17  ;;  %v421_v13 = vsub.f32 %v2737_v32, %v2212_v12 }
  0x2e   :  { %v2898_v9 = vsel %vm27_vm2, 1e+30, %v4192_v46  ;;  %v403_v21 = vadd.f32 %v401_v53, %v392_v42  ;;  %v422_v24 = vmul.f32 %v420_v41, %v420_v41  ;;  %v431_v44 = vsub.f32 %v2747_v36, %v2214_v15 }
  0x2f   :  { %v413_v35 = vadd.f32 %v411_v16, %v402_v48  ;;  %v423_v54 = vmul.f32 %v421_v13, %v421_v13  ;;  %v432_v5 = vsub.f32 %v2752_v38, %v2214_v15  ;;  %v276_v4 = vrot.slane %v269_v51, %v2881_v26  ;;  %v2221_v51 = vld [vmem:[%s4134_s2 + $0x2] ss:$0 sm:$0xff]  ;;  %v2220_v15 = vld [vmem:[%s4134_s2 + $0xf1] ss:$0 sm:$0xff] }
  0x30   :  { %v414_v39 = vadd.f32 %v412_v2, %v403_v21  ;;  %v270_v12 = vadd.f32 %v266_v55, %v2800_v18  ;;  %v271_v7 = vadd.f32 %v267_v11, %v2898_v9  ;;  %v443_v34 = vsub.f32 %v2774_v58, %v2216_v27  ;;  %v2223_v11 = vld [vmem:[%s4134_s2 + $0x12] ss:$0 sm:$0xff]  ;;  %v2225_v48 = vld [vmem:[%s4134_s2 + $0x22] ss:$0 sm:$0xff] }
  0x31   :  { %v434_v59 = vmul.f32 %v432_v5, %v432_v5  ;;  %v424_v25 = vadd.f32 %v422_v24, %v413_v35  ;;  %v433_v52 = vmul.f32 %v431_v44, %v431_v44  ;;  %v442_v57 = vsub.f32 %v2762_v45, %v2216_v27 }
  0x32   :  { %v425_v33 = vadd.f32 %v423_v54, %v414_v39  ;;  %v453_v55 = vsub.f32 %v2783_v63, %v2218_v40  ;;  %v454_v17 = vsub.f32 %v2788_v10, %v2218_v40  ;;  %v2924_v42 = vadd.f32 %v276_v4, %v270_v12 }
  0x33   :  { %v445_v41 = vmul.f32 %v443_v34, %v443_v34  ;;  %v2929_v16 = vadd.f32 %v276_v4, %v271_v7  ;;  %v435_v2 = vadd.f32 %v433_v52, %v424_v25  ;;  %v444_v13 = vmul.f32 %v442_v57, %v442_v57  ;;  %v2227_v4 = vld [vmem:[%s4134_s2 + $0x32] ss:$0 sm:$0xff]  ;;  %v4194_v52 = vld [vmem:[#allocation3_spill] sm:$0xff] }
  0x34   :  { %v436_v53 = vadd.f32 %v434_v59, %v425_v33  ;;  %v500_v21 = vsub.f32 %v2562_v0, %v2221_v51  ;;  %v465_v24 = vsub.f32 %v2844_v47, %v2220_v15  ;;  %v501_v44 = vsub.f32 %v2567_v1, %v2221_v51  ;;  %v2229_v51 = vld [vmem:[%s4134_s2 + $0x42] ss:$0 sm:$0xff] }
  0x35   :  { %4193 = vst [vmem:[#allocation7_spill] sm:$0xff] %v2929_v16  ;;  %v511_v27 = vsub.f32 %v2575_v3, %v2223_v11  ;;  %v512_v35 = vsub.f32 %v2582_v6, %v2223_v11  ;;  %v455_v54 = vmul.f32 %v453_v55, %v453_v55  ;;  %v456_v5 = vmul.f32 %v454_v17, %v454_v17 }
  0x36   :  { %v502_v39 = vmul.f32 %v500_v21, %v500_v21  ;;  %v522_v12 = vsub.f32 %v2590_v8, %v2225_v48  ;;  %v447_v7 = vadd.f32 %v445_v41, %v436_v53  ;;  %vm470_vm4 = vcmp.le.s32.totalorder %v2822_v60, 1  ;;  %v4195_v21 = vld [vmem:[#allocation4_spill] sm:$0xff] }
  0x37   :  { %v503_v59 = vmul.f32 %v501_v44, %v501_v44  ;;  %v513_v34 = vmul.f32 %v511_v27, %v511_v27  ;;  %v446_v40 = vadd.f32 %v444_v13, %v435_v2  ;;  %v464_v25 = vsub.f32 %v2830_v14, %v2220_v15  ;;  %v4196_v27 = vld [vmem:[#allocation5_spill] sm:$0xff]  ;;  %v2231_v15 = vld [vmem:[%s4134_s2 + $0x52] ss:$0 sm:$0xff] }
  0x38   :  { %v514_v33 = vmul.f32 %v512_v35, %v512_v35  ;;  %v523_v57 = vsub.f32 %v4194_v52, %v2225_v48  ;;  %v467_v55 = vmul.f32 %v465_v24, %v465_v24  ;;  %v524_v11 = vmul.f32 %v522_v12, %v522_v12 }
  0x39   :  { %v515_v17 = vadd.f32 %v513_v34, %v502_v39  ;;  %v533_v8 = vsub.f32 %v4195_v21, %v2227_v4  ;;  %v471_v53 = vsel %vm470_vm4, 1e+30, %v4192_v46  ;;  %v534_v2 = vsub.f32 %v4196_v27, %v2227_v4  ;;  %v2233_v4 = vld [vmem:[%s4134_s2 + $0x62] ss:$0 sm:$0xff] }
  0x3a   :  { %v516_v41 = vadd.f32 %v514_v33, %v503_v59  ;;  %v525_v44 = vmul.f32 %v523_v57, %v523_v57  ;;  %v458_v48 = vadd.f32 %v456_v5, %v447_v7  ;;  %v544_v52 = vsub.f32 %v2620_v22, %v2229_v51 }
  0x3b   :  { %v526_v13 = vadd.f32 %v524_v11, %v515_v17  ;;  %v535_v35 = vmul.f32 %v533_v8, %v533_v8  ;;  %v466_v24 = vmul.f32 %v464_v25, %v464_v25  ;;  %v536_v12 = vmul.f32 %v534_v2, %v534_v2  ;;  %v2235_v8 = vld [vmem:[%s4134_s2 + $0x72] ss:$0 sm:$0xff]  ;;  %v2237_v17 = vld [vmem:[%s4134_s2 + $0x82] ss:$0 sm:$0xff] }
  0x3c   :  { %v527_v39 = vadd.f32 %v525_v44, %v516_v41  ;;  %v545_v34 = vsub.f32 %v2625_v23, %v2229_v51  ;;  %v457_v21 = vadd.f32 %v455_v54, %v446_v40  ;;  %v546_v59 = vmul.f32 %v544_v52, %v544_v52 }
  0x3d   :  { %v537_v46 = vadd.f32 %v535_v35, %v526_v13  ;;  %v555_v33 = vsub.f32 %v2635_v29, %v2231_v15  ;;  %v283_v5 = vsel %vm282_vm3, %v2929_v16, inf  ;;  %v478_v7 = vrot.slane %v471_v53, %v2881_v26 }
  0x3e   :  { %v538_v25 = vadd.f32 %v536_v12, %v527_v39  ;;  %v547_v57 = vmul.f32 %v545_v34, %v545_v34  ;;  %v469_v54 = vadd.f32 %v467_v55, %v458_v48  ;;  %v556_v52 = vsub.f32 %v2640_v30, %v2231_v15  ;;  %v2241_v34 = vld [vmem:[%s4134_s2 + $0xa2] ss:$0 sm:$0xff] }
  0x3f   :  { %v548_v40 = vadd.f32 %v546_v59, %v537_v46  ;;  %v557_v51 = vmul.f32 %v555_v33, %v555_v33  ;;  %v566_v41 = vsub.f32 %v2645_v31, %v2233_v4  ;;  %v567_v44 = vsub.f32 %v2654_v37, %v2233_v4  ;;  %v2239_v46 = vld [vmem:[%s4134_s2 + $0x92] ss:$0 sm:$0xff] }
  0x40   :  { %v549_v11 = vadd.f32 %v547_v57, %v538_v25  ;;  %v577_v2 = vsub.f32 %v2664_v43, %v2235_v8  ;;  %v468_v13 = vadd.f32 %v466_v24, %v457_v21  ;;  %v558_v53 = vmul.f32 %v556_v52, %v556_v52 }
  0x41   :  { %v559_v35 = vadd.f32 %v557_v51, %v548_v40  ;;  %v578_v55 = vsub.f32 %v2673_v49, %v2235_v8  ;;  %v568_v15 = vmul.f32 %v566_v41, %v566_v41  ;;  %v569_v48 = vmul.f32 %v567_v44, %v567_v44  ;;  %v2243_v40 = vld [vmem:[%s4134_s2 + $0xb2] ss:$0 sm:$0xff] }
  0x42   :  { %v579_v39 = vmul.f32 %v577_v2, %v577_v2  ;;  %v588_v12 = vsub.f32 %v2678_v50, %v2237_v17  ;;  %v473_v59 = vadd.f32 %v469_v54, %v2898_v9  ;;  %v560_v21 = vadd.f32 %v558_v53, %v549_v11  ;;  %v2245_v2 = vld [vmem:[%s4134_s2 + $0xc2] ss:$0 sm:$0xff] }
  0x43   :  { %v580_v24 = vmul.f32 %v578_v55, %v578_v55  ;;  %v589_v33 = vsub.f32 %v2688_v56, %v2237_v17  ;;  %v570_v4 = vadd.f32 %v568_v15, %v559_v35  ;;  %v599_v25 = vsub.f32 %v2694_v61, %v2239_v46 }
  0x44   :  { %v590_v8 = vmul.f32 %v588_v12, %v588_v12  ;;  %v600_v57 = vsub.f32 %v2699_v62, %v2239_v46  ;;  %v571_v52 = vadd.f32 %v569_v48, %v560_v21  ;;  %v610_v41 = vsub.f32 %v2719_v19, %v2241_v34 }
  0x45   :  { %v591_v51 = vmul.f32 %v589_v33, %v589_v33  ;;  %v284_v54 = vmin.f32 %v2924_v42, %v283_v5  ;;  %v581_v11 = vadd.f32 %v579_v39, %v570_v4  ;;  %v601_v44 = vmul.f32 %v599_v25, %v599_v25  ;;  %v2247_v39 = vld [vmem:[%s4134_s2 + $0xd2] ss:$0 sm:$0xff] }
  0x46   :  { %v611_v17 = vsub.f32 %v2724_v20, %v2241_v34  ;;  %v472_v53 = vadd.f32 %v468_v13, %v2800_v18  ;;  %v582_v35 = vadd.f32 %v580_v24, %v571_v52  ;;  %v602_v55 = vmul.f32 %v600_v57, %v600_v57 }
  0x47   :  { %v621_v46 = vsub.f32 %v2732_v28, %v2243_v40  ;;  %v2994_v15 = vadd.f32 %v478_v7, %v473_v59  ;;  %v592_v48 = vadd.f32 %v590_v8, %v581_v11  ;;  %v612_v12 = vmul.f32 %v610_v41, %v610_v41  ;;  %v2249_v59 = vld [vmem:[%s4134_s2 + $0xe2] ss:$0 sm:$0xff] }
  0x48   :  { %v622_v5 = vsub.f32 %v2737_v32, %v2243_v40  ;;  %v593_v34 = vadd.f32 %v591_v51, %v582_v35  ;;  %v613_v21 = vmul.f32 %v611_v17, %v611_v17  ;;  %v632_v33 = vsub.f32 %v2747_v36, %v2245_v2 }
  0x49   :  { %4197 = vst [vmem:[#allocation5_spill] sm:$0xff] %v2994_v15  ;;  %v633_v13 = vsub.f32 %v2752_v38, %v2245_v2  ;;  %v285_v24 = vrot.slane %v284_v54, 4  ;;  %v603_v4 = vadd.f32 %v601_v44, %v592_v48  ;;  %v623_v25 = vmul.f32 %v621_v46, %v621_v46  ;;  %v2254_v48 = vld [vmem:[%s4134_s2 + $0x13] ss:$0 sm:$0xff] }
  0x4a   :  { %v3005_v8 = vadd.f32 %v478_v7, %v472_v53  ;;  %v604_v57 = vadd.f32 %v602_v55, %v593_v34  ;;  %v624_v40 = vmul.f32 %v622_v5, %v622_v5  ;;  %v644_v52 = vsub.f32 %v2774_v58, %v2247_v39  ;;  %v2251_v7 = vld [vmem:[%s4134_s2 + $0xf2] ss:$0 sm:$0xff]  ;;  %v2252_v53 = vld [vmem:[%s4134_s2 + $0x3] ss:$0 sm:$0xff] }
  0x4b   :  { %v484_v51 = vsel %vm282_vm3, %v2994_v15, inf  ;;  %v614_v41 = vadd.f32 %v612_v12, %v603_v4  ;;  %v643_v11 = vsub.f32 %v2762_v45, %v2247_v39  ;;  %v634_v2 = vmul.f32 %v632_v33, %v632_v33  ;;  %v4199_v15 = vld [vmem:[#allocation2_spill] sm:$0xff] }
  0x4c   :  { %4198 = vst [vmem:[#allocation8_spill] sm:$0xff] %v3005_v8  ;;  %v615_v17 = vadd.f32 %v613_v21, %v604_v57  ;;  %v635_v44 = vmul.f32 %v633_v13, %v633_v13  ;;  %v654_v35 = vsub.f32 %v2783_v63, %v2249_v59  ;;  %v655_v46 = vsub.f32 %v2788_v10, %v2249_v59 }
  0x4d   :  { %v625_v55 = vadd.f32 %v623_v25, %v614_v41  ;;  %v3022_v12 = vmin.f32 %v284_v54, %v285_v24  ;;  %v3025_v5 = vmin.f32 %v3005_v8, %v484_v51  ;;  %v646_v34 = vmul.f32 %v644_v52, %v644_v52  ;;  %v2256_v25 = vld [vmem:[%s4134_s2 + $0x23] ss:$0 sm:$0xff] }
  0x4e   :  { %v626_v39 = vadd.f32 %v624_v40, %v615_v17  ;;  %v645_v21 = vmul.f32 %v643_v11, %v643_v11  ;;  %v665_v33 = vsub.f32 %v2830_v14, %v2251_v7  ;;  %v701_v13 = vsub.f32 %v2562_v0, %v2252_v53  ;;  %v2258_v40 = vld [vmem:[%s4134_s2 + $0x33] ss:$0 sm:$0xff] }
  0x4f   :  { %v702_v4 = vsub.f32 %v2567_v1, %v2252_v53  ;;  %v636_v59 = vadd.f32 %v634_v2, %v625_v55  ;;  %v656_v54 = vmul.f32 %v654_v35, %v654_v35  ;;  %v712_v24 = vsub.f32 %v2575_v3, %v2254_v48  ;;  %v4200_v2 = vld [vmem:[#allocation3_spill] sm:$0xff]  ;;  %v4201_v3 = vld [vmem:[#allocation4_spill] sm:$0xff] }
  0x50   :  { %v637_v57 = vadd.f32 %v635_v44, %v626_v39  ;;  %v657_v52 = vmul.f32 %v655_v46, %v655_v46  ;;  %v666_v51 = vsub.f32 %v2844_v47, %v2251_v7  ;;  %v703_v41 = vmul.f32 %v701_v13, %v701_v13  ;;  %v2260_v7 = vld [vmem:[%s4134_s2 + $0x43] ss:$0 sm:$0xff] }
  0x51   :  { %v704_v11 = vmul.f32 %v702_v4, %v702_v4  ;;  %v713_v1 = vsub.f32 %v2582_v6, %v2254_v48  ;;  %v714_v53 = vmul.f32 %v712_v24, %v712_v24  ;;  %v723_v8 = vsub.f32 %v4199_v15, %v2256_v25  ;;  %v2262_v48 = vld [vmem:[%s4134_s2 + $0x53] ss:$0 sm:$0xff] }
  0x52   :  { %v648_v17 = vadd.f32 %v646_v34, %v637_v57  ;;  %vm671_vm5 = vcmp.le.s32.totalorder %v2822_v60, 2  ;;  %v724_v44 = vsub.f32 %v4200_v2, %v2256_v25  ;;  %v734_v35 = vsub.f32 %v4201_v3, %v2258_v40 }
  0x53   :  { %v735_v55 = vsub.f32 %v4196_v27, %v2258_v40  ;;  %v647_v46 = vadd.f32 %v645_v21, %v636_v59  ;;  %v715_v39 = vmul.f32 %v713_v1, %v713_v1  ;;  %v716_v34 = vadd.f32 %v714_v53, %v703_v41  ;;  %v2264_v59 = vld [vmem:[%s4134_s2 + $0x63] ss:$0 sm:$0xff] }
  0x54   :  { %v725_v13 = vmul.f32 %v723_v8, %v723_v8  ;;  %v659_v4 = vadd.f32 %v657_v52, %v648_v17  ;;  %v668_v57 = vmul.f32 %v666_v51, %v666_v51  ;;  %v726_v24 = vmul.f32 %v724_v44, %v724_v44 }
  0x55   :  { %v736_v25 = vmul.f32 %v734_v35, %v734_v35  ;;  %v717_v16 = vadd.f32 %v715_v39, %v704_v11  ;;  %v737_v3 = vmul.f32 %v735_v55, %v735_v55  ;;  %v745_v27 = vsub.f32 %v2620_v22, %v2260_v7  ;;  %v2266_v11 = vld [vmem:[%s4134_s2 + $0x73] ss:$0 sm:$0xff] }
  0x56   :  { %v727_v47 = vadd.f32 %v725_v13, %v716_v34  ;;  %v667_v40 = vmul.f32 %v665_v33, %v665_v33  ;;  %v746_v2 = vsub.f32 %v2625_v23, %v2260_v7  ;;  %v756_v21 = vsub.f32 %v2635_v29, %v2262_v48 }
  0x57   :  { %v757_v8 = vsub.f32 %v2640_v30, %v2262_v48  ;;  %v658_v52 = vadd.f32 %v656_v54, %v647_v46  ;;  %v728_v51 = vadd.f32 %v726_v24, %v717_v16  ;;  %v747_v17 = vmul.f32 %v745_v27, %v745_v27  ;;  %v2268_v46 = vld [vmem:[%s4134_s2 + $0x83] ss:$0 sm:$0xff] }
  0x58   :  { %v738_v41 = vadd.f32 %v736_v25, %v727_v47  ;;  %v670_v22 = vadd.f32 %v668_v57, %v659_v4  ;;  %v4202_v33 = vmov 0.0   ;;  %v748_v1 = vmul.f32 %v746_v2, %v746_v2  ;;  %v2272_v25 = vld [vmem:[%s4134_s2 + $0xa3] ss:$0 sm:$0xff] }
  0x59   :  { %v672_v23 = vsel %vm671_vm5, 1e+30, %v4202_v33  ;;  %v758_v53 = vmul.f32 %v756_v21, %v756_v21  ;;  %v739_v30 = vadd.f32 %v737_v3, %v728_v51  ;;  %v759_v35 = vmul.f32 %v757_v8, %v757_v8 }
  0x5a   :  { %v749_v44 = vadd.f32 %v747_v17, %v738_v41  ;;  %v767_v55 = vsub.f32 %v2645_v31, %v2264_v59  ;;  %v486_v16 = vrot.slane %v3025_v5, 4  ;;  %v768_v47 = vsub.f32 %v2654_v37, %v2264_v59  ;;  %v2270_v31 = vld [vmem:[%s4134_s2 + $0x93] ss:$0 sm:$0xff] }
  0x5b   :  { %v778_v54 = vsub.f32 %v2664_v43, %v2266_v11  ;;  %v779_v7 = vsub.f32 %v2673_v49, %v2266_v11  ;;  %v669_v39 = vadd.f32 %v667_v40, %v658_v52  ;;  %v679_v2 = vrot.slane %v672_v23, %v2881_v26 }
  0x5c   :  { %v750_v3 = vadd.f32 %v748_v1, %v739_v30  ;;  %v760_v34 = vadd.f32 %v758_v53, %v749_v44  ;;  %v674_v13 = vadd.f32 %v670_v22, %v2898_v9  ;;  %v769_v37 = vmul.f32 %v767_v55, %v767_v55  ;;  %v2276_v44 = vld [vmem:[%s4134_s2 + $0xc3] ss:$0 sm:$0xff] }
  0x5d   :  { %v770_v48 = vmul.f32 %v768_v47, %v768_v47  ;;  %v780_v43 = vmul.f32 %v778_v54, %v778_v54  ;;  %v781_v49 = vmul.f32 %v779_v7, %v779_v7  ;;  %v789_v57 = vsub.f32 %v2678_v50, %v2268_v46 }
  0x5e   :  { %v761_v4 = vadd.f32 %v759_v35, %v750_v3  ;;  %v790_v24 = vsub.f32 %v2688_v56, %v2268_v46  ;;  %v771_v27 = vadd.f32 %v769_v37, %v760_v34  ;;  %v800_v40 = vsub.f32 %v2694_v61, %v2270_v31  ;;  %v2274_v61 = vld [vmem:[%s4134_s2 + $0xb3] ss:$0 sm:$0xff] }
  0x5f   :  { %v801_v21 = vsub.f32 %v2699_v62, %v2270_v31  ;;  %v791_v59 = vmul.f32 %v789_v57, %v789_v57  ;;  %v287_v51 = vrot.slane %v3022_v12, 2  ;;  %v811_v50 = vsub.f32 %v2719_v19, %v2272_v25 }
  0x60   :  { %v772_v8 = vadd.f32 %v770_v48, %v761_v4  ;;  %v792_v52 = vmul.f32 %v790_v24, %v790_v24  ;;  %v782_v41 = vadd.f32 %v780_v43, %v771_v27  ;;  %v802_v17 = vmul.f32 %v800_v40, %v800_v40  ;;  %v2280_v43 = vld [vmem:[%s4134_s2 + $0xe3] ss:$0 sm:$0xff] }
  0x61   :  { %v487_v56 = vmin.f32 %v3025_v5, %v486_v16  ;;  %v673_v11 = vadd.f32 %v669_v39, %v2800_v18  ;;  %v3087_v22 = vadd.f32 %v679_v2, %v674_v13  ;;  %v803_v1 = vmul.f32 %v801_v21, %v801_v21  ;;  %v2278_v16 = vld [vmem:[%s4134_s2 + $0xd3] ss:$0 sm:$0xff]  ;;  %v2285_v21 = vld [vmem:[%s4134_s2 + $0x14] ss:$0 sm:$0xff] }
  0x62   :  { %v783_v23 = vadd.f32 %v781_v49, %v772_v8  ;;  %v793_v62 = vadd.f32 %v791_v59, %v782_v41  ;;  %v812_v53 = vsub.f32 %v2724_v20, %v2272_v25  ;;  %v813_v5 = vmul.f32 %v811_v50, %v811_v50  ;;  %v2287_v8 = vld [vmem:[%s4134_s2 + $0x24] ss:$0 sm:$0xff] }
  0x63   :  { %4203 = vst [vmem:[#allocation2_spill] sm:$0xff] %v3087_v22  ;;  %v822_v55 = vsub.f32 %v2732_v28, %v2274_v61  ;;  %v3101_v47 = vmin.f32 %v3022_v12, %v287_v51  ;;  %v488_v54 = vrot.slane %v487_v56, 2  ;;  %v3103_v7 = vadd.f32 %v679_v2, %v673_v11  ;;  %v2283_v12 = vld [vmem:[%s4134_s2 + $0x4] ss:$0 sm:$0xff]  ;;  %v3146_v11 = vld [vmem:[%s4135_s3 + $0x8] sm:$0xf] }
  0x64   :  { %v794_v30 = vadd.f32 %v792_v52, %v783_v23  ;;  %v804_v35 = vadd.f32 %v802_v17, %v793_v62  ;;  %v685_v20 = vsel %vm282_vm3, %v3087_v22, inf  ;;  %v814_v39 = vmul.f32 %v812_v53, %v812_v53  ;;  %v2289_v17 = vld [vmem:[%s4134_s2 + $0x34] ss:$0 sm:$0xff]  ;;  %4205 = vst [vmem:[#allocation10_spill] sm:$0xff] %v3146_v11 }
  0x65   :  { %4204 = vst [vmem:[#allocation9_spill] sm:$0xff] %v3103_v7  ;;  %v823_v3 = vsub.f32 %v2737_v32, %v2274_v61  ;;  %v833_v34 = vsub.f32 %v2747_v36, %v2276_v44  ;;  %v834_v31 = vsub.f32 %v2752_v38, %v2276_v44  ;;  %v844_v13 = vsub.f32 %v2762_v45, %v2278_v16  ;;  %v2282_v45 = vld [vmem:[%s4134_s2 + $0xf3] ss:$0 sm:$0xff] }
  0x66   :  { %v805_v46 = vadd.f32 %v803_v1, %v794_v30  ;;  %v815_v37 = vadd.f32 %v813_v5, %v804_v35  ;;  %v824_v2 = vmul.f32 %v822_v55, %v822_v55  ;;  %v845_v48 = vsub.f32 %v2774_v58, %v2278_v16  ;;  %v4207_v35 = vld [vmem:[#allocation3_spill] sm:$0xff]  ;;  %v4208_v55 = vld [vmem:[#allocation4_spill] sm:$0xff] }
  0x67   :  { %v289_v49 = vrot.slane %v3101_v47, 1  ;;  %v3120_v57 = vmin.f32 %v487_v56, %v488_v54  ;;  %v3123_v38 = vmin.f32 %v3103_v7, %v685_v20  ;;  %v825_v25 = vmul.f32 %v823_v3, %v823_v3  ;;  %v2291_v54 = vld [vmem:[%s4134_s2 + $0x44] ss:$0 sm:$0xff] }
  0x68   :  { %v816_v24 = vadd.f32 %v814_v39, %v805_v46  ;;  %v835_v27 = vmul.f32 %v833_v34, %v833_v34  ;;  %v902_v40 = vsub.f32 %v2562_v0, %v2283_v12  ;;  %v836_v59 = vmul.f32 %v834_v31, %v834_v31  ;;  %v4209_v34 = vld [vmem:[#allocation6_spill] sm:$0xff] }
  0x69   :  { %v3135_v52 = vmul.f32 %v844_v13, %v844_v13  ;;  %v855_v51 = vsub.f32 %v2783_v63, %v2280_v43  ;;  %v856_v41 = vsub.f32 %v2788_v10, %v2280_v43  ;;  %v826_v0 = vadd.f32 %v824_v2, %v815_v37  ;;  %v3152_v63 = vld [vmem:[%s4135_s3 + $0x10] sm:$0xff] }
  0x6a   :  { %v847_v50 = vmul.f32 %v845_v48, %v845_v48  ;;  %v866_v56 = vsub.f32 %v2830_v14, %v2282_v45  ;;  %v903_v23 = vsub.f32 %v3146_v11, %v2283_v12  ;;  %v904_v61 = vmul.f32 %v902_v40, %v902_v40  ;;  %4206 = vst [vmem:[#allocation11_spill] sm:$0xff] %v3152_v63  ;;  %v3171_v12 = vld [vmem:[%s4135_s3 + $0x38] sm:$0xf] }
  0x6b   :  { %v913_v62 = vsub.f32 %v3152_v63, %v2285_v21  ;;  %v914_v1 = vsub.f32 %v2582_v6, %v2285_v21  ;;  %v924_v53 = vsub.f32 %v4199_v15, %v2287_v8  ;;  %v827_v30 = vadd.f32 %v825_v25, %v816_v24  ;;  %v2293_v6 = vld [vmem:[%s4134_s2 + $0x54] ss:$0 sm:$0xff]  ;;  %4210 = vst [vmem:[#allocation3_spill] sm:$0xff] %v3171_v12  ;;  %v3177_v24 = vld [vmem:[%s4135_s3 + $0x40] sm:$0xff]  ;;  %v3183_v21 = vld [vmem:[%s4135_s3 + $0x48] sm:$0xf] }
  0x6c   :  { %v905_v44 = vmul.f32 %v903_v23, %v903_v23  ;;  %v925_v5 = vsub.f32 %v4207_v35, %v2287_v8  ;;  %v935_v16 = vsub.f32 %v4208_v55, %v2289_v17  ;;  %v3162_v20 = vmul.f32 %v855_v51, %v855_v51 }
  0x6d   :  { %v915_v46 = vmul.f32 %v913_v62, %v913_v62  ;;  %v916_v39 = vmul.f32 %v914_v1, %v914_v1  ;;  %v926_v3 = vmul.f32 %v924_v53, %v924_v53  ;;  %v858_v15 = vmul.f32 %v856_v41, %v856_v41  ;;  %v2295_v41 = vld [vmem:[%s4134_s2 + $0x64] ss:$0 sm:$0xff] }
  0x6e   :  { %v867_v31 = vsub.f32 %v4209_v34, %v2282_v45  ;;  %v927_v13 = vmul.f32 %v925_v5, %v925_v5  ;;  %v936_v37 = vsub.f32 %v3171_v12, %v2289_v17  ;;  %v937_v43 = vmul.f32 %v935_v16, %v935_v16  ;;  %v3205_v5 = vld [vmem:[%s4135_s3 + $0x60] sm:$0xff]  ;;  %v3211_v16 = vld [vmem:[%s4135_s3 + $0x68] sm:$0xf] }
  0x6f   :  { %v917_v2 = vadd.f32 %v915_v46, %v904_v61  ;;  %v918_v48 = vadd.f32 %v916_v39, %v905_v44  ;;  %v946_v25 = vsub.f32 %v3177_v24, %v2291_v54  ;;  %v838_v40 = vadd.f32 %v836_v59, %v827_v30  ;;  %v2297_v59 = vld [vmem:[%s4134_s2 + $0x74] ss:$0 sm:$0xff] }
  0x70   :  { %v938_v45 = vmul.f32 %v936_v37, %v936_v37  ;;  %v947_v8 = vsub.f32 %v3183_v21, %v2291_v54  ;;  %v957_v51 = vsub.f32 %v2635_v29, %v2293_v6  ;;  %v3190_v17 = vmul.f32 %v866_v56, %v866_v56  ;;  %v3199_v29 = vld [vmem:[%s4135_s3 + $0x58] sm:$0xf]  ;;  %v3217_v46 = vld [vmem:[%s4135_s3 + $0x70] sm:$0xff] }
  0x71   :  { %v928_v23 = vadd.f32 %v926_v3, %v917_v2  ;;  %v929_v61 = vadd.f32 %v927_v13, %v918_v48  ;;  %v948_v62 = vmul.f32 %v946_v25, %v946_v25  ;;  %v837_v1 = vadd.f32 %v835_v27, %v826_v0  ;;  %v2299_v3 = vld [vmem:[%s4134_s2 + $0x84] ss:$0 sm:$0xff]  ;;  %v2301_v2 = vld [vmem:[%s4134_s2 + $0x94] ss:$0 sm:$0xff] }
  0x72   :  { %vm872_vm6 = vcmp.le.s32.totalorder %v2822_v60, 3  ;;  %v949_v53 = vmul.f32 %v947_v8, %v947_v8  ;;  %v958_v30 = vsub.f32 %v3199_v29, %v2293_v6  ;;  %v959_v35 = vmul.f32 %v957_v51, %v957_v51 }
  0x73   :  { %v939_v56 = vadd.f32 %v937_v43, %v928_v23  ;;  %v940_v44 = vadd.f32 %v938_v45, %v929_v61  ;;  %v968_v27 = vsub.f32 %v3205_v5, %v2295_v41  ;;  %v849_v0 = vadd.f32 %v847_v50, %v838_v40  ;;  %v3233_v40 = vld [vmem:[%s4135_s3 + $0x78] sm:$0xf] }
  0x74   :  { %v960_v55 = vmul.f32 %v958_v30, %v958_v30  ;;  %v969_v54 = vsub.f32 %v3211_v16, %v2295_v41  ;;  %v979_v39 = vsub.f32 %v3217_v46, %v2297_v59  ;;  %v869_v50 = vmul.f32 %v867_v31, %v867_v31  ;;  %v3239_v41 = vld [vmem:[%s4135_s3 + $0x80] sm:$0xff] }
  0x75   :  { %v873_v6 = vsel %vm872_vm6, 1e+30, %v4202_v33  ;;  %v950_v13 = vadd.f32 %v948_v62, %v939_v56  ;;  %v951_v37 = vadd.f32 %v949_v53, %v940_v44  ;;  %v848_v48 = vadd.f32 %v3135_v52, %v837_v1  ;;  %v2303_v52 = vld [vmem:[%s4134_s2 + $0xa4] ss:$0 sm:$0xff]  ;;  %v3254_v53 = vld [vmem:[%s4135_s3 + $0x90] sm:$0xff] }
  0x76   :  { %v970_v43 = vmul.f32 %v968_v27, %v968_v27  ;;  %v971_v25 = vmul.f32 %v969_v54, %v969_v54  ;;  %v980_v31 = vsub.f32 %v3233_v40, %v2297_v59  ;;  %v981_v51 = vmul.f32 %v979_v39, %v979_v39  ;;  %v3248_v59 = vld [vmem:[%s4135_s3 + $0x88] sm:$0xf] }
  0x77   :  { %v961_v45 = vadd.f32 %v959_v35, %v950_v13  ;;  %v962_v8 = vadd.f32 %v960_v55, %v951_v37  ;;  %v990_v23 = vsub.f32 %v3239_v41, %v2299_v3  ;;  %v860_v61 = vadd.f32 %v858_v15, %v849_v0  ;;  %v3260_v15 = vld [vmem:[%s4135_s3 + $0x98] sm:$0xf]  ;;  %v2305_v0 = vld [vmem:[%s4134_s2 + $0xb4] ss:$0 sm:$0xff]  ;;  %v2307_v13 = vld [vmem:[%s4134_s2 + $0xc4] ss:$0 sm:$0xff] }
  0x78   :  { %v982_v62 = vmul.f32 %v980_v31, %v980_v31  ;;  %v991_v1 = vsub.f32 %v3248_v59, %v2299_v3  ;;  %v1001_v30 = vsub.f32 %v3254_v53, %v2301_v2  ;;  %v1002_v27 = vsub.f32 %v3260_v15, %v2301_v2  ;;  %v3274_v2 = vld [vmem:[%s4135_s3 + $0xa8] sm:$0xf] }
  0x79   :  { %v972_v56 = vadd.f32 %v970_v43, %v961_v45  ;;  %v973_v44 = vadd.f32 %v971_v25, %v962_v8  ;;  %v992_v35 = vmul.f32 %v990_v23, %v990_v23  ;;  %v859_v55 = vadd.f32 %v3162_v20, %v848_v48 }
  0x7a   :  { %v993_v54 = vmul.f32 %v991_v1, %v991_v1  ;;  %v1003_v39 = vmul.f32 %v1001_v30, %v1001_v30  ;;  %v1012_v3 = vsub.f32 %v2719_v19, %v2303_v52  ;;  %v1004_v25 = vmul.f32 %v1002_v27, %v1002_v27 }
  0x7b   :  { %v983_v37 = vadd.f32 %v981_v51, %v972_v56  ;;  %v984_v43 = vadd.f32 %v982_v62, %v973_v44  ;;  %v1013_v31 = vsub.f32 %v3274_v2, %v2303_v52  ;;  %v871_v45 = vadd.f32 %v869_v50, %v860_v61  ;;  %v2309_v62 = vld [vmem:[%s4134_s2 + $0xd4] ss:$0 sm:$0xff] }
  0x7c   :  { %v1014_v20 = vmul.f32 %v1012_v3, %v1012_v3  ;;  %v1023_v48 = vsub.f32 %v2732_v28, %v2305_v0  ;;  %v1024_v19 = vsub.f32 %v2737_v32, %v2305_v0  ;;  %v1034_v51 = vsub.f32 %v2747_v36, %v2307_v13  ;;  %v3291_v28 = vld [vmem:[%s4135_s3 + $0xc8] sm:$0xf]  ;;  %v2313_v3 = vld [vmem:[%s4134_s2 + $0xf4] ss:$0 sm:$0xff] }
  0x7d   :  { %v994_v8 = vadd.f32 %v992_v35, %v983_v37  ;;  %v995_v23 = vadd.f32 %v993_v54, %v984_v43  ;;  %v1015_v1 = vmul.f32 %v1013_v31, %v1013_v31  ;;  %v490_v30 = vrot.slane %v3120_v57, 1  ;;  %v2311_v35 = vld [vmem:[%s4134_s2 + $0xe4] ss:$0 sm:$0xff]  ;;  %v3306_v43 = vld [vmem:[%s4135_s3 + $0xd0] sm:$0xff] }
  0x7e   :  { %v687_v56 = vrot.slane %v3123_v38, 4  ;;  %v3286_v50 = vrot.slane %v873_v6, %v2881_v26  ;;  %v1035_v32 = vsub.f32 %v3291_v28, %v2307_v13  ;;  %v1025_v61 = vmul.f32 %v1023_v48, %v1023_v48 }
  0x7f   :  { %v1005_v52 = vadd.f32 %v1003_v39, %v994_v8  ;;  %v1006_v36 = vadd.f32 %v1004_v25, %v995_v23  ;;  %v1026_v44 = vmul.f32 %v1024_v19, %v1024_v19  ;;  %v870_v27 = vadd.f32 %v3190_v17, %v859_v55  ;;  %v2314_v17 = vld [vmem:[%s4134_s2 + $0x5] ss:$0 sm:$0xff]  ;;  %v4211_v55 = vld [vmem:[#allocation7_spill] sm:$0xff] }
  0x80   :  { %v875_v6 = vadd.f32 %v871_v45, %v2898_v9  ;;  %v1036_v0 = vmul.f32 %v1034_v51, %v1034_v51  ;;  %v1046_v54 = vsub.f32 %v2774_v58, %v2309_v62  ;;  %v1037_v37 = vmul.f32 %v1035_v32, %v1035_v32  ;;  %v3321_v45 = vld [vmem:[%s4135_s3 + $0xe0] sm:$0xff] }
  0x81   :  { %v1016_v13 = vadd.f32 %v1014_v20, %v1005_v52  ;;  %v1017_v39 = vadd.f32 %v1015_v1, %v1006_v36  ;;  %v1045_v25 = vsub.f32 %v3306_v43, %v2309_v62  ;;  %v3316_v31 = vmin.f32 %v3101_v47, %v289_v49  ;;  %4212 = vst [vmem:[#allocation4_spill] sm:$0xff] %v3321_v45  ;;  %v3338_v62 = vld [vmem:[%s4135_s3] sm:$0xff] }
  0x82   :  { %v1056_v20 = vsub.f32 %v3321_v45, %v2311_v35  ;;  %v1057_v48 = vsub.f32 %v2788_v10, %v2311_v35  ;;  %v1048_v23 = vmul.f32 %v1046_v54, %v1046_v54  ;;  %v1067_v1 = vsub.f32 %v2830_v14, %v2313_v3  ;;  %4213 = vst [vmem:[#allocation6_spill] sm:$0xff] %v3338_v62  ;;  %v2316_v14 = vld [vmem:[%s4134_s2 + $0x15] ss:$0 sm:$0xff]  ;;  %v2318_v32 = vld [vmem:[%s4134_s2 + $0x25] ss:$0 sm:$0xff] }
  0x83   :  { %v1027_v19 = vadd.f32 %v1025_v61, %v1016_v13  ;;  %v1028_v8 = vadd.f32 %v1026_v44, %v1017_v39  ;;  %v3327_v51 = vmin.f32 %v3120_v57, %v490_v30  ;;  %v3330_v47 = vmin.f32 %v3123_v38, %v687_v56  ;;  %v2320_v35 = vld [vmem:[%s4134_s2 + $0x35] ss:$0 sm:$0xff]  ;;  %v3359_v39 = vld [vmem:[%s4135_s3 + $0x18] sm:$0xf] }
  0x84   :  { %v3333_v49 = vadd.f32 %v870_v27, %v2800_v18  ;;  %v1103_v10 = vsub.f32 %v3338_v62, %v2314_v17  ;;  %v3345_v57 = vadd.f32 %v3286_v50, %v875_v6  ;;  %v1047_v56 = vmul.f32 %v1045_v25, %v1045_v25  ;;  %4215 = vst [vmem:[#allocation12_spill] sm:$0xff] %v3359_v39  ;;  %v3371_v25 = vld [vmem:[%s4135_s3 + $0x28] sm:$0xf] }
  0x85   :  { %v1038_v30 = vadd.f32 %v1036_v0, %v1027_v19  ;;  %v1039_v38 = vadd.f32 %v1037_v37, %v1028_v8  ;;  %v1058_v52 = vmul.f32 %v1056_v20, %v1056_v20  ;;  %v1059_v36 = vmul.f32 %v1057_v48, %v1057_v48  ;;  %4216 = vst [vmem:[#allocation13_spill] sm:$0xff] %v3371_v25  ;;  %v3378_v19 = vld [vmem:[%s4135_s3 + $0x30] sm:$0xff] }
  0x86   :  { %4214 = vst [vmem:[#allocation7_spill] sm:$0xff] %v3345_v57  ;;  %v1068_v61 = vsub.f32 %v4209_v34, %v2313_v3  ;;  %v1104_v44 = vsub.f32 %v3146_v11, %v2314_v17  ;;  %v1069_v6 = vmul.f32 %v1067_v1, %v1067_v1  ;;  %v1105_v54 = vmul.f32 %v1103_v10, %v1103_v10  ;;  %v3365_v34 = vld [vmem:[%s4135_s3 + $0x20] sm:$0xff] }
  0x87   :  { %v1050_v27 = vadd.f32 %v1048_v23, %v1039_v38  ;;  %v1114_v0 = vsub.f32 %v3152_v63, %v2316_v14  ;;  %v1115_v37 = vsub.f32 %v3359_v39, %v2316_v14  ;;  %v1125_v3 = vsub.f32 %v3365_v34, %v2318_v32  ;;  %4217 = vst [vmem:[#allocation14_spill] sm:$0xff] %v3378_v19  ;;  %v2322_v23 = vld [vmem:[%s4134_s2 + $0x45] ss:$0 sm:$0xff] }
  0x88   :  { %v1106_v13 = vmul.f32 %v1104_v44, %v1104_v44  ;;  %v1126_v17 = vsub.f32 %v3371_v25, %v2318_v32  ;;  %v1049_v20 = vadd.f32 %v1047_v56, %v1038_v30  ;;  %vm1073_vm7 = vcmp.le.s32.totalorder %v2822_v60, 4  ;;  %v2324_v30 = vld [vmem:[%s4134_s2 + $0x55] ss:$0 sm:$0xff] }
  0x89   :  { %v1116_v48 = vmul.f32 %v1114_v0, %v1114_v0  ;;  %v1136_v8 = vsub.f32 %v3378_v19, %v2320_v35  ;;  %v1117_v1 = vmul.f32 %v1115_v37, %v1115_v37  ;;  %v1127_v10 = vmul.f32 %v1125_v3, %v1125_v3  ;;  %v3396_v3 = vld [vmem:[%s4135_s3 + $0x50] sm:$0xff] }
  0x8a   :  { %v1128_v14 = vmul.f32 %v1126_v17, %v1126_v17  ;;  %v1137_v38 = vsub.f32 %v3171_v12, %v2320_v35  ;;  %v1061_v56 = vadd.f32 %v1059_v36, %v1050_v27  ;;  %v1070_v32 = vmul.f32 %v1068_v61, %v1068_v61  ;;  %v2326_v61 = vld [vmem:[%s4134_s2 + $0x65] ss:$0 sm:$0xff] }
  0x8b   :  { %v1118_v44 = vadd.f32 %v1116_v48, %v1105_v54  ;;  %v1138_v0 = vmul.f32 %v1136_v8, %v1136_v8  ;;  %v1119_v58 = vadd.f32 %v1117_v1, %v1106_v13  ;;  %v1147_v22 = vsub.f32 %v3177_v24, %v2322_v23 }
  0x8c   :  { %v1139_v4 = vmul.f32 %v1137_v38, %v1137_v38  ;;  %v1148_v7 = vsub.f32 %v3183_v21, %v2322_v23  ;;  %v1060_v19 = vadd.f32 %v1058_v52, %v1049_v20  ;;  %v1074_v37 = vsel %vm1073_vm7, 1e+30, %v4202_v33 }
  0x8d   :  { %v1129_v35 = vadd.f32 %v1127_v10, %v1118_v44  ;;  %v1158_v36 = vsub.f32 %v3396_v3, %v2324_v30  ;;  %v1130_v27 = vadd.f32 %v1128_v14, %v1119_v58  ;;  %v1149_v54 = vmul.f32 %v1147_v22, %v1147_v22  ;;  %v2328_v22 = vld [vmem:[%s4134_s2 + $0x75] ss:$0 sm:$0xff] }
  0x8e   :  { %v1150_v13 = vmul.f32 %v1148_v7, %v1148_v7  ;;  %v1159_v52 = vsub.f32 %v3199_v29, %v2324_v30  ;;  %vm291_vm8 = vcmp.ge.f32.partialorder %v3316_v31, 5e+29  ;;  %v689_v60 = vrot.slane %v3330_v47, 2  ;;  %v2330_v7 = vld [vmem:[%s4134_s2 + $0x85] ss:$0 sm:$0xff] }
  0x8f   :  { %v1072_v17 = vadd.f32 %v1070_v32, %v1061_v56  ;;  %v1140_v20 = vadd.f32 %v1138_v0, %v1129_v35  ;;  %v1160_v48 = vmul.f32 %v1158_v36, %v1158_v36  ;;  %v1141_v8 = vadd.f32 %v1139_v4, %v1130_v27  ;;  %v2332_v30 = vld [vmem:[%s4134_s2 + $0x95] ss:$0 sm:$0xff] }
  0x90   :  { %v1161_v23 = vmul.f32 %v1159_v52, %v1159_v52  ;;  %v1169_v1 = vsub.f32 %v3205_v5, %v2326_v61  ;;  %v1170_v10 = vsub.f32 %v3211_v16, %v2326_v61  ;;  %v3415_v58 = vadd.f32 %v3286_v50, %v3333_v49 }
  0x91   :  { %v886_v4 = vsel %vm282_vm3, %v3345_v57, inf  ;;  %v1081_v14 = vrot.slane %v1074_v37, %v2881_v26  ;;  %v1151_v38 = vadd.f32 %v1149_v54, %v1140_v20  ;;  %v1071_v56 = vadd.f32 %v1069_v6, %v1060_v19  ;;  %v2334_v6 = vld [vmem:[%s4134_s2 + $0xa5] ss:$0 sm:$0xff] }
  0x92   :  { %4218 = vst [vmem:[#allocation15_spill] sm:$0xff] %v3415_v58  ;;  %v1152_v32 = vadd.f32 %v1150_v13, %v1141_v8  ;;  %v1171_v44 = vmul.f32 %v1169_v1, %v1169_v1  ;;  %v1172_v0 = vmul.f32 %v1170_v10, %v1170_v10  ;;  %v1180_v36 = vsub.f32 %v3217_v46, %v2328_v22 }
  0x93   :  { %v1162_v35 = vadd.f32 %v1160_v48, %v1151_v38  ;;  %v1181_v50 = vsub.f32 %v3233_v40, %v2328_v22  ;;  %v1191_v49 = vsub.f32 %v3239_v41, %v2330_v7  ;;  %v1076_v61 = vadd.f32 %v1072_v17, %v2898_v9  ;;  %v2336_v17 = vld [vmem:[%s4134_s2 + $0xb5] ss:$0 sm:$0xff] }
  0x94   :  { %v1163_v27 = vadd.f32 %v1161_v23, %v1152_v32  ;;  %v1192_v37 = vsub.f32 %v3248_v59, %v2330_v7  ;;  %v1202_v54 = vsub.f32 %v3254_v53, %v2332_v30  ;;  %v1182_v13 = vmul.f32 %v1180_v36, %v1180_v36  ;;  %v3440_v7 = vld [vmem:[%s4135_s3 + $0xa0] sm:$0xff] }
  0x95   :  { %v1173_v19 = vadd.f32 %v1171_v44, %v1162_v35  ;;  %v1183_v52 = vmul.f32 %v1181_v50, %v1181_v50  ;;  %v1193_v20 = vmul.f32 %v1191_v49, %v1191_v49  ;;  %v690_v48 = vmin.f32 %v3330_v47, %v689_v60  ;;  %v3454_v50 = vld [vmem:[%s4135_s3 + $0xb0] sm:$0xff] }
  0x96   :  { %v1174_v8 = vadd.f32 %v1172_v0, %v1163_v27  ;;  %v1194_v1 = vmul.f32 %v1192_v37, %v1192_v37  ;;  %v1203_v10 = vsub.f32 %v3260_v15, %v2332_v30  ;;  %v1204_v22 = vmul.f32 %v1202_v54, %v1202_v54  ;;  %v2338_v0 = vld [vmem:[%s4134_s2 + $0xc5] ss:$0 sm:$0xff] }
  0x97   :  { %v1184_v23 = vadd.f32 %v1182_v13, %v1173_v19  ;;  %v1213_v38 = vsub.f32 %v3440_v7, %v2334_v6  ;;  %v1214_v32 = vsub.f32 %v3274_v2, %v2334_v6  ;;  %v887_v47 = vmin.f32 %v3415_v58, %v886_v4  ;;  %v3460_v4 = vld [vmem:[%s4135_s3 + $0xb8] sm:$0xf]  ;;  %v2340_v6 = vld [vmem:[%s4134_s2 + $0xd5] ss:$0 sm:$0xff] }
  0x98   :  { %v1075_v60 = vadd.f32 %v1071_v56, %v2800_v18  ;;  %v1185_v30 = vadd.f32 %v1183_v52, %v1174_v8  ;;  %v1205_v44 = vmul.f32 %v1203_v10, %v1203_v10  ;;  %v3449_v35 = vadd.f32 %v1081_v14, %v1076_v61 }
  0x99   :  { %v1195_v36 = vadd.f32 %v1193_v20, %v1184_v23  ;;  %v1224_v49 = vsub.f32 %v3454_v50, %v2336_v17  ;;  %v1225_v56 = vsub.f32 %v3460_v4, %v2336_v17  ;;  %v3466_v61 = vsel %vm291_vm8, 0.0, %v3316_v31  ;;  %v2342_v20 = vld [vmem:[%s4134_s2 + $0xe5] ss:$0 sm:$0xff] }
  0x9a   :  { %4219 = vst [vmem:[#allocation16_spill] sm:$0xff] %v3449_v35  ;;  %4220 = vst [vmem:[#allocation17_spill] sm:$0xff] %v3466_v61  ;;  %v1196_v27 = vadd.f32 %v1194_v1, %v1185_v30  ;;  %v1215_v37 = vmul.f32 %v1213_v38, %v1213_v38  ;;  %v1216_v54 = vmul.f32 %v1214_v32, %v1214_v32  ;;  %vm492_vm9 = vcmp.ge.f32.partialorder %v3327_v51, 5e+29  ;;  %v3483_v38 = vld [vmem:[%s4135_s3 + $0xc0] sm:$0xff] }
  0x9b   :  { %v691_v19 = vrot.slane %v690_v48, 1  ;;  %v1206_v13 = vadd.f32 %v1204_v22, %v1195_v36  ;;  %v1236_v52 = vsub.f32 %v3291_v28, %v2338_v0  ;;  %v888_v8 = vrot.slane %v887_v47, 4 }
  0x9c   :  { %v3476_v31 = vadd.f32 %v1081_v14, %v1075_v60  ;;  %v1207_v1 = vadd.f32 %v1205_v44, %v1196_v27  ;;  %v1227_v10 = vmul.f32 %v1225_v56, %v1225_v56  ;;  %v1087_v17 = vsel %vm282_vm3, %v3449_v35, inf  ;;  %v3490_v14 = vld [vmem:[%s4135_s3 + $0xd8] sm:$0xf]  ;;  %v4223_v56 = vld [vmem:[#allocation8_spill] sm:$0xff] }
  0x9d   :  { %v1226_v23 = vmul.f32 %v1224_v49, %v1224_v49  ;;  %v1235_v22 = vsub.f32 %v3483_v38, %v2338_v0  ;;  %v1246_v32 = vsub.f32 %v3306_v43, %v2340_v6  ;;  %v1217_v30 = vadd.f32 %v1215_v37, %v1206_v13  ;;  %4222 = vst [vmem:[#allocation19_spill] sm:$0xff] %v3490_v14  ;;  %v4225_v0 = vld [vmem:[#allocation5_spill] sm:$0xff] }
  0x9e   :  { %4221 = vst [vmem:[#allocation18_spill] sm:$0xff] %v3476_v31  ;;  %v1218_v36 = vadd.f32 %v1216_v54, %v1207_v1  ;;  %v1247_v60 = vsub.f32 %v3490_v14, %v2340_v6  ;;  %v1257_v44 = vsub.f32 %v3321_v45, %v2342_v20  ;;  %v4224_v27 = vmin.f32 %v2924_v42, 1e+30  ;;  %v2345_v1 = vld [vmem:[%s4134_s2 + $0x6] ss:$0 sm:$0xff] }
  0x9f   :  { %v4226_v37 = vmin.f32 %v4211_v55, 1e+30  ;;  %v1238_v13 = vmul.f32 %v1236_v52, %v1236_v52  ;;  %v3511_v6 = vsel %vm492_vm9, 0.0, %v3327_v51  ;;  %v3513_v49 = vmin.f32 %v690_v48, %v691_v19  ;;  %v2344_v55 = vld [vmem:[%s4134_s2 + $0xf5] ss:$0 sm:$0xff] }
  0xa0   :  { %v3498_v35 = vmin.f32 %v4224_v27, %v4223_v56  ;;  %v3515_v42 = vmin.f32 %v887_v47, %v888_v8  ;;  %v1229_v56 = vadd.f32 %v1227_v10, %v1218_v36  ;;  %v2347_v52 = vld [vmem:[%s4134_s2 + $0x16] ss:$0 sm:$0xff]  ;;  %v3524_v27 = vmin.f32 %v3476_v31, %v1087_v17  ;;  %v3529_v51 = vld [vmem:[%s4135_s3 + $0xe8] sm:$0xf]  ;;  %v2349_v47 = vld [vmem:[%s4134_s2 + $0x26] ss:$0 sm:$0xff] }
  0xa1   :  { %v3503_v54 = vmin.f32 %v4226_v37, %v4225_v0  ;;  %v1237_v0 = vmul.f32 %v1235_v22, %v1235_v22  ;;  %v1248_v37 = vmul.f32 %v1246_v32, %v1246_v32  ;;  %4228 = vst [vmem:[#allocation5_spill] sm:$0xff] %v3529_v51  ;;  %v1258_v48 = vsub.f32 %v3529_v51, %v2342_v20  ;;  %v3539_v22 = vld [vmem:[%s4135_s3 + $0xf0] sm:$0xff] }
  0xa2   :  { %v1228_v19 = vadd.f32 %v1226_v23, %v1217_v30  ;;  %v1249_v8 = vmul.f32 %v1247_v60, %v1247_v60  ;;  %v1259_v10 = vmul.f32 %v1257_v44, %v1257_v44  ;;  %v1304_v36 = vsub.f32 %v3338_v62, %v2345_v1  ;;  %4229 = vst [vmem:[#allocation20_spill] sm:$0xff] %v3539_v22  ;;  %v2351_v23 = vld [vmem:[%s4134_s2 + $0x36] ss:$0 sm:$0xff]  ;;  %v3550_v30 = vld [vmem:[%s4135_s3 + $0xf8] sm:$0xf] }
  0xa3   :  { %4227 = vst [vmem:[#allocation8_spill] sm:$0xff] %v3503_v54  ;;  %v1240_v17 = vadd.f32 %v1238_v13, %v1229_v56  ;;  %v1268_v32 = vsub.f32 %v3539_v22, %v2344_v55  ;;  %v1305_v31 = vsub.f32 %v3146_v11, %v2345_v1  ;;  %v1315_v20 = vsub.f32 %v3152_v63, %v2347_v52  ;;  %v2353_v62 = vld [vmem:[%s4134_s2 + $0x46] ss:$0 sm:$0xff] }
  0xa4   :  { %4230 = vst [vmem:[#allocation21_spill] sm:$0xff] %v3550_v30  ;;  %v1269_v60 = vsub.f32 %v3550_v30, %v2344_v55  ;;  %v1306_v44 = vmul.f32 %v1304_v36, %v1304_v36  ;;  %v1316_v13 = vsub.f32 %v3359_v39, %v2347_v52  ;;  %v1326_v56 = vsub.f32 %v3365_v34, %v2349_v47  ;;  %v4231_v54 = vld [vmem:[#allocation14_spill] sm:$0xff] }
  0xa5   :  { %v1260_v57 = vmul.f32 %v1258_v48, %v1258_v48  ;;  %v1307_v1 = vmul.f32 %v1305_v31, %v1305_v31  ;;  %v1317_v11 = vmul.f32 %v1315_v20, %v1315_v20  ;;  %v1327_v63 = vsub.f32 %v3371_v25, %v2349_v47  ;;  %v2355_v31 = vld [vmem:[%s4134_s2 + $0x56] ss:$0 sm:$0xff]  ;;  %v3567_v48 = vld [vmem:[%s4137_s0] sm:$0x1]  ;;  %v2357_v20 = vld [vmem:[%s4134_s2 + $0x66] ss:$0 sm:$0xff] }
  0xa6   :  { %v1239_v22 = vadd.f32 %v1237_v0, %v1228_v19  ;;  %v1318_v51 = vmul.f32 %v1316_v13, %v1316_v13  ;;  %v1328_v58 = vmul.f32 %v1326_v56, %v1326_v56  ;;  %v1337_v61 = vsub.f32 %v4231_v54, %v2351_v23 }
  0xa7   :  { %v1251_v55 = vadd.f32 %v1249_v8, %v1240_v17  ;;  %v1319_v36 = vadd.f32 %v1317_v11, %v1306_v44  ;;  %v1329_v30 = vmul.f32 %v1327_v63, %v1327_v63  ;;  %v1338_v52 = vsub.f32 %v3171_v12, %v2351_v23 }
  0xa8   :  { %vm1274_vm10 = vcmp.le.s32.totalorder %v3567_v48, 5  ;;  %v1320_v0 = vadd.f32 %v1318_v51, %v1307_v1  ;;  %v1339_v47 = vmul.f32 %v1337_v61, %v1337_v61  ;;  %v1348_v19 = vsub.f32 %v3177_v24, %v2353_v62 }
  0xa9   :  { %v1271_v8 = vmul.f32 %v1269_v60, %v1269_v60  ;;  %v1330_v11 = vadd.f32 %v1328_v58, %v1319_v36  ;;  %v1340_v63 = vmul.f32 %v1338_v52, %v1338_v52  ;;  %v1349_v17 = vsub.f32 %v3183_v21, %v2353_v62  ;;  %v2359_v36 = vld [vmem:[%s4134_s2 + $0x76] ss:$0 sm:$0xff] }
  0xaa   :  { %v1250_v23 = vadd.f32 %v1248_v37, %v1239_v22  ;;  %v1331_v44 = vadd.f32 %v1329_v30, %v1320_v0  ;;  %v1350_v13 = vmul.f32 %v1348_v19, %v1348_v19  ;;  %v1359_v56 = vsub.f32 %v3396_v3, %v2355_v31  ;;  %v2363_v19 = vld [vmem:[%s4134_s2 + $0x96] ss:$0 sm:$0xff] }
  0xab   :  { %v1262_v12 = vadd.f32 %v1260_v57, %v1251_v55  ;;  %v1341_v54 = vadd.f32 %v1339_v47, %v1330_v11  ;;  %v1351_v51 = vmul.f32 %v1349_v17, %v1349_v17  ;;  %v1360_v61 = vsub.f32 %v3199_v29, %v2355_v31  ;;  %v2361_v57 = vld [vmem:[%s4134_s2 + $0x86] ss:$0 sm:$0xff] }
  0xac   :  { %v1089_v60 = vrot.slane %v3524_v27, 4  ;;  %v1342_v58 = vadd.f32 %v1340_v63, %v1331_v44  ;;  %v1361_v1 = vmul.f32 %v1359_v56, %v1359_v56  ;;  %v1370_v62 = vsub.f32 %v3205_v5, %v2357_v20 }
  0xad   :  { %v1270_v37 = vmul.f32 %v1268_v32, %v1268_v32  ;;  %v1352_v22 = vadd.f32 %v1350_v13, %v1341_v54  ;;  %v1362_v30 = vmul.f32 %v1360_v61, %v1360_v61  ;;  %v1371_v52 = vsub.f32 %v3211_v16, %v2357_v20 }
  0xae   :  { %v1261_v55 = vadd.f32 %v1259_v10, %v1250_v23  ;;  %v1275_v31 = vsel %vm1274_vm10, 1e+30, %v4202_v33  ;;  %v1353_v0 = vadd.f32 %v1351_v51, %v1342_v58  ;;  %v1372_v47 = vmul.f32 %v1370_v62, %v1370_v62  ;;  %v2367_v62 = vld [vmem:[%s4134_s2 + $0xb6] ss:$0 sm:$0xff] }
  0xaf   :  { %v1273_v32 = vadd.f32 %v1271_v8, %v1262_v12  ;;  %v1363_v54 = vadd.f32 %v1361_v1, %v1352_v22  ;;  %v1373_v11 = vmul.f32 %v1371_v52, %v1371_v52  ;;  %v1381_v63 = vsub.f32 %v3217_v46, %v2359_v36  ;;  %v2365_v12 = vld [vmem:[%s4134_s2 + $0xa6] ss:$0 sm:$0xff] }
  0xb0   :  { %v1364_v17 = vadd.f32 %v1362_v30, %v1353_v0  ;;  %v1382_v20 = vsub.f32 %v3233_v40, %v2359_v36  ;;  %v1392_v10 = vsub.f32 %v3239_v41, %v2361_v57  ;;  %v1393_v23 = vsub.f32 %v3248_v59, %v2361_v57 }
  0xb1   :  { %v1282_v44 = vrot.slane %v1275_v31, %v2881_v26  ;;  %v1374_v13 = vadd.f32 %v1372_v47, %v1363_v54  ;;  %v1383_v56 = vmul.f32 %v1381_v63, %v1381_v63  ;;  %v1403_v51 = vsub.f32 %v3254_v53, %v2363_v19 }
  0xb2   :  { %v1375_v8 = vadd.f32 %v1373_v11, %v1364_v17  ;;  %v1384_v61 = vmul.f32 %v1382_v20, %v1382_v20  ;;  %v1394_v58 = vmul.f32 %v1392_v10, %v1392_v10  ;;  %v1395_v1 = vmul.f32 %v1393_v23, %v1393_v23  ;;  %v2371_v23 = vld [vmem:[%s4134_s2 + $0xd6] ss:$0 sm:$0xff] }
  0xb3   :  { %v1272_v36 = vadd.f32 %v1270_v37, %v1261_v55  ;;  %v1385_v22 = vadd.f32 %v1383_v56, %v1374_v13  ;;  %v1404_v30 = vsub.f32 %v3260_v15, %v2363_v19  ;;  %v1405_v52 = vmul.f32 %v1403_v51, %v1403_v51  ;;  %v2369_v37 = vld [vmem:[%s4134_s2 + $0xc6] ss:$0 sm:$0xff]  ;;  %v4232_v55 = vld [vmem:[#allocation9_spill] sm:$0xff] }
  0xb4   :  { %v1277_v57 = vadd.f32 %v1273_v32, %v2898_v9  ;;  %v1386_v31 = vadd.f32 %v1384_v61, %v1375_v8  ;;  %v1414_v0 = vsub.f32 %v3440_v7, %v2365_v12  ;;  %v1415_v47 = vsub.f32 %v3274_v2, %v2365_v12  ;;  %v2373_v12 = vld [vmem:[%s4134_s2 + $0xe6] ss:$0 sm:$0xff] }
  0xb5   :  { %v1396_v54 = vadd.f32 %v1394_v58, %v1385_v22  ;;  %v1406_v11 = vmul.f32 %v1404_v30, %v1404_v30  ;;  %v1425_v63 = vsub.f32 %v3454_v50, %v2367_v62  ;;  %v1426_v17 = vsub.f32 %v3460_v4, %v2367_v62 }
  0xb6   :  { %v683_v19 = vmin.f32 %v3498_v35, %v4232_v55  ;;  %v1397_v20 = vadd.f32 %v1395_v1, %v1386_v31  ;;  %v1416_v32 = vmul.f32 %v1414_v0, %v1414_v0  ;;  %v1417_v10 = vmul.f32 %v1415_v47, %v1415_v47  ;;  %v4234_v0 = vld [vmem:[#allocation17_spill] sm:$0xff] }
  0xb7   :  { %vm693_vm11 = vcmp.ge.f32.partialorder %v3513_v49, 5e+29  ;;  %v890_v13 = vrot.slane %v3515_v42, 2  ;;  %v3621_v56 = vmin.f32 %v3524_v27, %v1089_v60  ;;  %v1407_v51 = vadd.f32 %v1405_v52, %v1396_v54  ;;  %v4237_v54 = vld [vmem:[#allocation2_spill] sm:$0xff] }
  0xb8   :  { %v1276_v35 = vadd.f32 %v1272_v36, %v2800_v18  ;;  %v1408_v8 = vadd.f32 %v1406_v11, %v1397_v20  ;;  %v1428_v61 = vmul.f32 %v1426_v17, %v1426_v17  ;;  %v1437_v58 = vsub.f32 %v3291_v28, %v2369_v37  ;;  %v4238_v11 = vld [vmem:[#allocation8_spill] sm:$0xff] }
  0xb9   :  { %v3628_v1 = vadd.f32 %v1282_v44, %v1277_v57  ;;  %v1418_v62 = vadd.f32 %v1416_v32, %v1407_v51  ;;  %v1427_v22 = vmul.f32 %v1425_v63, %v1425_v63  ;;  %v1436_v30 = vsub.f32 %v3483_v38, %v2369_v37  ;;  %v4240_v37 = vld [vmem:[#allocation15_spill] sm:$0xff]  ;;  %v4243_v57 = vld [vmem:[#allocation21_spill] sm:$0xff] }
  0xba   :  { %v1419_v31 = vadd.f32 %v1417_v10, %v1408_v8  ;;  %v1447_v27 = vsub.f32 %v3306_v43, %v2371_v23  ;;  %v1448_v60 = vsub.f32 %v3490_v14, %v2371_v23  ;;  %v1458_v52 = vsub.f32 %v3321_v45, %v2373_v12  ;;  %v2376_v23 = vld [vmem:[%s4134_s2 + $0x7] ss:$0 sm:$0xff] }
  0xbb   :  { %4233 = vst [vmem:[#allocation9_spill] sm:$0xff] %v3628_v1  ;;  %v4235_v36 = vmax.f32 %v4234_v0, 0.0  ;;  %v3644_v63 = vsel %vm693_vm11, 0.0, %v3513_v49  ;;  %v1439_v17 = vmul.f32 %v1437_v58, %v1437_v58  ;;  %v3647_v55 = vmin.f32 %v683_v19, %v4240_v37  ;;  %v4241_v58 = vld [vmem:[#allocation5_spill] sm:$0xff] }
  0xbc   :  { %4239 = vst [vmem:[#allocation2_spill] sm:$0xff] %v3644_v63  ;;  %v3650_v20 = vmin.f32 %v3515_v42, %v890_v13  ;;  %v1430_v10 = vadd.f32 %v1428_v61, %v1419_v31  ;;  %v3659_v49 = vadd.f32 %v1282_v44, %v1276_v35  ;;  %v1288_v19 = vsel %vm282_vm3, %v3628_v1, inf  ;;  %v2378_v42 = vld [vmem:[%s4134_s2 + $0x17] ss:$0 sm:$0xff] }
  0xbd   :  { %v3637_v47 = vmax.f32 %v4235_v36, %v3511_v6  ;;  %v2375_v6 = vld [vmem:[%s4134_s2 + $0xf6] ss:$0 sm:$0xff]  ;;  %v1429_v51 = vadd.f32 %v1427_v22, %v1418_v62  ;;  %v1438_v8 = vmul.f32 %v1436_v30, %v1436_v30  ;;  %v1449_v13 = vmul.f32 %v1447_v27, %v1447_v27  ;;  %v2380_v36 = vld [vmem:[%s4134_s2 + $0x27] ss:$0 sm:$0xff]  ;;  %v4246_v27 = vld [vmem:[#allocation11_spill] sm:$0xff] }
  0xbe   :  { %v1450_v61 = vmul.f32 %v1448_v60, %v1448_v60  ;;  %v1459_v31 = vsub.f32 %v4241_v58, %v2373_v12  ;;  %v1460_v0 = vmul.f32 %v1458_v52, %v1458_v52  ;;  %v1441_v44 = vadd.f32 %v1439_v17, %v1430_v10  ;;  %v4242_v35 = vld [vmem:[#allocation20_spill] sm:$0xff]  ;;  %v4244_v62 = vld [vmem:[#allocation6_spill] sm:$0xff] }
  0xbf   :  { %4236 = vst [vmem:[#allocation17_spill] sm:$0xff] %v3637_v47  ;;  %v1469_v37 = vsub.f32 %v4242_v35, %v2375_v6  ;;  %v1470_v32 = vsub.f32 %v4243_v57, %v2375_v6  ;;  %v1505_v22 = vsub.f32 %v4244_v62, %v2376_v23  ;;  %vm1475_vm12 = vcmp.le.s32.totalorder %v3567_v48, 6  ;;  %v4245_v30 = vld [vmem:[#allocation10_spill] sm:$0xff]  ;;  %v2382_v52 = vld [vmem:[%s4134_s2 + $0x37] ss:$0 sm:$0xff] }
  0xc0   :  { %v1506_v1 = vsub.f32 %v4245_v30, %v2376_v23  ;;  %v1516_v60 = vsub.f32 %v4246_v27, %v2378_v42  ;;  %v1517_v12 = vsub.f32 %v3359_v39, %v2378_v42  ;;  %v1440_v58 = vadd.f32 %v1438_v8, %v1429_v51  ;;  %v2384_v23 = vld [vmem:[%s4134_s2 + $0x47] ss:$0 sm:$0xff] }
  0xc1   :  { %v1507_v17 = vmul.f32 %v1505_v22, %v1505_v22  ;;  %v1527_v10 = vsub.f32 %v3365_v34, %v2380_v36  ;;  %v1528_v6 = vsub.f32 %v3371_v25, %v2380_v36  ;;  %v1461_v57 = vmul.f32 %v1459_v31, %v1459_v31  ;;  %v4247_v39 = vld [vmem:[#allocation14_spill] sm:$0xff]  ;;  %v4248_v36 = vld [vmem:[#allocation3_spill] sm:$0xff] }
  0xc2   :  { %v1508_v35 = vmul.f32 %v1506_v1, %v1506_v1  ;;  %v1518_v62 = vmul.f32 %v1516_v60, %v1516_v60  ;;  %v1519_v45 = vmul.f32 %v1517_v12, %v1517_v12  ;;  %v1452_v30 = vadd.f32 %v1450_v61, %v1441_v44  ;;  %v2386_v1 = vld [vmem:[%s4134_s2 + $0x57] ss:$0 sm:$0xff] }
  0xc3   :  { %v1529_v42 = vmul.f32 %v1527_v10, %v1527_v10  ;;  %v1530_v27 = vmul.f32 %v1528_v6, %v1528_v6  ;;  %v1538_v14 = vsub.f32 %v4247_v39, %v2382_v52  ;;  %v1476_v51 = vsel %vm1475_vm12, 1e+30, %v4202_v33 }
  0xc4   :  { %v1520_v8 = vadd.f32 %v1518_v62, %v1507_v17  ;;  %v1521_v22 = vadd.f32 %v1519_v45, %v1508_v35  ;;  %v1539_v31 = vsub.f32 %v4248_v36, %v2382_v52  ;;  %v1451_v60 = vadd.f32 %v1449_v13, %v1440_v58  ;;  %v2388_v45 = vld [vmem:[%s4134_s2 + $0x67] ss:$0 sm:$0xff] }
  0xc5   :  { %v1540_v12 = vmul.f32 %v1538_v14, %v1538_v14  ;;  %v1549_v61 = vsub.f32 %v3177_v24, %v2384_v23  ;;  %v1550_v44 = vsub.f32 %v3183_v21, %v2384_v23  ;;  %v1472_v10 = vmul.f32 %v1470_v32, %v1470_v32 }
  0xc6   :  { %v1531_v6 = vadd.f32 %v1529_v42, %v1520_v8  ;;  %v1532_v39 = vadd.f32 %v1530_v27, %v1521_v22  ;;  %v1541_v25 = vmul.f32 %v1539_v31, %v1539_v31  ;;  %v1463_v35 = vadd.f32 %v1461_v57, %v1452_v30  ;;  %v2390_v42 = vld [vmem:[%s4134_s2 + $0x77] ss:$0 sm:$0xff]  ;;  %v2392_v57 = vld [vmem:[%s4134_s2 + $0x87] ss:$0 sm:$0xff] }
  0xc7   :  { %v1551_v62 = vmul.f32 %v1549_v61, %v1549_v61  ;;  %v1552_v52 = vmul.f32 %v1550_v44, %v1550_v44  ;;  %v1560_v17 = vsub.f32 %v3396_v3, %v2386_v1  ;;  %v1471_v36 = vmul.f32 %v1469_v37, %v1469_v37  ;;  %v2396_v61 = vld [vmem:[%s4134_s2 + $0xa7] ss:$0 sm:$0xff] }
  0xc8   :  { %v1542_v13 = vadd.f32 %v1540_v12, %v1531_v6  ;;  %v1543_v14 = vadd.f32 %v1541_v25, %v1532_v39  ;;  %v1561_v24 = vsub.f32 %v3199_v29, %v2386_v1  ;;  %v1462_v58 = vadd.f32 %v1460_v0, %v1451_v60 }
  0xc9   :  { %v1562_v21 = vmul.f32 %v1560_v17, %v1560_v17  ;;  %v1571_v32 = vsub.f32 %v3205_v5, %v2388_v45  ;;  %v1572_v23 = vsub.f32 %v3211_v16, %v2388_v45  ;;  %v1289_v37 = vmin.f32 %v3659_v49, %v1288_v19  ;;  %v2394_v5 = vld [vmem:[%s4134_s2 + $0x97] ss:$0 sm:$0xff] }
  0xca   :  { %v1483_v39 = vrot.slane %v1476_v51, %v2881_v26  ;;  %v1553_v25 = vadd.f32 %v1551_v62, %v1542_v13  ;;  %v1554_v29 = vadd.f32 %v1552_v52, %v1543_v14  ;;  %v1474_v0 = vadd.f32 %v1472_v10, %v1463_v35 }
  0xcb   :  { %v1563_v16 = vmul.f32 %v1561_v24, %v1561_v24  ;;  %v1573_v30 = vmul.f32 %v1571_v32, %v1571_v32  ;;  %v1574_v27 = vmul.f32 %v1572_v23, %v1572_v23  ;;  %v1582_v22 = vsub.f32 %v3217_v46, %v2390_v42 }
  0xcc   :  { %v1564_v8 = vadd.f32 %v1562_v21, %v1553_v25  ;;  %v1583_v31 = vsub.f32 %v3233_v40, %v2390_v42  ;;  %v1593_v1 = vsub.f32 %v3239_v41, %v2392_v57  ;;  %v1473_v19 = vadd.f32 %v1471_v36, %v1462_v58  ;;  %v4250_v42 = vld [vmem:[#allocation7_spill] sm:$0xff] }
  0xcd   :  { %v1565_v60 = vadd.f32 %v1563_v16, %v1554_v29  ;;  %v1594_v51 = vsub.f32 %v3248_v59, %v2392_v57  ;;  %v1604_v12 = vsub.f32 %v3254_v53, %v2394_v5  ;;  %v1584_v10 = vmul.f32 %v1582_v22, %v1582_v22  ;;  %v2398_v59 = vld [vmem:[%s4134_s2 + $0xb7] ss:$0 sm:$0xff] }
  0xce   :  { %v1575_v44 = vadd.f32 %v1573_v30, %v1564_v8  ;;  %v1585_v6 = vmul.f32 %v1583_v31, %v1583_v31  ;;  %v1595_v45 = vmul.f32 %v1593_v1, %v1593_v1  ;;  %v1478_v46 = vadd.f32 %v1474_v0, %v2898_v9 }
  0xcf   :  { %v1576_v35 = vadd.f32 %v1574_v27, %v1565_v60  ;;  %v1596_v40 = vmul.f32 %v1594_v51, %v1594_v51  ;;  %v1605_v41 = vsub.f32 %v3260_v15, %v2394_v5  ;;  %v1606_v53 = vmul.f32 %v1604_v12, %v1604_v12  ;;  %v2400_v5 = vld [vmem:[%s4134_s2 + $0xc7] ss:$0 sm:$0xff] }
  0xd0   :  { %v1586_v62 = vadd.f32 %v1584_v10, %v1575_v44  ;;  %v1615_v52 = vsub.f32 %v3440_v7, %v2396_v61  ;;  %v1616_v17 = vsub.f32 %v3274_v2, %v2396_v61  ;;  %v4249_v36 = vrot.slane %v3621_v56, 2 }
  0xd1   :  { %v1290_v14 = vrot.slane %v1289_v37, 4  ;;  %v1587_v24 = vadd.f32 %v1585_v6, %v1576_v35  ;;  %v1607_v58 = vmul.f32 %v1605_v41, %v1605_v41  ;;  %v1477_v21 = vadd.f32 %v1473_v19, %v2800_v18  ;;  %v2404_v19 = vld [vmem:[%s4134_s2 + $0xe7] ss:$0 sm:$0xff]  ;;  %v2407_v41 = vld [vmem:[%s4134_s2 + $0x8] ss:$0 sm:$0xff] }
  0xd2   :  { %v1092_v13 = vmin.f32 %v3621_v56, %v4249_v36  ;;  %v1597_v32 = vadd.f32 %v1595_v45, %v1586_v62  ;;  %v1627_v23 = vsub.f32 %v3460_v4, %v2398_v59  ;;  %v4251_v57 = vmin.f32 %v4238_v11, %v4237_v54  ;;  %v2402_v54 = vld [vmem:[%s4134_s2 + $0xd7] ss:$0 sm:$0xff]  ;;  %v4252_v11 = vld [vmem:[#allocation18_spill] sm:$0xff] }
  0xd3   :  { %v3741_v25 = vadd.f32 %v1483_v39, %v1478_v46  ;;  %v1598_v56 = vadd.f32 %v1596_v40, %v1587_v24  ;;  %v1618_v29 = vmul.f32 %v1616_v17, %v1616_v17  ;;  %v892_v0 = vrot.slane %v3650_v20, 1 }
  0xd4   :  { %v3739_v2 = vmin.f32 %v4251_v57, %v4250_v42  ;;  %v1608_v16 = vadd.f32 %v1606_v53, %v1597_v32  ;;  %v1617_v30 = vmul.f32 %v1615_v52, %v1615_v52  ;;  %v1626_v27 = vsub.f32 %v3454_v50, %v2398_v59  ;;  %v4256_v32 = vld [vmem:[#allocation5_spill] sm:$0xff]  ;;  %v4257_v42 = vld [vmem:[#allocation6_spill] sm:$0xff] }
  0xd5   :  { %v1085_v8 = vmin.f32 %v3647_v55, %v4252_v11  ;;  %v1093_v22 = vrot.slane %v1092_v13, 1  ;;  %v3753_v31 = vmin.f32 %v1289_v37, %v1290_v14  ;;  %v1609_v1 = vadd.f32 %v1607_v58, %v1598_v56  ;;  %v4253_v37 = vld [vmem:[#allocation19_spill] sm:$0xff] }
  0xd6   :  { %v3758_v60 = vadd.f32 %v1483_v39, %v1477_v21  ;;  %v1629_v51 = vmul.f32 %v1627_v23, %v1627_v23  ;;  %v1637_v12 = vsub.f32 %v3483_v38, %v2400_v5  ;;  %v1638_v61 = vsub.f32 %v3291_v28, %v2400_v5  ;;  %v4254_v39 = vld [vmem:[#allocation4_spill] sm:$0xff]  ;;  %v3798_v5 = vld [vmem:[%s4135_s3 + $0x8] sm:$0xf] }
  0xd7   :  { %v1489_v44 = vsel %vm282_vm3, %v3741_v25, inf  ;;  %v1620_v10 = vadd.f32 %v1618_v29, %v1609_v1  ;;  %v1648_v55 = vsub.f32 %v3306_v43, %v2402_v54  ;;  %v1649_v6 = vsub.f32 %v4253_v37, %v2402_v54  ;;  %v4255_v28 = vld [vmem:[#allocation16_spill] sm:$0xff] }
  0xd8   :  { %v3767_v45 = vmin.f32 %v3650_v20, %v892_v0  ;;  %v1619_v46 = vadd.f32 %v1617_v30, %v1608_v16  ;;  %v1628_v35 = vmul.f32 %v1626_v27, %v1626_v27  ;;  %v1659_v40 = vsub.f32 %v4254_v39, %v2404_v19  ;;  %v2409_v20 = vld [vmem:[%s4134_s2 + $0x18] ss:$0 sm:$0xff]  ;;  %v3804_v16 = vld [vmem:[%s4135_s3 + $0x10] sm:$0xff] }
  0xd9   :  { %v3775_v62 = vmin.f32 %v1092_v13, %v1093_v22  ;;  %v3778_v53 = vmin.f32 %v1085_v8, %v3659_v49  ;;  %v3785_v17 = vmin.f32 %v3758_v60, %v1489_v44  ;;  %v1631_v36 = vadd.f32 %v1629_v51, %v1620_v10  ;;  %v2406_v13 = vld [vmem:[%s4134_s2 + $0xf7] ss:$0 sm:$0xff]  ;;  %v2411_v49 = vld [vmem:[%s4134_s2 + $0x28] ss:$0 sm:$0xff]  ;;  %v2413_v27 = vld [vmem:[%s4134_s2 + $0x38] ss:$0 sm:$0xff] }
  0xda   :  { %v1639_v14 = vmul.f32 %v1637_v12, %v1637_v12  ;;  %v1640_v24 = vmul.f32 %v1638_v61, %v1638_v61  ;;  %v1650_v58 = vmul.f32 %v1648_v55, %v1648_v55  ;;  %v1651_v21 = vmul.f32 %v1649_v6, %v1649_v6  ;;  %v4258_v54 = vld [vmem:[#allocation20_spill] sm:$0xff]  ;;  %v4260_v44 = vld [vmem:[#allocation13_spill] sm:$0xff]  ;;  %v2415_v55 = vld [vmem:[%s4134_s2 + $0x48] ss:$0 sm:$0xff] }
  0xdb   :  { %v1660_v23 = vsub.f32 %v4256_v32, %v2404_v19  ;;  %v1706_v57 = vsub.f32 %v4257_v42, %v2407_v41  ;;  %v1630_v56 = vadd.f32 %v1628_v35, %v1619_v46  ;;  %v1661_v29 = vmul.f32 %v1659_v40, %v1659_v40  ;;  %v4259_v22 = vld [vmem:[#allocation12_spill] sm:$0xff]  ;;  %v4261_v6 = vld [vmem:[#allocation21_spill] sm:$0xff]  ;;  %v4262_v40 = vld [vmem:[#allocation14_spill] sm:$0xff] }
  0xdc   :  { %v1707_v0 = vsub.f32 %v3798_v5, %v2407_v41  ;;  %v1717_v30 = vsub.f32 %v3804_v16, %v2409_v20  ;;  %v1670_v11 = vsub.f32 %v4258_v54, %v2406_v13  ;;  %v1718_v1 = vsub.f32 %v4259_v22, %v2409_v20 }
  0xdd   :  { %v1708_v8 = vmul.f32 %v1706_v57, %v1706_v57  ;;  %v1728_v19 = vsub.f32 %v3365_v34, %v2411_v49  ;;  %v1642_v51 = vadd.f32 %v1640_v24, %v1631_v36  ;;  %v1729_v10 = vsub.f32 %v4260_v44, %v2411_v49  ;;  %v3822_v34 = vld [vmem:[%s4135_s3 + $0x38] sm:$0xf] }
  0xde   :  { %v1709_v12 = vmul.f32 %v1707_v0, %v1707_v0  ;;  %v1719_v61 = vmul.f32 %v1717_v30, %v1717_v30  ;;  %v1671_v46 = vsub.f32 %v4261_v6, %v2406_v13  ;;  %v1720_v35 = vmul.f32 %v1718_v1, %v1718_v1  ;;  %v2417_v24 = vld [vmem:[%s4134_s2 + $0x58] ss:$0 sm:$0xff] }
  0xdf   :  { %v1730_v39 = vmul.f32 %v1728_v19, %v1728_v19  ;;  %v1739_v41 = vsub.f32 %v4262_v40, %v2413_v27  ;;  %v1641_v42 = vadd.f32 %v1639_v14, %v1630_v56  ;;  %v1731_v20 = vmul.f32 %v1729_v10, %v1729_v10  ;;  %v3831_v14 = vld [vmem:[%s4135_s3 + $0x40] sm:$0xff]  ;;  %v3848_v10 = vld [vmem:[%s4135_s3 + $0x58] sm:$0xf] }
  0xe0   :  { %v1721_v57 = vadd.f32 %v1719_v61, %v1708_v8  ;;  %v1740_v36 = vsub.f32 %v3822_v34, %v2413_v27  ;;  %v1662_v49 = vmul.f32 %v1660_v23, %v1660_v23  ;;  %v1722_v13 = vadd.f32 %v1720_v35, %v1709_v12  ;;  %v3837_v27 = vld [vmem:[%s4135_s3 + $0x48] sm:$0xf] }
  0xe1   :  { %v1741_v0 = vmul.f32 %v1739_v41, %v1739_v41  ;;  %v1750_v56 = vsub.f32 %v3831_v14, %v2415_v55  ;;  %v1653_v30 = vadd.f32 %v1651_v21, %v1642_v51  ;;  %v1751_v1 = vsub.f32 %v3837_v27, %v2415_v55  ;;  %v2419_v23 = vld [vmem:[%s4134_s2 + $0x68] ss:$0 sm:$0xff]  ;;  %v3854_v41 = vld [vmem:[%s4135_s3 + $0x60] sm:$0xff] }
  0xe2   :  { %v1732_v8 = vadd.f32 %v1730_v39, %v1721_v57  ;;  %v1742_v22 = vmul.f32 %v1740_v36, %v1740_v36  ;;  %vm1676_vm13 = vcmp.le.s32.totalorder %v3567_v48, 7  ;;  %v1733_v19 = vadd.f32 %v1731_v20, %v1722_v13 }
  0xe3   :  { %v1752_v12 = vmul.f32 %v1750_v56, %v1750_v56  ;;  %v1761_v61 = vsub.f32 %v3396_v3, %v2417_v24  ;;  %v1652_v21 = vadd.f32 %v1650_v58, %v1641_v42  ;;  %v1753_v44 = vmul.f32 %v1751_v1, %v1751_v1  ;;  %v2421_v58 = vld [vmem:[%s4134_s2 + $0x78] ss:$0 sm:$0xff] }
  0xe4   :  { %v1743_v51 = vadd.f32 %v1741_v0, %v1732_v8  ;;  %v1762_v55 = vsub.f32 %v3848_v10, %v2417_v24  ;;  %v1673_v35 = vmul.f32 %v1671_v46, %v1671_v46  ;;  %v1744_v39 = vadd.f32 %v1742_v22, %v1733_v19  ;;  %v3863_v46 = vld [vmem:[%s4135_s3 + $0x68] sm:$0xf] }
  0xe5   :  { %v1763_v40 = vmul.f32 %v1761_v61, %v1761_v61  ;;  %v1772_v3 = vsub.f32 %v3854_v41, %v2419_v23  ;;  %v1664_v42 = vadd.f32 %v1662_v49, %v1653_v30  ;;  %v1773_v36 = vsub.f32 %v3863_v46, %v2419_v23  ;;  %v2423_v24 = vld [vmem:[%s4134_s2 + $0x88] ss:$0 sm:$0xff]  ;;  %v2425_v30 = vld [vmem:[%s4134_s2 + $0x98] ss:$0 sm:$0xff]  ;;  %v3878_v23 = vld [vmem:[%s4135_s3 + $0x70] sm:$0xff] }
  0xe6   :  { %v1754_v57 = vadd.f32 %v1752_v12, %v1743_v51  ;;  %v1764_v20 = vmul.f32 %v1762_v55, %v1762_v55  ;;  %v1672_v13 = vmul.f32 %v1670_v11, %v1670_v11  ;;  %v1677_v0 = vsel %vm1676_vm13, 1e+30, %v4202_v33  ;;  %v3884_v12 = vld [vmem:[%s4135_s3 + $0x78] sm:$0xf]  ;;  %v3896_v51 = vld [vmem:[%s4135_s3 + $0x88] sm:$0xf] }
  0xe7   :  { %v1755_v56 = vadd.f32 %v1753_v44, %v1744_v39  ;;  %v1774_v49 = vmul.f32 %v1772_v3, %v1772_v3  ;;  %v1663_v8 = vadd.f32 %v1661_v29, %v1652_v21  ;;  %v1775_v1 = vmul.f32 %v1773_v36, %v1773_v36  ;;  %v3890_v29 = vld [vmem:[%s4135_s3 + $0x80] sm:$0xff]  ;;  %v3902_v3 = vld [vmem:[%s4135_s3 + $0x90] sm:$0xff] }
  0xe8   :  { %v1765_v22 = vadd.f32 %v1763_v40, %v1754_v57  ;;  %v1783_v11 = vsub.f32 %v3878_v23, %v2421_v58  ;;  %v1784_v61 = vsub.f32 %v3884_v12, %v2421_v58  ;;  %v1794_v21 = vsub.f32 %v3890_v29, %v2423_v24  ;;  %v2427_v57 = vld [vmem:[%s4134_s2 + $0xa8] ss:$0 sm:$0xff] }
  0xe9   :  { %v1766_v19 = vadd.f32 %v1764_v20, %v1755_v56  ;;  %v1795_v44 = vsub.f32 %v3896_v51, %v2423_v24  ;;  %v1675_v55 = vadd.f32 %v1673_v35, %v1664_v42  ;;  %v1805_v58 = vsub.f32 %v3902_v3, %v2425_v30  ;;  %v2429_v20 = vld [vmem:[%s4134_s2 + $0xb8] ss:$0 sm:$0xff] }
  0xea   :  { %v1776_v39 = vadd.f32 %v1774_v49, %v1765_v22  ;;  %v1785_v40 = vmul.f32 %v1783_v11, %v1783_v11  ;;  %v1786_v24 = vmul.f32 %v1784_v61, %v1784_v61  ;;  %v1796_v35 = vmul.f32 %v1794_v21, %v1794_v21  ;;  %v3915_v22 = vld [vmem:[%s4135_s3 + $0x98] sm:$0xf]  ;;  %v2431_v61 = vld [vmem:[%s4134_s2 + $0xc8] ss:$0 sm:$0xff] }
  0xeb   :  { %v1777_v36 = vadd.f32 %v1775_v1, %v1766_v19  ;;  %v1797_v42 = vmul.f32 %v1795_v44, %v1795_v44  ;;  %v1684_v56 = vrot.slane %v1677_v0, %v2881_v26  ;;  %v1806_v11 = vsub.f32 %v3915_v22, %v2425_v30  ;;  %v3922_v1 = vld [vmem:[%s4135_s3 + $0xa8] sm:$0xf] }
  0xec   :  { %v1787_v49 = vadd.f32 %v1785_v40, %v1776_v39  ;;  %v1807_v15 = vmul.f32 %v1805_v58, %v1805_v58  ;;  %v1816_v59 = vsub.f32 %v3440_v7, %v2427_v57  ;;  %v1817_v19 = vsub.f32 %v3922_v1, %v2427_v57  ;;  %v2433_v7 = vld [vmem:[%s4134_s2 + $0xd8] ss:$0 sm:$0xff] }
  0xed   :  { %v1788_v52 = vadd.f32 %v1786_v24, %v1777_v36  ;;  %v1827_v0 = vsub.f32 %v3454_v50, %v2429_v20  ;;  %v1674_v21 = vadd.f32 %v1672_v13, %v1663_v8  ;;  %v1808_v30 = vmul.f32 %v1806_v11, %v1806_v11  ;;  %v2435_v50 = vld [vmem:[%s4134_s2 + $0xe8] ss:$0 sm:$0xff] }
  0xee   :  { %v1798_v44 = vadd.f32 %v1796_v35, %v1787_v49  ;;  %v1828_v39 = vsub.f32 %v3460_v4, %v2429_v20  ;;  %v1679_v40 = vadd.f32 %v1675_v55, %v2898_v9  ;;  %v1818_v36 = vmul.f32 %v1816_v59, %v1816_v59  ;;  %v3941_v4 = vld [vmem:[%s4135_s3 + $0xc8] sm:$0xf]  ;;  %v3950_v49 = vld [vmem:[%s4135_s3 + $0xe0] sm:$0xff] }
  0xef   :  { %v1799_v58 = vadd.f32 %v1797_v42, %v1788_v52  ;;  %v1819_v57 = vmul.f32 %v1817_v19, %v1817_v19  ;;  %v1829_v63 = vmul.f32 %v1827_v0, %v1827_v0  ;;  %v1838_v8 = vsub.f32 %v3483_v38, %v2431_v61  ;;  %v2437_v19 = vld [vmem:[%s4134_s2 + $0xf8] ss:$0 sm:$0xff] }
  0xf0   :  { %v1809_v24 = vadd.f32 %v1807_v15, %v1798_v44  ;;  %v1830_v13 = vmul.f32 %v1828_v39, %v1828_v39  ;;  %v1839_v55 = vsub.f32 %v3941_v4, %v2431_v61  ;;  %v1849_v59 = vsub.f32 %v3306_v43, %v2433_v7  ;;  %v4263_v0 = vld [vmem:[#allocation9_spill] sm:$0xff] }
  0xf1   :  { %v1810_v35 = vadd.f32 %v1808_v30, %v1799_v58  ;;  %v1850_v52 = vsub.f32 %v4253_v37, %v2433_v7  ;;  %v1678_v20 = vadd.f32 %v1674_v21, %v2800_v18  ;;  %v1840_v15 = vmul.f32 %v1838_v8, %v1838_v8 }
  0xf2   :  { %v1820_v42 = vadd.f32 %v1818_v36, %v1809_v24  ;;  %v1860_v11 = vsub.f32 %v3950_v49, %v2435_v50  ;;  %v4264_v43 = vmin.f32 %v3739_v2, %v4255_v28  ;;  %v3962_v61 = vadd.f32 %v1684_v56, %v1679_v40  ;;  %v2438_v28 = vld [vmem:[%s4134_s2 + $0x9] ss:$0 sm:$0xff] }
  0xf3   :  { %v1821_v21 = vadd.f32 %v1819_v57, %v1810_v35  ;;  %v1841_v44 = vmul.f32 %v1839_v55, %v1839_v55  ;;  %v4265_v30 = vrot.slane %v3753_v31, 2  ;;  %v1851_v58 = vmul.f32 %v1849_v59, %v1849_v59  ;;  %v2442_v59 = vld [vmem:[%s4134_s2 + $0x29] ss:$0 sm:$0xff] }
  0xf4   :  { %v3960_v37 = vmin.f32 %v4264_v43, %v4263_v0  ;;  %v1831_v7 = vadd.f32 %v1829_v63, %v1820_v42  ;;  %v1861_v36 = vsub.f32 %v4256_v32, %v2435_v50  ;;  %v1852_v8 = vmul.f32 %v1850_v52, %v1850_v52  ;;  %v2440_v63 = vld [vmem:[%s4134_s2 + $0x19] ss:$0 sm:$0xff]  ;;  %v2522_v42 = vld [vmem:[%s4135_s3] sm:$0xff] }
  0xf5   :  { %v3967_v39 = vmin.f32 %v3753_v31, %v4265_v30  ;;  %v1832_v24 = vadd.f32 %v1830_v13, %v1821_v21  ;;  %v1871_v47 = vsub.f32 %v4258_v54, %v2437_v19  ;;  %v1872_v2 = vsub.f32 %v4261_v6, %v2437_v19  ;;  %v2523_v43 = vld [vmem:[%s4135_s3 + $0x18] sm:$0xf] }
  0xf6   :  { %v1491_v40 = vrot.slane %v3785_v17, 4  ;;  %v3976_v57 = vadd.f32 %v1684_v56, %v1678_v20  ;;  %v1842_v31 = vadd.f32 %v1840_v15, %v1831_v7  ;;  %v1862_v35 = vmul.f32 %v1860_v11, %v1860_v11  ;;  %v2524_v7 = vld [vmem:[%s4135_s3 + $0x20] sm:$0xff] }
  0xf7   :  { %v1690_v50 = vsel %vm282_vm3, %v3962_v61, inf  ;;  %v1843_v13 = vadd.f32 %v1841_v44, %v1832_v24  ;;  %v1863_v55 = vmul.f32 %v1861_v36, %v1861_v36  ;;  %vm1877_vm14 = vcmp.le.s32.totalorder %v3567_v48, 8 }
  0xf8   :  { %v1853_v52 = vadd.f32 %v1851_v58, %v1842_v31  ;;  %v1873_v56 = vmul.f32 %v1871_v47, %v1871_v47  ;;  %v1874_v20 = vmul.f32 %v1872_v2, %v1872_v2  ;;  %v1907_v15 = vsub.f32 %v2522_v42, %v2438_v28  ;;  %v2444_v47 = vld [vmem:[%s4134_s2 + $0x39] ss:$0 sm:$0xff] }
  0xf9   :  { %v1854_v11 = vadd.f32 %v1852_v8, %v1843_v13  ;;  %v1908_v19 = vsub.f32 %v3798_v5, %v2438_v28  ;;  %v1918_v0 = vsub.f32 %v3804_v16, %v2440_v63  ;;  %v1919_v21 = vsub.f32 %v2523_v43, %v2440_v63  ;;  %v2525_v5 = vld [vmem:[%s4135_s3 + $0x28] sm:$0xf]  ;;  %v2526_v13 = vld [vmem:[%s4135_s3 + $0x30] sm:$0xff] }
  0xfa   :  { %v1864_v44 = vadd.f32 %v1862_v35, %v1853_v52  ;;  %v1909_v30 = vmul.f32 %v1907_v15, %v1907_v15  ;;  %v1929_v58 = vsub.f32 %v2524_v7, %v2442_v59  ;;  %v1930_v16 = vsub.f32 %v2525_v5, %v2442_v59  ;;  %v2446_v28 = vld [vmem:[%s4134_s2 + $0x49] ss:$0 sm:$0xff] }
  0xfb   :  { %v1865_v36 = vadd.f32 %v1863_v55, %v1854_v11  ;;  %v1910_v24 = vmul.f32 %v1908_v19, %v1908_v19  ;;  %v1920_v8 = vmul.f32 %v1918_v0, %v1918_v0  ;;  %v1921_v2 = vmul.f32 %v1919_v21, %v1919_v21  ;;  %v2448_v11 = vld [vmem:[%s4134_s2 + $0x59] ss:$0 sm:$0xff] }
  0xfc   :  { %v1878_v31 = vsel %vm1877_vm14, 1e+30, %v4202_v33  ;;  %v1931_v35 = vmul.f32 %v1929_v58, %v1929_v58  ;;  %v1932_v63 = vmul.f32 %v1930_v16, %v1930_v16  ;;  %v1940_v52 = vsub.f32 %v2526_v13, %v2444_v47 }
  0xfd   :  { %v1876_v59 = vadd.f32 %v1874_v20, %v1865_v36  ;;  %v1922_v55 = vadd.f32 %v1920_v8, %v1909_v30  ;;  %v1923_v42 = vadd.f32 %v1921_v2, %v1910_v24  ;;  %v1941_v15 = vsub.f32 %v3822_v34, %v2444_v47  ;;  %v2450_v20 = vld [vmem:[%s4134_s2 + $0x69] ss:$0 sm:$0xff] }
  0xfe   :  { %v1875_v19 = vadd.f32 %v1873_v56, %v1864_v44  ;;  %v1942_v0 = vmul.f32 %v1940_v52, %v1940_v52  ;;  %v1951_v43 = vsub.f32 %v3831_v14, %v2446_v28  ;;  %v1952_v21 = vsub.f32 %v3837_v27, %v2446_v28  ;;  %v2527_v56 = vld [vmem:[%s4135_s3 + $0x50] sm:$0xff] }
  0xff   :  { %v1885_v7 = vrot.slane %v1878_v31, %v2881_v26  ;;  %v1933_v58 = vadd.f32 %v1931_v35, %v1922_v55  ;;  %v1934_v5 = vadd.f32 %v1932_v63, %v1923_v42  ;;  %v1943_v16 = vmul.f32 %v1941_v15, %v1941_v15  ;;  %v2452_v35 = vld [vmem:[%s4134_s2 + $0x79] ss:$0 sm:$0xff]  ;;  %v2454_v63 = vld [vmem:[%s4134_s2 + $0x89] ss:$0 sm:$0xff] }
 0x100   :  { %v1880_v34 = vadd.f32 %v1876_v59, %v2898_v9  ;;  %v1953_v47 = vmul.f32 %v1951_v43, %v1951_v43  ;;  %v1954_v30 = vmul.f32 %v1952_v21, %v1952_v21  ;;  %v1962_v14 = vsub.f32 %v2527_v56, %v2448_v11 }
 0x101   :  { %v1294_v27 = vrot.slane %v3967_v39, 1  ;;  %v1944_v44 = vadd.f32 %v1942_v0, %v1933_v58  ;;  %v1945_v36 = vadd.f32 %v1943_v16, %v1934_v5  ;;  %v1963_v24 = vsub.f32 %v3848_v10, %v2448_v11  ;;  %v2458_v58 = vld [vmem:[%s4134_s2 + $0xa9] ss:$0 sm:$0xff] }
 0x102   :  { %v1879_v8 = vadd.f32 %v1875_v19, %v2800_v18  ;;  %v1964_v2 = vmul.f32 %v1962_v14, %v1962_v14  ;;  %v1973_v28 = vsub.f32 %v3854_v41, %v2450_v20  ;;  %v1974_v31 = vsub.f32 %v3863_v46, %v2450_v20  ;;  %v2456_v41 = vld [vmem:[%s4134_s2 + $0x99] ss:$0 sm:$0xff] }
 0x103   :  { %v4041_v13 = vmin.f32 %v3785_v17, %v1491_v40  ;;  %v1691_v10 = vmin.f32 %v3976_v57, %v1690_v50  ;;  %v1955_v52 = vadd.f32 %v1953_v47, %v1944_v44  ;;  %v1956_v59 = vadd.f32 %v1954_v30, %v1945_v36  ;;  %v2528_v30 = vld [vmem:[%s4135_s3 + $0xa0] sm:$0xff]  ;;  %v2462_v44 = vld [vmem:[%s4134_s2 + $0xc9] ss:$0 sm:$0xff] }
 0x104   :  { %v4047_v46 = vadd.f32 %v1885_v7, %v1880_v34  ;;  %v1965_v55 = vmul.f32 %v1963_v24, %v1963_v24  ;;  %v1975_v42 = vmul.f32 %v1973_v28, %v1973_v28  ;;  %v1976_v15 = vmul.f32 %v1974_v31, %v1974_v31  ;;  %v2464_v28 = vld [vmem:[%s4134_s2 + $0xd9] ss:$0 sm:$0xff] }
 0x105   :  { %v1966_v11 = vadd.f32 %v1964_v2, %v1955_v52  ;;  %v1984_v19 = vsub.f32 %v3878_v23, %v2452_v35  ;;  %v1985_v0 = vsub.f32 %v3884_v12, %v2452_v35  ;;  %v1995_v17 = vsub.f32 %v3890_v29, %v2454_v63  ;;  %v2460_v23 = vld [vmem:[%s4134_s2 + $0xb9] ss:$0 sm:$0xff] }
 0x106   :  { %v4052_v40 = vadd.f32 %v1885_v7, %v1879_v8  ;;  %v1967_v50 = vadd.f32 %v1965_v55, %v1956_v59  ;;  %v1996_v43 = vsub.f32 %v3896_v51, %v2454_v63  ;;  %v2006_v21 = vsub.f32 %v3902_v3, %v2456_v41  ;;  %v2530_v63 = vld [vmem:[%s4135_s3 + $0xb8] sm:$0xf] }
 0x107   :  { %v1977_v5 = vadd.f32 %v1975_v42, %v1966_v11  ;;  %v1986_v16 = vmul.f32 %v1984_v19, %v1984_v19  ;;  %v1987_v20 = vmul.f32 %v1985_v0, %v1985_v0  ;;  %v1997_v34 = vmul.f32 %v1995_v17, %v1995_v17  ;;  %v2531_v17 = vld [vmem:[%s4135_s3 + $0xd0] sm:$0xff] }
 0x108   :  { %v1891_v12 = vsel %vm282_vm3, %v4047_v46, inf  ;;  %v1978_v29 = vadd.f32 %v1976_v15, %v1967_v50  ;;  %v1998_v7 = vmul.f32 %v1996_v43, %v1996_v43  ;;  %v2007_v51 = vsub.f32 %v3915_v22, %v2456_v41  ;;  %v2529_v22 = vld [vmem:[%s4135_s3 + $0xb0] sm:$0xff]  ;;  %v2466_v15 = vld [vmem:[%s4134_s2 + $0xe9] ss:$0 sm:$0xff] }
 0x109   :  { %vm894_vm15 = vcmp.ge.f32.partialorder %v3767_v45, 5e+29  ;;  %v1988_v3 = vadd.f32 %v1986_v16, %v1977_v5  ;;  %v2008_v47 = vmul.f32 %v2006_v21, %v2006_v21  ;;  %v2017_v56 = vsub.f32 %v2528_v30, %v2458_v58  ;;  %v2468_v16 = vld [vmem:[%s4134_s2 + $0xf9] ss:$0 sm:$0xff] }
 0x10a   :  { %v2018_v14 = vsub.f32 %v3922_v1, %v2458_v58  ;;  %v1692_v36 = vrot.slane %v1691_v10, 4  ;;  %v1989_v24 = vadd.f32 %v1987_v20, %v1978_v29  ;;  %v2009_v8 = vmul.f32 %v2007_v51, %v2007_v51 }
 0x10b   :  { %v2028_v2 = vsub.f32 %v2529_v22, %v2460_v23  ;;  %v1892_v31 = vmin.f32 %v4052_v40, %v1891_v12  ;;  %v1999_v35 = vadd.f32 %v1997_v34, %v1988_v3  ;;  %v2019_v1 = vmul.f32 %v2017_v56, %v2017_v56 }
 0x10c   :  { %v2029_v52 = vsub.f32 %v2530_v63, %v2460_v23  ;;  %v1493_v59 = vrot.slane %v4041_v13, 2  ;;  %v2000_v41 = vadd.f32 %v1998_v7, %v1989_v24  ;;  %v2020_v55 = vmul.f32 %v2018_v14, %v2018_v14 }
 0x10d   :  { %v2039_v42 = vsub.f32 %v3483_v38, %v2462_v44  ;;  %v2010_v11 = vadd.f32 %v2008_v47, %v1999_v35  ;;  %v2030_v19 = vmul.f32 %v2028_v2, %v2028_v2  ;;  %v2040_v0 = vsub.f32 %v3941_v4, %v2462_v44  ;;  %v2532_v38 = vld [vmem:[%s4135_s3 + $0xd8] sm:$0xf] }
 0x10e   :  { %v2050_v50 = vsub.f32 %v2531_v17, %v2464_v28  ;;  %v1693_v43 = vmin.f32 %v1691_v10, %v1692_v36  ;;  %v2011_v21 = vadd.f32 %v2009_v8, %v2000_v41  ;;  %v2031_v58 = vmul.f32 %v2029_v52, %v2029_v52  ;;  %v4266_v52 = vld [vmem:[#allocation17_spill] sm:$0xff] }
 0x10f   :  { %v2051_v5 = vsub.f32 %v2532_v38, %v2464_v28  ;;  %v1893_v20 = vrot.slane %v1892_v31, 4  ;;  %v2021_v34 = vadd.f32 %v2019_v1, %v2010_v11  ;;  %v2041_v4 = vmul.f32 %v2039_v42, %v2039_v42 }
 0x110   :  { %v2061_v23 = vsub.f32 %v3950_v49, %v2466_v15  ;;  %v1487_v12 = vmin.f32 %v3778_v53, %v3758_v60  ;;  %v2022_v10 = vadd.f32 %v2020_v55, %v2011_v21  ;;  %v2042_v29 = vmul.f32 %v2040_v0, %v2040_v0 }
 0x111   :  { %v2062_v7 = vsub.f32 %v4256_v32, %v2466_v15  ;;  %v1494_v51 = vmin.f32 %v4041_v13, %v1493_v59  ;;  %v2032_v3 = vadd.f32 %v2030_v19, %v2021_v34  ;;  %v2052_v47 = vmul.f32 %v2050_v50, %v2050_v50  ;;  %v4267_v59 = vld [vmem:[#allocation2_spill] sm:$0xff] }
 0x112   :  { %v2072_v30 = vsub.f32 %v4258_v54, %v2468_v16  ;;  %v1694_v56 = vrot.slane %v1693_v43, 2  ;;  %v2033_v14 = vadd.f32 %v2031_v58, %v2022_v10  ;;  %v2053_v44 = vmul.f32 %v2051_v5, %v2051_v5 }
 0x113   :  { %v2073_v36 = vsub.f32 %v4261_v6, %v2468_v16  ;;  %v1894_v24 = vmin.f32 %v1892_v31, %v1893_v20  ;;  %v2043_v49 = vadd.f32 %v2041_v4, %v2032_v3  ;;  %v2063_v8 = vmul.f32 %v2061_v23, %v2061_v23 }
 0x114   :  { %vm2078_vm0 = vcmp.le.s32.totalorder %v3567_v48, 9  ;;  %v895_v60 = vsel %vm894_vm15, 0.0, %v3767_v45  ;;  %v1488_v53 = vmin.f32 %v3960_v37, %v3741_v25  ;;  %v2044_v32 = vadd.f32 %v2042_v29, %v2033_v14 }
 0x115   :  { %v2064_v13 = vmul.f32 %v2062_v7, %v2062_v7  ;;  %vm1095_vm1 = vcmp.ge.f32.partialorder %v3775_v62, 5e+29  ;;  %v1295_v54 = vmin.f32 %v3967_v39, %v1294_v27  ;;  %v2054_v6 = vadd.f32 %v2052_v47, %v2043_v49 }
 0x116   :  { %v2074_v22 = vmul.f32 %v2072_v30, %v2072_v30  ;;  %v1495_v2 = vrot.slane %v1494_v51, 1  ;;  %v2055_v28 = vadd.f32 %v2053_v44, %v2044_v32  ;;  %v2075_v48 = vmul.f32 %v2073_v36, %v2073_v36 }
 0x117   :  { %v2079_v31 = vsel %vm2078_vm0, 1e+30, %v4202_v33  ;;  %v1688_v45 = vmin.f32 %v1487_v12, %v3976_v57  ;;  %v1695_v35 = vmin.f32 %v1693_v43, %v1694_v56  ;;  %v1895_v1 = vrot.slane %v1894_v24, 2 }
 0x118   :  { %v2065_v25 = vadd.f32 %v2063_v8, %v2054_v6  ;;  %v1689_v37 = vmin.f32 %v1488_v53, %v3962_v61  ;;  %v2066_v63 = vadd.f32 %v2064_v13, %v2055_v28  ;;  %v4268_v41 = vmax.f32 %v4266_v52, %v4267_v59 }
 0x119   :  { %v2086_v27 = vrot.slane %v2079_v31, %v2881_v26  ;;  %v1096_v42 = vsel %vm1095_vm1, 0.0, %v3775_v62  ;;  %vm1296_vm2 = vcmp.ge.f32.partialorder %v1295_v54, 5e+29  ;;  %v1496_v33 = vmin.f32 %v1494_v51, %v1495_v2 }
 0x11a   :  { %v896_v55 = vmax.f32 %v4268_v41, %v895_v60  ;;  %v2076_v39 = vadd.f32 %v2074_v22, %v2065_v25  ;;  %v2077_v57 = vadd.f32 %v2075_v48, %v2066_v63  ;;  %v1696_v15 = vrot.slane %v1695_v35, 1 }
 0x11b   :  { %v1889_v11 = vmin.f32 %v1688_v45, %v4052_v40  ;;  %v1896_v19 = vmin.f32 %v1894_v24, %v1895_v1  ;;  %v1890_v0 = vmin.f32 %v1689_v37, %v4047_v46  ;;  %v1297_v26 = vsel %vm1296_vm2, 0.0, %v1295_v54 }
 0x11c   :  { %v2080_v61 = vadd.f32 %v2076_v39, %v2800_v18  ;;  %v2081_v17 = vadd.f32 %v2077_v57, %v2898_v9  ;;  %v1097_v50 = vmax.f32 %v896_v55, %v1096_v42  ;;  %vm1497_vm4 = vcmp.ge.f32.partialorder %v1496_v33, 5e+29 }
 0x11d   :  { %v1697_v58 = vmin.f32 %v1695_v35, %v1696_v15  ;;  %v1897_v62 = vrot.slane %v1896_v19, 1  ;;  %v1498_v34 = vsel %vm1497_vm4, 0.0, %v1496_v33 }
 0x11e   :  { %v2088_v43 = vadd.f32 %v2086_v27, %v2080_v61  ;;  %v2089_v21 = vadd.f32 %v2086_v27, %v2081_v17  ;;  %v1298_v20 = vmax.f32 %v1097_v50, %v1297_v26 }
 0x11f   :  { %vm1698_vm7 = vcmp.ge.f32.partialorder %v1697_v58, 5e+29  ;;  %v1898_v46 = vmin.f32 %v1896_v19, %v1897_v62 }
 0x120   :  { %v2090_v38 = vmin.f32 %v1889_v11, %v2088_v43  ;;  %v2091_v5 = vmin.f32 %v1890_v0, %v2089_v21  ;;  %v2092_v16 = vsel %vm282_vm3, %v2089_v21, inf  ;;  %v1499_v12 = vmax.f32 %v1298_v20, %v1498_v34 }
 0x121   :  { %v2093_v40 = vmin.f32 %v2088_v43, %v2092_v16  ;;  %v1699_v7 = vsel %vm1698_vm7, 0.0, %v1697_v58  ;;  %vm1899_vm8 = vcmp.ge.f32.partialorder %v1898_v46, 5e+29 }
 0x122   :  { %vm2103_vm5 = vcmp.ge.f32.partialorder %v2090_v38, 5e+29  ;;  %vm2104_vm6 = vcmp.ge.f32.partialorder %v2091_v5, 5e+29  ;;  %v1700_v47 = vmax.f32 %v1499_v12, %v1699_v7  ;;  %v1900_v14 = vsel %vm1899_vm8, 0.0, %v1898_v46 }
 0x123   :  { %v2105_v18 = vsel %vm2103_vm5, 0.0, %v2090_v38  ;;  %v2094_v9 = vrot.slane %v2093_v40, 4  ;;  %v2106_v4 = vsel %vm2104_vm6, 0.0, %v2091_v5 }
 0x124   :  { %v2107_v23 = vsel %vm282_vm3, %v2106_v4, -inf  ;;  %v1901_v24 = vmax.f32 %v1700_v47, %v1900_v14 }
 0x125   :  { %v2095_v10 = vmin.f32 %v2093_v40, %v2094_v9  ;;  %v2108_v29 = vmax.f32 %v2105_v18, %v2107_v23 }
 0x127   :  { %v2096_v51 = vrot.slane %v2095_v10, 2  ;;  %v2109_v3 = vrot.slane %v2108_v29, 4 }
 0x129   :  { %v2097_v30 = vmin.f32 %v2095_v10, %v2096_v51  ;;  %v2110_v56 = vmax.f32 %v2108_v29, %v2109_v3 }
 0x12b   :  { %v2098_v44 = vrot.slane %v2097_v30, 1  ;;  %v2111_v36 = vrot.slane %v2110_v56, 2 }
 0x12d   :  { %v2099_v49 = vmin.f32 %v2097_v30, %v2098_v44  ;;  %v2112_v8 = vmax.f32 %v2110_v56, %v2111_v36 }
 0x12f   :  { %vm2100_vm9 = vcmp.ge.f32.partialorder %v2099_v49, 5e+29  ;;  %v2113_v60 = vrot.slane %v2112_v8, 1 }
 0x130   :  { %v2101_v53 = vsel %vm2100_vm9, 0.0, %v2099_v49 }
 0x131   :  { %v2102_v32 = vmax.f32 %v1901_v24, %v2101_v53  ;;  %v2114_v13 = vmax.f32 %v2112_v8, %v2113_v60 }
 0x133   :  { %v2115_v54 = vmax.f32 %v2114_v13, %v2102_v32 }
 0x135   :  { %2470 = vrsqrt.f32 %v2115_v54  ;;  %vm2118_vm3 = vcmp.eq.f32.partialorder %v2115_v54, inf  ;;  %v2121_v22 = vand.u32 2147483648, %v2115_v54  ;;  %vm2120_vm10 = vcmp.eq.f32.partialorder %v2115_v54, 0.0 }
 0x13f   :  { %v2471_v6 = vpop.eup %2470 }
 0x140   :  { %v2117_v2 = vmul.f32 %v2471_v6, %v2115_v54 }
 0x142   :  { %v2119_v28 = vsel %vm2118_vm3, %v2115_v54, %v2117_v2 }
 0x143   :  { %v2122_v48 = vsel %vm2120_vm10, %v2121_v22, %v2119_v28 }
 0x144   :  { %2123 = vst [vmem:[%s4138_s4] sm:$0x1] %v2122_v48 }

</bundles_post_ra>
